<compile_context>
chip_gen: v7x
topology: tpu7x:2x2x1
jax: 0.10.0
libtpu: 0.0.40
codegen_flags: <defaults>
</compile_context>

<pallas_src>
import math

import jax
import jax.numpy as jnp
from jax.experimental import pallas as pl
from jax.experimental.pallas import tpu as pltpu

# Original PyTorch layer widths (8 Linear layers).
DIMS = [28 * 28, 128, 64, 12, 3, 12, 64, 128, 28 * 28]
N_LAYERS = len(DIMS) - 1  # 8

# Kernel layer widths after fusing Linear(12,3)+Linear(3,12) -> Linear(12,12).
FUSED_DIMS = [28 * 28, 128, 64, 12, 12, 64, 128, 28 * 28]
N_FUSED = len(FUSED_DIMS) - 1  # 7


def _round_up(x, m):
    return ((x + m - 1) // m) * m


# Hidden widths padded to the 128-lane vreg width; input/output stay 784.
PAD_DIMS = [d if i in (0, N_FUSED) else _round_up(d, 128)
            for i, d in enumerate(FUSED_DIMS)]


# --------------------------------------------------------------------------- #
# Kernel
# --------------------------------------------------------------------------- #
def autoencoder_kernel(x_ref, *refs):
    # refs = (w1, b1, ..., w7, b7, out_ref)
    out_ref = refs[-1]
    param_refs = refs[:-1]
    n_layers = len(param_refs) // 2

    h = x_ref[...]  # io_dtype (bf16 or f32)
    for layer in range(n_layers):
        w = param_refs[2 * layer][...]                  # bf16 or f32
        b = param_refs[2 * layer + 1][...]              # f32, shape (1, out)
        # MXU matmul in the weight dtype, accumulate in f32.
        z = jnp.dot(h.astype(w.dtype), w,
                    preferred_element_type=jnp.float32) + b
        if layer == n_layers - 1:
            # Sigmoid via one EUP tanh push: sigmoid(z) = 0.5*tanh(0.5*z)+0.5.
            h = 0.5 * jnp.tanh(0.5 * z) + 0.5
        else:
            h = jnp.maximum(z, 0.0)                     # ReLU (f32)
    out_ref[...] = h.astype(out_ref.dtype)


# --------------------------------------------------------------------------- #
# Parameter helpers
# --------------------------------------------------------------------------- #
def make_params(key):
    """PyTorch-style init for the original 8 layers; W stored [in, out]."""
    params = []
    for i in range(N_LAYERS):
        fan_in, fan_out = DIMS[i], DIMS[i + 1]
        key, kw, kb = jax.random.split(key, 3)
        bound = 1.0 / math.sqrt(fan_in)
        w = jax.random.uniform(kw, (fan_in, fan_out), jnp.float32, -bound, bound)
        b = jax.random.uniform(kb, (fan_out,), jnp.float32, -bound, bound)
        params.append((w, b))
    return params


def fuse_params(params):
    """Fuse Linear(12,3) + Linear(3,12) (no activation between them) exactly, in f32."""
    (w4, b4), (w5, b5) = params[3], params[4]
    w_m = w4 @ w5                 # (12, 12)
    b_m = b4 @ w5 + b5            # (12,)
    return list(params[:3]) + [(w_m, b_m)] + list(params[5:])


def pad_params(fused_params, weight_dtype=jnp.bfloat16):
    """Zero-pad bottleneck dims to 128 lanes; cast weights (biases stay f32).

    Padding is exact: padded weight rows/cols and bias entries are zero and
    ReLU(0)=0, so results are unchanged.
    """
    padded = []
    for i, (w, b) in enumerate(fused_params):
        pin, pout = PAD_DIMS[i], PAD_DIMS[i + 1]
        wp = jnp.zeros((pin, pout), jnp.float32).at[: w.shape[0], : w.shape[1]].set(w)
        bp = jnp.zeros((1, pout), jnp.float32).at[0, : b.shape[0]].set(b)
        padded.append((wp.astype(weight_dtype), bp))
    return padded


# --------------------------------------------------------------------------- #
# Wrapper
# --------------------------------------------------------------------------- #
def _make_specs(TB, d_in, d_out, padded_params, single_buffer):
    in_specs = [pl.BlockSpec((TB, d_in), lambda i: (i, 0))]
    for w, b in padded_params:
        if single_buffer:
            # Parameters are grid-invariant (block index always (0,0)):
            # single-buffer them so they are not duplicated in VMEM.
            in_specs.append(pl.BlockSpec(w.shape, lambda i: (0, 0),
                                         pipeline_mode=pl.Buffered(1)))
            in_specs.append(pl.BlockSpec(b.shape, lambda i: (0, 0),
                                         pipeline_mode=pl.Buffered(1)))
        else:
            in_specs.append(pl.BlockSpec(w.shape, lambda i: (0, 0)))
            in_specs.append(pl.BlockSpec(b.shape, lambda i: (0, 0)))
    out_spec = pl.BlockSpec((TB, d_out), lambda i: (i, 0))
    return in_specs, out_spec


def linear_autoencoder(x, padded_params, *, tile_b=2048,
                       io_dtype=jnp.bfloat16,
                       vmem_limit_bytes=48 * 1024 * 1024):
    """Run the fused autoencoder kernel, tiling the batch dimension."""
    B, D = x.shape
    assert D == FUSED_DIMS[0], f"expected input width {FUSED_DIMS[0]}, got {D}"

    x_io = x.astype(io_dtype)

    # Batch tile: multiple of 8 sublanes, capped by tile_b.
    TB = min(tile_b, _round_up(B, 8))
    Bp = _round_up(B, TB)
    if Bp != B:
        x_io = jnp.pad(x_io, ((0, Bp - B), (0, 0)))
    num_tiles = Bp // TB

    flat_params = []
    for w, b in padded_params:
        flat_params += [w, b]

    # Scheduler hint for XLA around the custom call.
    io_bytes = jnp.dtype(io_dtype).itemsize
    param_bytes = sum(a.size * a.dtype.itemsize for a in flat_params)
    flops = 2 * Bp * sum(PAD_DIMS[i] * PAD_DIMS[i + 1] for i in range(N_FUSED))
    cost = pl.CostEstimate(
        flops=flops,
        transcendentals=Bp * FUSED_DIMS[-1],
        bytes_accessed=Bp * D * io_bytes + Bp * FUSED_DIMS[-1] * io_bytes + param_bytes,
    )

    def build(single_buffer):
        in_specs, out_spec = _make_specs(TB, D, FUSED_DIMS[-1],
                                         padded_params, single_buffer)
        return pl.pallas_call(
            autoencoder_kernel,
            out_shape=jax.ShapeDtypeStruct((Bp, FUSED_DIMS[-1]), io_dtype),
            grid_spec=pl.GridSpec(
                grid=(num_tiles,),
                in_specs=in_specs,
                out_specs=out_spec,
            ),
            compiler_params=pltpu.CompilerParams(
                dimension_semantics=("parallel",),   # batch tiles independent
                vmem_limit_bytes=vmem_limit_bytes,
            ),
            cost_estimate=cost,
        )

    try:
        out = build(single_buffer=True)(x_io, *flat_params)
    except Exception:
        # pipeline_mode=pl.Buffered(1) not accepted by this Pallas lowering:
        # fall back to default double-buffered parameter specs (same kernel).
        out = build(single_buffer=False)(x_io, *flat_params)

    return out[:B] if Bp != B else out


# --------------------------------------------------------------------------- #
# Pure-JAX reference (matches the PyTorch module exactly; unfused, f32)
# --------------------------------------------------------------------------- #
def reference_forward(x, params):
    h = x
    for layer, (w, b) in enumerate(params):
        z = h @ w + b
        if layer == N_LAYERS - 1:
            h = jax.nn.sigmoid(z)
        elif layer == 3:
            h = z                       # encoder bottleneck: no activation
        else:
            h = jnp.maximum(z, 0.0)
    return h


if __name__ == "__main__":
    key = jax.random.PRNGKey(0)
    key, kx1, kx2 = jax.random.split(key, 3)
    params = make_params(key)
    fused = fuse_params(params)

    # --- Test 1: f32 weights + f32 I/O, single batch tile. ---
    B1 = 8
    x1 = jax.random.uniform(kx1, (B1, 28 * 28), jnp.float32)
    padded_f32 = pad_params(fused, jnp.float32)
    out1 = jax.block_until_ready(
        linear_autoencoder(x1, padded_f32, io_dtype=jnp.float32))
    ref1 = reference_forward(x1, params)
    assert out1.shape == (B1, 28 * 28)
    assert jnp.allclose(out1, ref1, atol=1e-4, rtol=1e-4), "f32 mismatch (single tile)"

    # --- Test 2: f32, multiple batch tiles + ragged batch (padding path). ---
    B2 = 20
    x2 = jax.random.uniform(kx2, (B2, 28 * 28), jnp.float32)
    out2 = jax.block_until_ready(
        linear_autoencoder(x2, padded_f32, tile_b=8, io_dtype=jnp.float32))
    ref2 = reference_forward(x2, params)
    assert out2.shape == (B2, 28 * 28)
    assert jnp.allclose(out2, ref2, atol=1e-4, rtol=1e-4), "f32 mismatch (tiled batch)"

    # --- Test 3: production defaults — bf16 weights + bf16 I/O (f32 accumulate). ---
    padded_bf16 = pad_params(fused, jnp.bfloat16)
    out3 = jax.block_until_ready(
        linear_autoencoder(x2, padded_bf16, tile_b=8, io_dtype=jnp.bfloat16))
    assert out3.shape == (B2, 28 * 28)
    assert out3.dtype == jnp.bfloat16
    assert jnp.allclose(out3.astype(jnp.float32), ref2, atol=6e-2, rtol=6e-2), \
        "bf16 mismatch (tiled batch)"

    print("KERNEL_OK")
</pallas_src>

<mosaic_0001>
module attributes {stable_mosaic.version = 11 : i64} {
  func.func @autoencoder_kernel(%arg0: i32, %arg1: memref<8x784xf32, #tpu.memory_space<vmem>>, %arg2: memref<784x128xf32, #tpu.memory_space<vmem>>, %arg3: memref<1x128xf32, #tpu.memory_space<vmem>>, %arg4: memref<128x128xf32, #tpu.memory_space<vmem>>, %arg5: memref<1x128xf32, #tpu.memory_space<vmem>>, %arg6: memref<128x128xf32, #tpu.memory_space<vmem>>, %arg7: memref<1x128xf32, #tpu.memory_space<vmem>>, %arg8: memref<128x128xf32, #tpu.memory_space<vmem>>, %arg9: memref<1x128xf32, #tpu.memory_space<vmem>>, %arg10: memref<128x128xf32, #tpu.memory_space<vmem>>, %arg11: memref<1x128xf32, #tpu.memory_space<vmem>>, %arg12: memref<128x128xf32, #tpu.memory_space<vmem>>, %arg13: memref<1x128xf32, #tpu.memory_space<vmem>>, %arg14: memref<128x784xf32, #tpu.memory_space<vmem>>, %arg15: memref<1x784xf32, #tpu.memory_space<vmem>>, %arg16: memref<8x784xf32, #tpu.memory_space<vmem>>) attributes {dimension_semantics = [#tpu.dimension_semantics<parallel>], iteration_bounds = array<i64: 1>, scalar_prefetch = 0 : i64, scratch_operands = 0 : i64, tpu.core_type = #tpu.core_type<tc>, window_params = [{transform_indices = @transform_0, window_bounds = array<i64: 8, 784>}, {pipeline_mode = #tpu.pipeline_mode<synchronous>, transform_indices = @transform_1, window_bounds = array<i64: 784, 128>}, {pipeline_mode = #tpu.pipeline_mode<synchronous>, transform_indices = @transform_2, window_bounds = array<i64: 1, 128>}, {pipeline_mode = #tpu.pipeline_mode<synchronous>, transform_indices = @transform_3, window_bounds = array<i64: 128, 128>}, {pipeline_mode = #tpu.pipeline_mode<synchronous>, transform_indices = @transform_4, window_bounds = array<i64: 1, 128>}, {pipeline_mode = #tpu.pipeline_mode<synchronous>, transform_indices = @transform_5, window_bounds = array<i64: 128, 128>}, {pipeline_mode = #tpu.pipeline_mode<synchronous>, transform_indices = @transform_6, window_bounds = array<i64: 1, 128>}, {pipeline_mode = #tpu.pipeline_mode<synchronous>, transform_indices = @transform_7, window_bounds = array<i64: 128, 128>}, {pipeline_mode = #tpu.pipeline_mode<synchronous>, transform_indices = @transform_8, window_bounds = array<i64: 1, 128>}, {pipeline_mode = #tpu.pipeline_mode<synchronous>, transform_indices = @transform_9, window_bounds = array<i64: 128, 128>}, {pipeline_mode = #tpu.pipeline_mode<synchronous>, transform_indices = @transform_10, window_bounds = array<i64: 1, 128>}, {pipeline_mode = #tpu.pipeline_mode<synchronous>, transform_indices = @transform_11, window_bounds = array<i64: 128, 128>}, {pipeline_mode = #tpu.pipeline_mode<synchronous>, transform_indices = @transform_12, window_bounds = array<i64: 1, 128>}, {pipeline_mode = #tpu.pipeline_mode<synchronous>, transform_indices = @transform_13, window_bounds = array<i64: 128, 784>}, {pipeline_mode = #tpu.pipeline_mode<synchronous>, transform_indices = @transform_14, window_bounds = array<i64: 1, 784>}, {transform_indices = @transform_15, window_bounds = array<i64: 8, 784>}]} {
    %c0 = arith.constant 0 : index
    %c0_0 = arith.constant 0 : index
    %0 = vector.load %arg1[%c0, %c0_0] : memref<8x784xf32, #tpu.memory_space<vmem>>, vector<8x784xf32>
    %c0_1 = arith.constant 0 : index
    %c0_2 = arith.constant 0 : index
    %1 = vector.load %arg2[%c0_1, %c0_2] : memref<784x128xf32, #tpu.memory_space<vmem>>, vector<784x128xf32>
    %c0_3 = arith.constant 0 : index
    %c0_4 = arith.constant 0 : index
    %2 = vector.load %arg3[%c0_3, %c0_4] : memref<1x128xf32, #tpu.memory_space<vmem>>, vector<1x128xf32>
    %cst = arith.constant dense<0.000000e+00> : vector<8x128xf32>
    %3 = tpu.matmul %0, %1, %cst {dimension_numbers = #tpu.dot_dimension_numbers<[1], [0], [0], [1], [0, 0, 1, 1], [], []>} : vector<8x784xf32>, vector<784x128xf32>, vector<8x128xf32> -> vector<8x128xf32>
    %4 = vector.broadcast %2 : vector<1x128xf32> to vector<8x128xf32>
    %5 = arith.addf %3, %4 : vector<8x128xf32>
    %cst_5 = arith.constant 0.000000e+00 : f32
    %6 = vector.broadcast %cst_5 : f32 to vector<8x128xf32>
    %7 = arith.maximumf %5, %6 : vector<8x128xf32>
    %c0_6 = arith.constant 0 : index
    %c0_7 = arith.constant 0 : index
    %8 = vector.load %arg4[%c0_6, %c0_7] : memref<128x128xf32, #tpu.memory_space<vmem>>, vector<128x128xf32>
    %c0_8 = arith.constant 0 : index
    %c0_9 = arith.constant 0 : index
    %9 = vector.load %arg5[%c0_8, %c0_9] : memref<1x128xf32, #tpu.memory_space<vmem>>, vector<1x128xf32>
    %cst_10 = arith.constant dense<0.000000e+00> : vector<8x128xf32>
    %10 = tpu.matmul %7, %8, %cst_10 {dimension_numbers = #tpu.dot_dimension_numbers<[1], [0], [0], [1], [0, 0, 1, 1], [], []>} : vector<8x128xf32>, vector<128x128xf32>, vector<8x128xf32> -> vector<8x128xf32>
    %11 = vector.broadcast %9 : vector<1x128xf32> to vector<8x128xf32>
    %12 = arith.addf %10, %11 : vector<8x128xf32>
    %cst_11 = arith.constant 0.000000e+00 : f32
    %13 = vector.broadcast %cst_11 : f32 to vector<8x128xf32>
    %14 = arith.maximumf %12, %13 : vector<8x128xf32>
    %c0_12 = arith.constant 0 : index
    %c0_13 = arith.constant 0 : index
    %15 = vector.load %arg6[%c0_12, %c0_13] : memref<128x128xf32, #tpu.memory_space<vmem>>, vector<128x128xf32>
    %c0_14 = arith.constant 0 : index
    %c0_15 = arith.constant 0 : index
    %16 = vector.load %arg7[%c0_14, %c0_15] : memref<1x128xf32, #tpu.memory_space<vmem>>, vector<1x128xf32>
    %cst_16 = arith.constant dense<0.000000e+00> : vector<8x128xf32>
    %17 = tpu.matmul %14, %15, %cst_16 {dimension_numbers = #tpu.dot_dimension_numbers<[1], [0], [0], [1], [0, 0, 1, 1], [], []>} : vector<8x128xf32>, vector<128x128xf32>, vector<8x128xf32> -> vector<8x128xf32>
    %18 = vector.broadcast %16 : vector<1x128xf32> to vector<8x128xf32>
    %19 = arith.addf %17, %18 : vector<8x128xf32>
    %cst_17 = arith.constant 0.000000e+00 : f32
    %20 = vector.broadcast %cst_17 : f32 to vector<8x128xf32>
    %21 = arith.maximumf %19, %20 : vector<8x128xf32>
    %c0_18 = arith.constant 0 : index
    %c0_19 = arith.constant 0 : index
    %22 = vector.load %arg8[%c0_18, %c0_19] : memref<128x128xf32, #tpu.memory_space<vmem>>, vector<128x128xf32>
    %c0_20 = arith.constant 0 : index
    %c0_21 = arith.constant 0 : index
    %23 = vector.load %arg9[%c0_20, %c0_21] : memref<1x128xf32, #tpu.memory_space<vmem>>, vector<1x128xf32>
    %cst_22 = arith.constant dense<0.000000e+00> : vector<8x128xf32>
    %24 = tpu.matmul %21, %22, %cst_22 {dimension_numbers = #tpu.dot_dimension_numbers<[1], [0], [0], [1], [0, 0, 1, 1], [], []>} : vector<8x128xf32>, vector<128x128xf32>, vector<8x128xf32> -> vector<8x128xf32>
    %25 = vector.broadcast %23 : vector<1x128xf32> to vector<8x128xf32>
    %26 = arith.addf %24, %25 : vector<8x128xf32>
    %cst_23 = arith.constant 0.000000e+00 : f32
    %27 = vector.broadcast %cst_23 : f32 to vector<8x128xf32>
    %28 = arith.maximumf %26, %27 : vector<8x128xf32>
    %c0_24 = arith.constant 0 : index
    %c0_25 = arith.constant 0 : index
    %29 = vector.load %arg10[%c0_24, %c0_25] : memref<128x128xf32, #tpu.memory_space<vmem>>, vector<128x128xf32>
    %c0_26 = arith.constant 0 : index
    %c0_27 = arith.constant 0 : index
    %30 = vector.load %arg11[%c0_26, %c0_27] : memref<1x128xf32, #tpu.memory_space<vmem>>, vector<1x128xf32>
    %cst_28 = arith.constant dense<0.000000e+00> : vector<8x128xf32>
    %31 = tpu.matmul %28, %29, %cst_28 {dimension_numbers = #tpu.dot_dimension_numbers<[1], [0], [0], [1], [0, 0, 1, 1], [], []>} : vector<8x128xf32>, vector<128x128xf32>, vector<8x128xf32> -> vector<8x128xf32>
    %32 = vector.broadcast %30 : vector<1x128xf32> to vector<8x128xf32>
    %33 = arith.addf %31, %32 : vector<8x128xf32>
    %cst_29 = arith.constant 0.000000e+00 : f32
    %34 = vector.broadcast %cst_29 : f32 to vector<8x128xf32>
    %35 = arith.maximumf %33, %34 : vector<8x128xf32>
    %c0_30 = arith.constant 0 : index
    %c0_31 = arith.constant 0 : index
    %36 = vector.load %arg12[%c0_30, %c0_31] : memref<128x128xf32, #tpu.memory_space<vmem>>, vector<128x128xf32>
    %c0_32 = arith.constant 0 : index
    %c0_33 = arith.constant 0 : index
    %37 = vector.load %arg13[%c0_32, %c0_33] : memref<1x128xf32, #tpu.memory_space<vmem>>, vector<1x128xf32>
    %cst_34 = arith.constant dense<0.000000e+00> : vector<8x128xf32>
    %38 = tpu.matmul %35, %36, %cst_34 {dimension_numbers = #tpu.dot_dimension_numbers<[1], [0], [0], [1], [0, 0, 1, 1], [], []>} : vector<8x128xf32>, vector<128x128xf32>, vector<8x128xf32> -> vector<8x128xf32>
    %39 = vector.broadcast %37 : vector<1x128xf32> to vector<8x128xf32>
    %40 = arith.addf %38, %39 : vector<8x128xf32>
    %cst_35 = arith.constant 0.000000e+00 : f32
    %41 = vector.broadcast %cst_35 : f32 to vector<8x128xf32>
    %42 = arith.maximumf %40, %41 : vector<8x128xf32>
    %c0_36 = arith.constant 0 : index
    %c0_37 = arith.constant 0 : index
    %43 = vector.load %arg14[%c0_36, %c0_37] : memref<128x784xf32, #tpu.memory_space<vmem>>, vector<128x784xf32>
    %c0_38 = arith.constant 0 : index
    %c0_39 = arith.constant 0 : index
    %44 = vector.load %arg15[%c0_38, %c0_39] : memref<1x784xf32, #tpu.memory_space<vmem>>, vector<1x784xf32>
    %cst_40 = arith.constant dense<0.000000e+00> : vector<8x784xf32>
    %45 = tpu.matmul %42, %43, %cst_40 {dimension_numbers = #tpu.dot_dimension_numbers<[1], [0], [0], [1], [0, 0, 1, 1], [], []>} : vector<8x128xf32>, vector<128x784xf32>, vector<8x784xf32> -> vector<8x784xf32>
    %46 = vector.broadcast %44 : vector<1x784xf32> to vector<8x784xf32>
    %47 = arith.addf %45, %46 : vector<8x784xf32>
    %cst_41 = arith.constant 5.000000e-01 : f32
    %48 = vector.broadcast %cst_41 : f32 to vector<8x784xf32>
    %49 = arith.mulf %48, %47 : vector<8x784xf32>
    %50 = math.tanh %49 : vector<8x784xf32>
    %cst_42 = arith.constant 5.000000e-01 : f32
    %51 = vector.broadcast %cst_42 : f32 to vector<8x784xf32>
    %52 = arith.mulf %51, %50 : vector<8x784xf32>
    %cst_43 = arith.constant 5.000000e-01 : f32
    %53 = vector.broadcast %cst_43 : f32 to vector<8x784xf32>
    %54 = arith.addf %52, %53 : vector<8x784xf32>
    %c0_44 = arith.constant 0 : index
    %c0_45 = arith.constant 0 : index
    %55 = vector.load %arg16[%c0_44, %c0_45] : memref<8x784xf32, #tpu.memory_space<vmem>>, vector<8x784xf32>
    tpu.vector_store %arg16[%c0_44, %c0_45], %54 {strides = array<i32>} : memref<8x784xf32, #tpu.memory_space<vmem>>, vector<8x784xf32>,
    return
  }
  func.func @transform_0(%arg0: i32) -> (i32, i32) {
    %c0_i32 = arith.constant 0 : i32
    %c0_i32_0 = arith.constant 0 : i32
    return %arg0, %c0_i32 : i32, i32
  }
  func.func @transform_1(%arg0: i32) -> (i32, i32) {
    %c0_i32 = arith.constant 0 : i32
    %c0_i32_0 = arith.constant 0 : i32
    %c0_i32_1 = arith.constant 0 : i32
    return %c0_i32, %c0_i32_0 : i32, i32
  }
  func.func @transform_2(%arg0: i32) -> (i32, i32) {
    %c0_i32 = arith.constant 0 : i32
    %c0_i32_0 = arith.constant 0 : i32
    %c0_i32_1 = arith.constant 0 : i32
    return %c0_i32, %c0_i32_0 : i32, i32
  }
  func.func @transform_3(%arg0: i32) -> (i32, i32) {
    %c0_i32 = arith.constant 0 : i32
    %c0_i32_0 = arith.constant 0 : i32
    %c0_i32_1 = arith.constant 0 : i32
    return %c0_i32, %c0_i32_0 : i32, i32
  }
  func.func @transform_4(%arg0: i32) -> (i32, i32) {
    %c0_i32 = arith.constant 0 : i32
    %c0_i32_0 = arith.constant 0 : i32
    %c0_i32_1 = arith.constant 0 : i32
    return %c0_i32, %c0_i32_0 : i32, i32
  }
  func.func @transform_5(%arg0: i32) -> (i32, i32) {
    %c0_i32 = arith.constant 0 : i32
    %c0_i32_0 = arith.constant 0 : i32
    %c0_i32_1 = arith.constant 0 : i32
    return %c0_i32, %c0_i32_0 : i32, i32
  }
  func.func @transform_6(%arg0: i32) -> (i32, i32) {
    %c0_i32 = arith.constant 0 : i32
    %c0_i32_0 = arith.constant 0 : i32
    %c0_i32_1 = arith.constant 0 : i32
    return %c0_i32, %c0_i32_0 : i32, i32
  }
  func.func @transform_7(%arg0: i32) -> (i32, i32) {
    %c0_i32 = arith.constant 0 : i32
    %c0_i32_0 = arith.constant 0 : i32
    %c0_i32_1 = arith.constant 0 : i32
    return %c0_i32, %c0_i32_0 : i32, i32
  }
  func.func @transform_8(%arg0: i32) -> (i32, i32) {
    %c0_i32 = arith.constant 0 : i32
    %c0_i32_0 = arith.constant 0 : i32
    %c0_i32_1 = arith.constant 0 : i32
    return %c0_i32, %c0_i32_0 : i32, i32
  }
  func.func @transform_9(%arg0: i32) -> (i32, i32) {
    %c0_i32 = arith.constant 0 : i32
    %c0_i32_0 = arith.constant 0 : i32
    %c0_i32_1 = arith.constant 0 : i32
    return %c0_i32, %c0_i32_0 : i32, i32
  }
  func.func @transform_10(%arg0: i32) -> (i32, i32) {
    %c0_i32 = arith.constant 0 : i32
    %c0_i32_0 = arith.constant 0 : i32
    %c0_i32_1 = arith.constant 0 : i32
    return %c0_i32, %c0_i32_0 : i32, i32
  }
  func.func @transform_11(%arg0: i32) -> (i32, i32) {
    %c0_i32 = arith.constant 0 : i32
    %c0_i32_0 = arith.constant 0 : i32
    %c0_i32_1 = arith.constant 0 : i32
    return %c0_i32, %c0_i32_0 : i32, i32
  }
  func.func @transform_12(%arg0: i32) -> (i32, i32) {
    %c0_i32 = arith.constant 0 : i32
    %c0_i32_0 = arith.constant 0 : i32
    %c0_i32_1 = arith.constant 0 : i32
    return %c0_i32, %c0_i32_0 : i32, i32
  }
  func.func @transform_13(%arg0: i32) -> (i32, i32) {
    %c0_i32 = arith.constant 0 : i32
    %c0_i32_0 = arith.constant 0 : i32
    %c0_i32_1 = arith.constant 0 : i32
    return %c0_i32, %c0_i32_0 : i32, i32
  }
  func.func @transform_14(%arg0: i32) -> (i32, i32) {
    %c0_i32 = arith.constant 0 : i32
    %c0_i32_0 = arith.constant 0 : i32
    %c0_i32_1 = arith.constant 0 : i32
    return %c0_i32, %c0_i32_0 : i32, i32
  }
  func.func @transform_15(%arg0: i32) -> (i32, i32) {
    %c0_i32 = arith.constant 0 : i32
    %c0_i32_0 = arith.constant 0 : i32
    return %arg0, %c0_i32 : i32, i32
  }
}

module attributes {stable_mosaic.version = 11 : i64} {
  func.func @autoencoder_kernel(%arg0: i32, %arg1: memref<8x784xf32, #tpu.memory_space<vmem>>, %arg2: memref<784x128xf32, #tpu.memory_space<vmem>>, %arg3: memref<1x128xf32, #tpu.memory_space<vmem>>, %arg4: memref<128x128xf32, #tpu.memory_space<vmem>>, %arg5: memref<1x128xf32, #tpu.memory_space<vmem>>, %arg6: memref<128x128xf32, #tpu.memory_space<vmem>>, %arg7: memref<1x128xf32, #tpu.memory_space<vmem>>, %arg8: memref<128x128xf32, #tpu.memory_space<vmem>>, %arg9: memref<1x128xf32, #tpu.memory_space<vmem>>, %arg10: memref<128x128xf32, #tpu.memory_space<vmem>>, %arg11: memref<1x128xf32, #tpu.memory_space<vmem>>, %arg12: memref<128x128xf32, #tpu.memory_space<vmem>>, %arg13: memref<1x128xf32, #tpu.memory_space<vmem>>, %arg14: memref<128x784xf32, #tpu.memory_space<vmem>>, %arg15: memref<1x784xf32, #tpu.memory_space<vmem>>, %arg16: memref<8x784xf32, #tpu.memory_space<vmem>>) attributes {dimension_semantics = [#tpu.dimension_semantics<parallel>], iteration_bounds = array<i64: 1>, scalar_prefetch = 0 : i64, scratch_operands = 0 : i64, tpu.core_type = #tpu.core_type<tc>, window_params = [{transform_indices = @transform_0, window_bounds = array<i64: 8, 784>}, {pipeline_mode = #tpu.pipeline_mode<synchronous>, transform_indices = @transform_1, window_bounds = array<i64: 784, 128>}, {pipeline_mode = #tpu.pipeline_mode<synchronous>, transform_indices = @transform_2, window_bounds = array<i64: 1, 128>}, {pipeline_mode = #tpu.pipeline_mode<synchronous>, transform_indices = @transform_3, window_bounds = array<i64: 128, 128>}, {pipeline_mode = #tpu.pipeline_mode<synchronous>, transform_indices = @transform_4, window_bounds = array<i64: 1, 128>}, {pipeline_mode = #tpu.pipeline_mode<synchronous>, transform_indices = @transform_5, window_bounds = array<i64: 128, 128>}, {pipeline_mode = #tpu.pipeline_mode<synchronous>, transform_indices = @transform_6, window_bounds = array<i64: 1, 128>}, {pipeline_mode = #tpu.pipeline_mode<synchronous>, transform_indices = @transform_7, window_bounds = array<i64: 128, 128>}, {pipeline_mode = #tpu.pipeline_mode<synchronous>, transform_indices = @transform_8, window_bounds = array<i64: 1, 128>}, {pipeline_mode = #tpu.pipeline_mode<synchronous>, transform_indices = @transform_9, window_bounds = array<i64: 128, 128>}, {pipeline_mode = #tpu.pipeline_mode<synchronous>, transform_indices = @transform_10, window_bounds = array<i64: 1, 128>}, {pipeline_mode = #tpu.pipeline_mode<synchronous>, transform_indices = @transform_11, window_bounds = array<i64: 128, 128>}, {pipeline_mode = #tpu.pipeline_mode<synchronous>, transform_indices = @transform_12, window_bounds = array<i64: 1, 128>}, {pipeline_mode = #tpu.pipeline_mode<synchronous>, transform_indices = @transform_13, window_bounds = array<i64: 128, 784>}, {pipeline_mode = #tpu.pipeline_mode<synchronous>, transform_indices = @transform_14, window_bounds = array<i64: 1, 784>}, {transform_indices = @transform_15, window_bounds = array<i64: 8, 784>}]} {
    %c0 = arith.constant 0 : index
    %c0_0 = arith.constant 0 : index
    %0 = vector.load %arg1[%c0, %c0_0] : memref<8x784xf32, #tpu.memory_space<vmem>>, vector<8x784xf32>
    %c0_1 = arith.constant 0 : index
    %c0_2 = arith.constant 0 : index
    %1 = vector.load %arg2[%c0_1, %c0_2] : memref<784x128xf32, #tpu.memory_space<vmem>>, vector<784x128xf32>
    %c0_3 = arith.constant 0 : index
    %c0_4 = arith.constant 0 : index
    %2 = vector.load %arg3[%c0_3, %c0_4] : memref<1x128xf32, #tpu.memory_space<vmem>>, vector<1x128xf32>
    %cst = arith.constant dense<0.000000e+00> : vector<8x128xf32>
    %3 = tpu.matmul %0, %1, %cst {dimension_numbers = #tpu.dot_dimension_numbers<[1], [0], [0], [1], [0, 0, 1, 1], [], []>} : vector<8x784xf32>, vector<784x128xf32>, vector<8x128xf32> -> vector<8x128xf32>
    %4 = vector.broadcast %2 : vector<1x128xf32> to vector<8x128xf32>
    %5 = arith.addf %3, %4 : vector<8x128xf32>
    %cst_5 = arith.constant 0.000000e+00 : f32
    %6 = vector.broadcast %cst_5 : f32 to vector<8x128xf32>
    %7 = arith.maximumf %5, %6 : vector<8x128xf32>
    %c0_6 = arith.constant 0 : index
    %c0_7 = arith.constant 0 : index
    %8 = vector.load %arg4[%c0_6, %c0_7] : memref<128x128xf32, #tpu.memory_space<vmem>>, vector<128x128xf32>
    %c0_8 = arith.constant 0 : index
    %c0_9 = arith.constant 0 : index
    %9 = vector.load %arg5[%c0_8, %c0_9] : memref<1x128xf32, #tpu.memory_space<vmem>>, vector<1x128xf32>
    %cst_10 = arith.constant dense<0.000000e+00> : vector<8x128xf32>
    %10 = tpu.matmul %7, %8, %cst_10 {dimension_numbers = #tpu.dot_dimension_numbers<[1], [0], [0], [1], [0, 0, 1, 1], [], []>} : vector<8x128xf32>, vector<128x128xf32>, vector<8x128xf32> -> vector<8x128xf32>
    %11 = vector.broadcast %9 : vector<1x128xf32> to vector<8x128xf32>
    %12 = arith.addf %10, %11 : vector<8x128xf32>
    %cst_11 = arith.constant 0.000000e+00 : f32
    %13 = vector.broadcast %cst_11 : f32 to vector<8x128xf32>
    %14 = arith.maximumf %12, %13 : vector<8x128xf32>
    %c0_12 = arith.constant 0 : index
    %c0_13 = arith.constant 0 : index
    %15 = vector.load %arg6[%c0_12, %c0_13] : memref<128x128xf32, #tpu.memory_space<vmem>>, vector<128x128xf32>
    %c0_14 = arith.constant 0 : index
    %c0_15 = arith.constant 0 : index
    %16 = vector.load %arg7[%c0_14, %c0_15] : memref<1x128xf32, #tpu.memory_space<vmem>>, vector<1x128xf32>
    %cst_16 = arith.constant dense<0.000000e+00> : vector<8x128xf32>
    %17 = tpu.matmul %14, %15, %cst_16 {dimension_numbers = #tpu.dot_dimension_numbers<[1], [0], [0], [1], [0, 0, 1, 1], [], []>} : vector<8x128xf32>, vector<128x128xf32>, vector<8x128xf32> -> vector<8x128xf32>
    %18 = vector.broadcast %16 : vector<1x128xf32> to vector<8x128xf32>
    %19 = arith.addf %17, %18 : vector<8x128xf32>
    %cst_17 = arith.constant 0.000000e+00 : f32
    %20 = vector.broadcast %cst_17 : f32 to vector<8x128xf32>
    %21 = arith.maximumf %19, %20 : vector<8x128xf32>
    %c0_18 = arith.constant 0 : index
    %c0_19 = arith.constant 0 : index
    %22 = vector.load %arg8[%c0_18, %c0_19] : memref<128x128xf32, #tpu.memory_space<vmem>>, vector<128x128xf32>
    %c0_20 = arith.constant 0 : index
    %c0_21 = arith.constant 0 : index
    %23 = vector.load %arg9[%c0_20, %c0_21] : memref<1x128xf32, #tpu.memory_space<vmem>>, vector<1x128xf32>
    %cst_22 = arith.constant dense<0.000000e+00> : vector<8x128xf32>
    %24 = tpu.matmul %21, %22, %cst_22 {dimension_numbers = #tpu.dot_dimension_numbers<[1], [0], [0], [1], [0, 0, 1, 1], [], []>} : vector<8x128xf32>, vector<128x128xf32>, vector<8x128xf32> -> vector<8x128xf32>
    %25 = vector.broadcast %23 : vector<1x128xf32> to vector<8x128xf32>
    %26 = arith.addf %24, %25 : vector<8x128xf32>
    %cst_23 = arith.constant 0.000000e+00 : f32
    %27 = vector.broadcast %cst_23 : f32 to vector<8x128xf32>
    %28 = arith.maximumf %26, %27 : vector<8x128xf32>
    %c0_24 = arith.constant 0 : index
    %c0_25 = arith.constant 0 : index
    %29 = vector.load %arg10[%c0_24, %c0_25] : memref<128x128xf32, #tpu.memory_space<vmem>>, vector<128x128xf32>
    %c0_26 = arith.constant 0 : index
    %c0_27 = arith.constant 0 : index
    %30 = vector.load %arg11[%c0_26, %c0_27] : memref<1x128xf32, #tpu.memory_space<vmem>>, vector<1x128xf32>
    %cst_28 = arith.constant dense<0.000000e+00> : vector<8x128xf32>
    %31 = tpu.matmul %28, %29, %cst_28 {dimension_numbers = #tpu.dot_dimension_numbers<[1], [0], [0], [1], [0, 0, 1, 1], [], []>} : vector<8x128xf32>, vector<128x128xf32>, vector<8x128xf32> -> vector<8x128xf32>
    %32 = vector.broadcast %30 : vector<1x128xf32> to vector<8x128xf32>
    %33 = arith.addf %31, %32 : vector<8x128xf32>
    %cst_29 = arith.constant 0.000000e+00 : f32
    %34 = vector.broadcast %cst_29 : f32 to vector<8x128xf32>
    %35 = arith.maximumf %33, %34 : vector<8x128xf32>
    %c0_30 = arith.constant 0 : index
    %c0_31 = arith.constant 0 : index
    %36 = vector.load %arg12[%c0_30, %c0_31] : memref<128x128xf32, #tpu.memory_space<vmem>>, vector<128x128xf32>
    %c0_32 = arith.constant 0 : index
    %c0_33 = arith.constant 0 : index
    %37 = vector.load %arg13[%c0_32, %c0_33] : memref<1x128xf32, #tpu.memory_space<vmem>>, vector<1x128xf32>
    %cst_34 = arith.constant dense<0.000000e+00> : vector<8x128xf32>
    %38 = tpu.matmul %35, %36, %cst_34 {dimension_numbers = #tpu.dot_dimension_numbers<[1], [0], [0], [1], [0, 0, 1, 1], [], []>} : vector<8x128xf32>, vector<128x128xf32>, vector<8x128xf32> -> vector<8x128xf32>
    %39 = vector.broadcast %37 : vector<1x128xf32> to vector<8x128xf32>
    %40 = arith.addf %38, %39 : vector<8x128xf32>
    %cst_35 = arith.constant 0.000000e+00 : f32
    %41 = vector.broadcast %cst_35 : f32 to vector<8x128xf32>
    %42 = arith.maximumf %40, %41 : vector<8x128xf32>
    %c0_36 = arith.constant 0 : index
    %c0_37 = arith.constant 0 : index
    %43 = vector.load %arg14[%c0_36, %c0_37] : memref<128x784xf32, #tpu.memory_space<vmem>>, vector<128x784xf32>
    %c0_38 = arith.constant 0 : index
    %c0_39 = arith.constant 0 : index
    %44 = vector.load %arg15[%c0_38, %c0_39] : memref<1x784xf32, #tpu.memory_space<vmem>>, vector<1x784xf32>
    %cst_40 = arith.constant dense<0.000000e+00> : vector<8x784xf32>
    %45 = tpu.matmul %42, %43, %cst_40 {dimension_numbers = #tpu.dot_dimension_numbers<[1], [0], [0], [1], [0, 0, 1, 1], [], []>} : vector<8x128xf32>, vector<128x784xf32>, vector<8x784xf32> -> vector<8x784xf32>
    %46 = vector.broadcast %44 : vector<1x784xf32> to vector<8x784xf32>
    %47 = arith.addf %45, %46 : vector<8x784xf32>
    %cst_41 = arith.constant 5.000000e-01 : f32
    %48 = vector.broadcast %cst_41 : f32 to vector<8x784xf32>
    %49 = arith.mulf %48, %47 : vector<8x784xf32>
    %50 = math.tanh %49 : vector<8x784xf32>
    %cst_42 = arith.constant 5.000000e-01 : f32
    %51 = vector.broadcast %cst_42 : f32 to vector<8x784xf32>
    %52 = arith.mulf %51, %50 : vector<8x784xf32>
    %cst_43 = arith.constant 5.000000e-01 : f32
    %53 = vector.broadcast %cst_43 : f32 to vector<8x784xf32>
    %54 = arith.addf %52, %53 : vector<8x784xf32>
    %c0_44 = arith.constant 0 : index
    %c0_45 = arith.constant 0 : index
    %55 = vector.load %arg16[%c0_44, %c0_45] : memref<8x784xf32, #tpu.memory_space<vmem>>, vector<8x784xf32>
    tpu.vector_store %arg16[%c0_44, %c0_45], %54 {strides = array<i32>} : memref<8x784xf32, #tpu.memory_space<vmem>>, vector<8x784xf32>,
    return
  }
  func.func @transform_0(%arg0: i32) -> (i32, i32) {
    %c0_i32 = arith.constant 0 : i32
    %c0_i32_0 = arith.constant 0 : i32
    return %arg0, %c0_i32 : i32, i32
  }
  func.func @transform_1(%arg0: i32) -> (i32, i32) {
    %c0_i32 = arith.constant 0 : i32
    %c0_i32_0 = arith.constant 0 : i32
    %c0_i32_1 = arith.constant 0 : i32
    return %c0_i32, %c0_i32_0 : i32, i32
  }
  func.func @transform_2(%arg0: i32) -> (i32, i32) {
    %c0_i32 = arith.constant 0 : i32
    %c0_i32_0 = arith.constant 0 : i32
    %c0_i32_1 = arith.constant 0 : i32
    return %c0_i32, %c0_i32_0 : i32, i32
  }
  func.func @transform_3(%arg0: i32) -> (i32, i32) {
    %c0_i32 = arith.constant 0 : i32
    %c0_i32_0 = arith.constant 0 : i32
    %c0_i32_1 = arith.constant 0 : i32
    return %c0_i32, %c0_i32_0 : i32, i32
  }
  func.func @transform_4(%arg0: i32) -> (i32, i32) {
    %c0_i32 = arith.constant 0 : i32
    %c0_i32_0 = arith.constant 0 : i32
    %c0_i32_1 = arith.constant 0 : i32
    return %c0_i32, %c0_i32_0 : i32, i32
  }
  func.func @transform_5(%arg0: i32) -> (i32, i32) {
    %c0_i32 = arith.constant 0 : i32
    %c0_i32_0 = arith.constant 0 : i32
    %c0_i32_1 = arith.constant 0 : i32
    return %c0_i32, %c0_i32_0 : i32, i32
  }
  func.func @transform_6(%arg0: i32) -> (i32, i32) {
    %c0_i32 = arith.constant 0 : i32
    %c0_i32_0 = arith.constant 0 : i32
    %c0_i32_1 = arith.constant 0 : i32
    return %c0_i32, %c0_i32_0 : i32, i32
  }
  func.func @transform_7(%arg0: i32) -> (i32, i32) {
    %c0_i32 = arith.constant 0 : i32
    %c0_i32_0 = arith.constant 0 : i32
    %c0_i32_1 = arith.constant 0 : i32
    return %c0_i32, %c0_i32_0 : i32, i32
  }
  func.func @transform_8(%arg0: i32) -> (i32, i32) {
    %c0_i32 = arith.constant 0 : i32
    %c0_i32_0 = arith.constant 0 : i32
    %c0_i32_1 = arith.constant 0 : i32
    return %c0_i32, %c0_i32_0 : i32, i32
  }
  func.func @transform_9(%arg0: i32) -> (i32, i32) {
    %c0_i32 = arith.constant 0 : i32
    %c0_i32_0 = arith.constant 0 : i32
    %c0_i32_1 = arith.constant 0 : i32
    return %c0_i32, %c0_i32_0 : i32, i32
  }
  func.func @transform_10(%arg0: i32) -> (i32, i32) {
    %c0_i32 = arith.constant 0 : i32
    %c0_i32_0 = arith.constant 0 : i32
    %c0_i32_1 = arith.constant 0 : i32
    return %c0_i32, %c0_i32_0 : i32, i32
  }
  func.func @transform_11(%arg0: i32) -> (i32, i32) {
    %c0_i32 = arith.constant 0 : i32
    %c0_i32_0 = arith.constant 0 : i32
    %c0_i32_1 = arith.constant 0 : i32
    return %c0_i32, %c0_i32_0 : i32, i32
  }
  func.func @transform_12(%arg0: i32) -> (i32, i32) {
    %c0_i32 = arith.constant 0 : i32
    %c0_i32_0 = arith.constant 0 : i32
    %c0_i32_1 = arith.constant 0 : i32
    return %c0_i32, %c0_i32_0 : i32, i32
  }
  func.func @transform_13(%arg0: i32) -> (i32, i32) {
    %c0_i32 = arith.constant 0 : i32
    %c0_i32_0 = arith.constant 0 : i32
    %c0_i32_1 = arith.constant 0 : i32
    return %c0_i32, %c0_i32_0 : i32, i32
  }
  func.func @transform_14(%arg0: i32) -> (i32, i32) {
    %c0_i32 = arith.constant 0 : i32
    %c0_i32_0 = arith.constant 0 : i32
    %c0_i32_1 = arith.constant 0 : i32
    return %c0_i32, %c0_i32_0 : i32, i32
  }
  func.func @transform_15(%arg0: i32) -> (i32, i32) {
    %c0_i32 = arith.constant 0 : i32
    %c0_i32_0 = arith.constant 0 : i32
    return %arg0, %c0_i32 : i32, i32
  }
}

</mosaic_0001>

<bundles_post_ra>
// kernel: tpu_custom_call.1
= control target key start
LH: loop header
LB: loop body
LE: loop exit
PB: predicated region body
PF: predicated region fallthrough
CT: control target
= control target key end

     0   :  { %s3296_s0 = inlined_call_operand.vmem [shape: f32[8,784], index: 0, kind: input, shape index: {}]   ;;  %s3297_s1 = inlined_call_operand.vmem [shape: f32[784,128], index: 1, kind: input, shape index: {}]   ;;  %s3298_s2 = inlined_call_operand.vmem [shape: f32[1,128], index: 2, kind: input, shape index: {}]   ;;  %s3299_s3 = inlined_call_operand.vmem [shape: f32[128,128], index: 3, kind: input, shape index: {}]   ;;  %s3300_s4 = inlined_call_operand.vmem [shape: f32[1,128], index: 4, kind: input, shape index: {}]   ;;  %s3301_s5 = inlined_call_operand.vmem [shape: f32[128,128], index: 5, kind: input, shape index: {}]   ;;  %s3302_s6 = inlined_call_operand.vmem [shape: f32[1,128], index: 6, kind: input, shape index: {}]   ;;  %s3303_s7 = inlined_call_operand.vmem [shape: f32[128,128], index: 7, kind: input, shape index: {}]   ;;  %s3304_s8 = inlined_call_operand.vmem [shape: f32[1,128], index: 8, kind: input, shape index: {}]   ;;  %s3305_s9 = inlined_call_operand.vmem [shape: f32[128,128], index: 9, kind: input, shape index: {}]   ;;  %s3306_s10 = inlined_call_operand.vmem [shape: f32[1,128], index: 10, kind: input, shape index: {}]   ;;  %s3307_s11 = inlined_call_operand.vmem [shape: f32[128,128], index: 11, kind: input, shape index: {}]   ;;  %s3308_s12 = inlined_call_operand.vmem [shape: f32[1,128], index: 12, kind: input, shape index: {}]   ;;  %s3309_s13 = inlined_call_operand.vmem [shape: f32[128,784], index: 13, kind: input, shape index: {}]   ;;  %s3310_s14 = inlined_call_operand.vmem [shape: f32[1,784], index: 14, kind: input, shape index: {}]   ;;  %s3311_s15 = inlined_call_operand.hbm [shape: f32[8,784], index: 15, kind: output, shape index: {}]  }
   0x1   :  { %v74_v0 = vld [vmem:[%s3297_s1 + $0x80] sm:$0xff]  ;;  %v75_v1 = vld [vmem:[%s3297_s1 + $0x88] sm:$0xff]  ;;  %v76_v11 = vld [vmem:[%s3297_s1 + $0x90] sm:$0xff] }
   0x2   :  { %v58_v2 = vld [vmem:[%s3297_s1] sm:$0xff]  ;;  %v1833_v3 = vpack.c.bf16 %v75_v1, %v74_v0  ;;  %v59_v4 = vld [vmem:[%s3297_s1 + $0x8] sm:$0xff]  ;;  %v77_v13 = vld [vmem:[%s3297_s1 + $0x98] sm:$0xff] }
   0x3   :  { %v106_v5 = vld [vmem:[%s3297_s1 + $0x180] sm:$0xff]  ;;  %v107_v6 = vld [vmem:[%s3297_s1 + $0x188] sm:$0xff]  ;;  %v1835_v7 = vpack.c.bf16 %v59_v4, %v58_v2  ;;  %v60_v14 = vld [vmem:[%s3297_s1 + $0x10] sm:$0xff]  ;;  %v1837_v16 = vpack.c.bf16 %v77_v13, %v76_v11 }
   0x4   :  { %v1865_v8 = vpack.c.bf16 %v107_v6, %v106_v5  ;;  %v90_v9 = vld [vmem:[%s3297_s1 + $0x100] sm:$0xff]  ;;  %v91_v10 = vld [vmem:[%s3297_s1 + $0x108] sm:$0xff]  ;;  %1834 = vmatprep.subr.bf16.mxu0 %v1833_v3  ;;  %v61_v15 = vld [vmem:[%s3297_s1 + $0x18] sm:$0xff] }
   0x5   :  { %v1867_v12 = vpack.c.bf16 %v91_v10, %v90_v9  ;;  %1836 = vmatpush3.bf16.msra.mxu0 %v1835_v7  ;;  %v1839_v17 = vpack.c.bf16 %v61_v15, %v60_v14  ;;  %v108_v18 = vld [vmem:[%s3297_s1 + $0x190] sm:$0xff]  ;;  %v109_v19 = vld [vmem:[%s3297_s1 + $0x198] sm:$0xff]  ;;  %v78_v23 = vld [vmem:[%s3297_s1 + $0xa0] sm:$0xff] }
   0x6   :  { %1866 = vmatprep.subr.bf16.mxu1 %v1865_v8  ;;  %v92_v20 = vld [vmem:[%s3297_s1 + $0x110] sm:$0xff]  ;;  %v1869_v21 = vpack.c.bf16 %v109_v19, %v108_v18  ;;  %v93_v22 = vld [vmem:[%s3297_s1 + $0x118] sm:$0xff]  ;;  %v79_v24 = vld [vmem:[%s3297_s1 + $0xa8] sm:$0xff]  ;;  %1838 = vmatprep.subr.bf16.mxu0 %v1837_v16 }
   0x7   :  { %1868 = vmatpush3.bf16.msra.mxu1 %v1867_v12  ;;  %v1871_v25 = vpack.c.bf16 %v93_v22, %v92_v20  ;;  %v1841_v26 = vpack.c.bf16 %v79_v24, %v78_v23  ;;  %v62_v27 = vld [vmem:[%s3297_s1 + $0x20] sm:$0xff]  ;;  %v63_v28 = vld [vmem:[%s3297_s1 + $0x28] sm:$0xff]  ;;  %v80_v35 = vld [vmem:[%s3297_s1 + $0xb0] sm:$0xff] }
   0x8   :  { %v110_v29 = vld [vmem:[%s3297_s1 + $0x1a0] sm:$0xff]  ;;  %1870 = vmatprep.subr.bf16.mxu1 %v1869_v21  ;;  %v111_v30 = vld [vmem:[%s3297_s1 + $0x1a8] sm:$0xff]  ;;  %v1843_v33 = vpack.c.bf16 %v63_v28, %v62_v27  ;;  %v81_v36 = vld [vmem:[%s3297_s1 + $0xb8] sm:$0xff] }
   0x9   :  { %v94_v31 = vld [vmem:[%s3297_s1 + $0x120] sm:$0xff]  ;;  %v95_v32 = vld [vmem:[%s3297_s1 + $0x128] sm:$0xff]  ;;  %1840 = vmatpush3.bf16.msra.mxu0 %v1839_v17  ;;  %v1873_v34 = vpack.c.bf16 %v111_v30, %v110_v29  ;;  %v64_v37 = vld [vmem:[%s3297_s1 + $0x30] sm:$0xff]  ;;  %v1845_v39 = vpack.c.bf16 %v81_v36, %v80_v35 }
   0xa   :  { %1842 = vmatprep.subr.bf16.mxu0 %v1841_v26  ;;  %v1875_v38 = vpack.c.bf16 %v95_v32, %v94_v31  ;;  %v65_v40 = vld [vmem:[%s3297_s1 + $0x38] sm:$0xff]  ;;  %v112_v41 = vld [vmem:[%s3297_s1 + $0x1b0] sm:$0xff]  ;;  %v82_v46 = vld [vmem:[%s3297_s1 + $0xc0] sm:$0xff] }
   0xb   :  { %1872 = vmatpush3.bf16.msra.mxu1 %v1871_v25  ;;  %v113_v42 = vld [vmem:[%s3297_s1 + $0x1b8] sm:$0xff]  ;;  %v96_v44 = vld [vmem:[%s3297_s1 + $0x130] sm:$0xff]  ;;  %v83_v47 = vld [vmem:[%s3297_s1 + $0xc8] sm:$0xff]  ;;  %v1847_v48 = vpack.c.bf16 %v65_v40, %v64_v37 }
   0xc   :  { %1874 = vmatprep.subr.bf16.mxu1 %v1873_v34  ;;  %v1877_v43 = vpack.c.bf16 %v113_v42, %v112_v41  ;;  %v97_v45 = vld [vmem:[%s3297_s1 + $0x138] sm:$0xff]  ;;  %v114_v49 = vld [vmem:[%s3297_s1 + $0x1c0] sm:$0xff]  ;;  %v115_v50 = vld [vmem:[%s3297_s1 + $0x1c8] sm:$0xff]  ;;  %v1849_v52 = vpack.c.bf16 %v83_v47, %v82_v46 }
   0xd   :  { %1844 = vmatpush3.bf16.msra.mxu0 %v1843_v33  ;;  %v1879_v51 = vpack.c.bf16 %v97_v45, %v96_v44  ;;  %v66_v53 = vld [vmem:[%s3297_s1 + $0x40] sm:$0xff]  ;;  %v67_v54 = vld [vmem:[%s3297_s1 + $0x48] sm:$0xff]  ;;  %v1881_v56 = vpack.c.bf16 %v115_v50, %v114_v49  ;;  %v84_v58 = vld [vmem:[%s3297_s1 + $0xd0] sm:$0xff]  ;;  %v2214_v50 = vmov 0.0|0.0  }
   0xe   :  { %1846 = vmatprep.subr.bf16.mxu0 %v1845_v39  ;;  %v98_v55 = vld [vmem:[%s3297_s1 + $0x140] sm:$0xff]  ;;  %v99_v57 = vld [vmem:[%s3297_s1 + $0x148] sm:$0xff]  ;;  %v85_v59 = vld [vmem:[%s3297_s1 + $0xd8] sm:$0xff]  ;;  %v1851_v62 = vpack.c.bf16 %v67_v54, %v66_v53 }
   0xf   :  { %1876 = vmatpush3.bf16.msra.mxu1 %v1875_v38  ;;  %v116_v60 = vld [vmem:[%s3297_s1 + $0x1d0] sm:$0xff]  ;;  %v117_v61 = vld [vmem:[%s3297_s1 + $0x1d8] sm:$0xff]  ;;  %v1883_v63 = vpack.c.bf16 %v99_v57, %v98_v55  ;;  %v1853_v0 = vpack.c.bf16 %v85_v59, %v84_v58  ;;  %v86_v6 = vld [vmem:[%s3297_s1 + $0xe0] sm:$0xff] }
  0x10   :  { %1878 = vmatprep.subr.bf16.mxu1 %v1877_v43  ;;  %v68_v1 = vld [vmem:[%s3297_s1 + $0x50] sm:$0xff]  ;;  %v69_v2 = vld [vmem:[%s3297_s1 + $0x58] sm:$0xff]  ;;  %v1885_v4 = vpack.c.bf16 %v117_v61, %v116_v60  ;;  %v87_v7 = vld [vmem:[%s3297_s1 + $0xe8] sm:$0xff] }
  0x11   :  { %1848 = vmatpush3.bf16.msra.mxu0 %v1847_v48  ;;  %v100_v3 = vld [vmem:[%s3297_s1 + $0x150] sm:$0xff]  ;;  %v101_v5 = vld [vmem:[%s3297_s1 + $0x158] sm:$0xff]  ;;  %v118_v8 = vld [vmem:[%s3297_s1 + $0x1e0] sm:$0xff]  ;;  %v1855_v10 = vpack.c.bf16 %v69_v2, %v68_v1  ;;  %v1857_v14 = vpack.c.bf16 %v87_v7, %v86_v6 }
  0x12   :  { %1850 = vmatprep.subr.bf16.mxu0 %v1849_v52  ;;  %v119_v9 = vld [vmem:[%s3297_s1 + $0x1e8] sm:$0xff]  ;;  %v70_v11 = vld [vmem:[%s3297_s1 + $0x60] sm:$0xff]  ;;  %v1887_v13 = vpack.c.bf16 %v101_v5, %v100_v3  ;;  %v88_v19 = vld [vmem:[%s3297_s1 + $0xf0] sm:$0xff] }
  0x13   :  { %1880 = vmatpush3.bf16.msra.mxu1 %v1879_v51  ;;  %v52_v12 = vld [vmem:[%s3296_s0 + $0x8] sm:$0xff]  ;;  %v102_v16 = vld [vmem:[%s3297_s1 + $0x160] sm:$0xff]  ;;  %v1889_v18 = vpack.c.bf16 %v119_v9, %v118_v8  ;;  %v89_v20 = vld [vmem:[%s3297_s1 + $0xf8] sm:$0xff] }
  0x14   :  { %1882 = vmatprep.subr.bf16.mxu1 %v1881_v56  ;;  %v71_v15 = vld [vmem:[%s3297_s1 + $0x68] sm:$0xff]  ;;  %231 = vmatprep.mubr.f32.mxu0 %v52_v12  ;;  %v54_v21 = vld [vmem:[%s3296_s0 + $0x18] sm:$0xff]  ;;  %v120_v22 = vld [vmem:[%s3297_s1 + $0x1f0] sm:$0xff]  ;;  %v1861_v26 = vpack.c.bf16 %v89_v20, %v88_v19 }
  0x15   :  { %1852 = vmatpush3.bf16.msra.mxu0 %v1851_v62  ;;  %v103_v17 = vld [vmem:[%s3297_s1 + $0x168] sm:$0xff]  ;;  %v121_v23 = vld [vmem:[%s3297_s1 + $0x1f8] sm:$0xff]  ;;  %301 = vmatprep.mubr.f32.mxu1 %v54_v21  ;;  %v1859_v24 = vpack.c.bf16 %v71_v15, %v70_v11  ;;  %v72_v27 = vld [vmem:[%s3297_s1 + $0x70] sm:$0xff] }
  0x16   :  { %1854 = vmatprep.subr.bf16.mxu0 %v1853_v0  ;;  %v1891_v25 = vpack.c.bf16 %v103_v17, %v102_v16  ;;  %v73_v28 = vld [vmem:[%s3297_s1 + $0x78] sm:$0xff]  ;;  %v104_v29 = vld [vmem:[%s3297_s1 + $0x170] sm:$0xff]  ;;  %v1893_v30 = vpack.c.bf16 %v121_v23, %v120_v22  ;;  %v138_v32 = vld [vmem:[%s3297_s1 + $0x280] sm:$0xff] }
  0x17   :  { %1884 = vmatpush3.bf16.msra.mxu1 %v1883_v63  ;;  %v105_v31 = vld [vmem:[%s3297_s1 + $0x178] sm:$0xff]  ;;  %v139_v33 = vld [vmem:[%s3297_s1 + $0x288] sm:$0xff]  ;;  %v1863_v34 = vpack.c.bf16 %v73_v28, %v72_v27  ;;  %v122_v37 = vld [vmem:[%s3297_s1 + $0x200] sm:$0xff] }
  0x18   :  { %1886 = vmatprep.subr.bf16.mxu1 %v1885_v4  ;;  %v1895_v35 = vpack.c.bf16 %v105_v31, %v104_v29  ;;  %v1897_v36 = vpack.c.bf16 %v139_v33, %v138_v32  ;;  %v123_v38 = vld [vmem:[%s3297_s1 + $0x208] sm:$0xff]  ;;  %v140_v39 = vld [vmem:[%s3297_s1 + $0x290] sm:$0xff]  ;;  %v141_v40 = vld [vmem:[%s3297_s1 + $0x298] sm:$0xff] }
  0x19   :  { %1856 = vmatpush3.bf16.msra.mxu0 %v1855_v10  ;;  %v51_v41 = vld [vmem:[%s3296_s0] sm:$0xff]  ;;  %v1899_v42 = vpack.c.bf16 %v123_v38, %v122_v37  ;;  %v53_v43 = vld [vmem:[%s3296_s0 + $0x10] sm:$0xff]  ;;  %v1901_v45 = vpack.c.bf16 %v141_v40, %v140_v39  ;;  %v125_v46 = vld [vmem:[%s3297_s1 + $0x218] sm:$0xff] }
  0x1a   :  { %1858 = vmatprep.subr.bf16.mxu0 %v1857_v14  ;;  %v124_v44 = vld [vmem:[%s3297_s1 + $0x210] sm:$0xff]  ;;  %v142_v47 = vld [vmem:[%s3297_s1 + $0x2a0] sm:$0xff]  ;;  %v143_v48 = vld [vmem:[%s3297_s1 + $0x2a8] sm:$0xff] }
  0x1b   :  { %1888 = vmatpush3.bf16.msra.mxu1 %v1887_v13  ;;  %v56_v49 = vld [vmem:[%s3296_s0 + $0x28] sm:$0xff]  ;;  %v154_v51 = vld [vmem:[%s3297_s1 + $0x300] sm:$0xff] }
  0x1c   :  { %1890 = vmatprep.subr.bf16.mxu1 %v1889_v18  ;;  %v155_v52 = vld [vmem:[%s3297_s1 + $0x308] sm:$0xff] }
  0x1d   :  { %1860 = vmatpush3.bf16.msra.mxu0 %v1859_v24  ;;  %v1930_v53 = vpack.c.bf16 %v155_v52, %v154_v51 }
  0x1e   :  { %1862 = vmatprep.subr.bf16.mxu0 %v1861_v26 }
  0x1f   :  { %1892 = vmatpush3.bf16.msra.mxu1 %v1891_v25 }
  0x20   :  { %1894 = vmatprep.subr.bf16.mxu1 %v1893_v30 }
  0x21   :  { %1864 = vmatpush3.bf16.msra.mxu0 %v1863_v34 }
  0x22   :  { %1898 = vmatprep.subr.bf16.mxu0 %v1897_v36 }
  0x23   :  { %1896 = vmatpush3.bf16.msra.mxu1 %v1895_v35 }
  0x24   :  { %1929 = vmatprep.subr.bf16.mxu1 %v2214_v50  ;;  %232 = vmatmul.mubr.f32.vlgmr.msra.gmra.mrb[0].mxu0 %v51_v41 }
  0x25   :  { %20 = vsyncpa [#allocation3], 0  ;;  %1900 = vmatpush3.bf16.msra.mxu0 %v1899_v42  ;;  %v1903_v54 = vpack.c.bf16 %v125_v46, %v124_v44  ;;  %v1905_v55 = vpack.c.bf16 %v143_v48, %v142_v47  ;;  %v126_v56 = vld [vmem:[%s3297_s1 + $0x220] sm:$0xff]  ;;  %v127_v57 = vld [vmem:[%s3297_s1 + $0x228] sm:$0xff]  ;;  %371 = vmatprep.mubr.f32.mxu0 %v56_v49  ;;  %vm2215_vm0 = vmmov 0   ;;  %v2216_v60 = vmov 0.0  }
  0x26   :  { %302 = vmatmul.mubr.f32.vlgmr.msra.gmra.mrb[0].mxu1 %v53_v43  ;;  %1902 = vmatprep.subr.bf16.mxu0 %v1901_v45  ;;  %v144_v58 = vld [vmem:[%s3297_s1 + $0x2b0] sm:$0xff]  ;;  %v145_v59 = vld [vmem:[%s3297_s1 + $0x2b8] sm:$0xff]  ;;  %vm163_vm1 = vcmask 130048   ;;  %v1907_v62 = vpack.c.bf16 %v127_v57, %v126_v56  ;;  %v146_v2 = vld [vmem:[%s3297_s1 + $0x2c0] sm:$0xff] }
  0x27   :  { %1931 = vmatpush3.bf16.msra.mxu1 %v1930_v53  ;;  %1620 = vmatprep.mubr.msk.f32.mxu1 %vm2215_vm0, %v2216_v60  ;;  %v57_v61 = vld [vmem:[%s3296_s0 + $0x30] sm:$0xff]  ;;  %v1909_v63 = vpack.c.bf16 %v145_v59, %v144_v58  ;;  %v129_v1 = vld [vmem:[%s3297_s1 + $0x238] sm:$0xff]  ;;  %v147_v3 = vld [vmem:[%s3297_s1 + $0x2c8] sm:$0xff] }
  0x28   :  { %1932 = vmatprep.subr.bf16.mxu1 %v2214_v50  ;;  %v128_v0 = vld [vmem:[%s3297_s1 + $0x230] sm:$0xff]  ;;  %v1913_v5 = vpack.c.bf16 %v147_v3, %v146_v2  ;;  %v130_v6 = vld [vmem:[%s3297_s1 + $0x240] sm:$0xff]  ;;  %v131_v7 = vld [vmem:[%s3297_s1 + $0x248] sm:$0xff] }
  0x29   :  { %1904 = vmatpush3.bf16.msra.mxu0 %v1903_v54  ;;  %v1911_v4 = vpack.c.bf16 %v129_v1, %v128_v0  ;;  %v148_v8 = vld [vmem:[%s3297_s1 + $0x2d0] sm:$0xff]  ;;  %v149_v9 = vld [vmem:[%s3297_s1 + $0x2d8] sm:$0xff]  ;;  %v1915_v10 = vpack.c.bf16 %v131_v7, %v130_v6  ;;  %v150_v14 = vld [vmem:[%s3297_s1 + $0x2e0] sm:$0xff] }
  0x2a   :  { %1906 = vmatprep.subr.bf16.mxu0 %v1905_v55  ;;  %1621 = vmatmul.mubr.msk.f32.vlgmr.msra.gmra.mrb[2].mxu1 %vm163_vm1, %v57_v61  ;;  %v1917_v11 = vpack.c.bf16 %v149_v9, %v148_v8  ;;  %v132_v12 = vld [vmem:[%s3297_s1 + $0x250] sm:$0xff]  ;;  %v133_v13 = vld [vmem:[%s3297_s1 + $0x258] sm:$0xff]  ;;  %v151_v15 = vld [vmem:[%s3297_s1 + $0x2e8] sm:$0xff] }
  0x2b   :  { %1655 = vmatprep.mubr.msk.f32.mxu1 %vm2215_vm0, %v2216_v60  ;;  %v1919_v16 = vpack.c.bf16 %v133_v13, %v132_v12  ;;  %v1921_v17 = vpack.c.bf16 %v151_v15, %v150_v14  ;;  %v134_v18 = vld [vmem:[%s3297_s1 + $0x260] sm:$0xff]  ;;  %v135_v19 = vld [vmem:[%s3297_s1 + $0x268] sm:$0xff]  ;;  %v152_v20 = vld [vmem:[%s3297_s1 + $0x2f0] sm:$0xff] }
  0x2c   :  { %v153_v21 = vld [vmem:[%s3297_s1 + $0x2f8] sm:$0xff]  ;;  %v1923_v22 = vpack.c.bf16 %v135_v19, %v134_v18  ;;  %v136_v24 = vld [vmem:[%s3297_s1 + $0x270] sm:$0xff]  ;;  %v55_v27 = vld [vmem:[%s3296_s0 + $0x20] sm:$0xff] }
  0x2d   :  { %1908 = vmatpush3.bf16.msra.mxu0 %v1907_v62  ;;  %v1925_v23 = vpack.c.bf16 %v153_v21, %v152_v20  ;;  %v137_v25 = vld [vmem:[%s3297_s1 + $0x278] sm:$0xff]  ;;  %v448_v28 = vld [vmem:[%s3299_s3] sm:$0xff]  ;;  %v449_v29 = vld [vmem:[%s3299_s3 + $0x8] sm:$0xff] }
  0x2e   :  { %1910 = vmatprep.subr.bf16.mxu0 %v1909_v63  ;;  %v1927_v26 = vpack.c.bf16 %v137_v25, %v136_v24  ;;  %v450_v30 = vld [vmem:[%s3299_s3 + $0x10] sm:$0xff]  ;;  %v1933_v31 = vpack.c.bf16 %v449_v29, %v448_v28  ;;  %v451_v32 = vld [vmem:[%s3299_s3 + $0x18] sm:$0xff]  ;;  %v452_v34 = vld [vmem:[%s3299_s3 + $0x20] sm:$0xff] }
  0x2f   :  { %v1936_v33 = vpack.c.bf16 %v451_v32, %v450_v30  ;;  %v453_v35 = vld [vmem:[%s3299_s3 + $0x28] sm:$0xff]  ;;  %v454_v37 = vld [vmem:[%s3299_s3 + $0x30] sm:$0xff]  ;;  %v455_v38 = vld [vmem:[%s3299_s3 + $0x38] sm:$0xff] }
  0x30   :  { %1934 = vmatpush3.bf16.msra.mxu1 %v1933_v31  ;;  %v1939_v36 = vpack.c.bf16 %v453_v35, %v452_v34  ;;  %v1942_v39 = vpack.c.bf16 %v455_v38, %v454_v37  ;;  %v456_v40 = vld [vmem:[%s3299_s3 + $0x40] sm:$0xff]  ;;  %v457_v41 = vld [vmem:[%s3299_s3 + $0x48] sm:$0xff]  ;;  %v458_v43 = vld [vmem:[%s3299_s3 + $0x50] sm:$0xff] }
  0x31   :  { %1912 = vmatpush3.bf16.msra.mxu0 %v1911_v4  ;;  %1935 = vmatprep.subr.bf16.mxu1 %v2214_v50  ;;  %v1945_v42 = vpack.c.bf16 %v457_v41, %v456_v40  ;;  %v459_v44 = vld [vmem:[%s3299_s3 + $0x58] sm:$0xff]  ;;  %v460_v46 = vld [vmem:[%s3299_s3 + $0x60] sm:$0xff]  ;;  %v461_v47 = vld [vmem:[%s3299_s3 + $0x68] sm:$0xff] }
  0x32   :  { %1914 = vmatprep.subr.bf16.mxu0 %v1913_v5  ;;  %v1948_v45 = vpack.c.bf16 %v459_v44, %v458_v43  ;;  %v1951_v48 = vpack.c.bf16 %v461_v47, %v460_v46  ;;  %v462_v49 = vld [vmem:[%s3299_s3 + $0x70] sm:$0xff]  ;;  %v463_v51 = vld [vmem:[%s3299_s3 + $0x78] sm:$0xff]  ;;  %v542_v53 = vld [vmem:[%s3301_s5] sm:$0xff] }
  0x33   :  { %v1954_v52 = vpack.c.bf16 %v463_v51, %v462_v49  ;;  %v543_v54 = vld [vmem:[%s3301_s5 + $0x8] sm:$0xff]  ;;  %v544_v55 = vld [vmem:[%s3301_s5 + $0x10] sm:$0xff]  ;;  %v545_v57 = vld [vmem:[%s3301_s5 + $0x18] sm:$0xff] }
  0x34   :  { %1937 = vmatpush3.bf16.msra.mxu1 %v1936_v33  ;;  %v1957_v56 = vpack.c.bf16 %v543_v54, %v542_v53  ;;  %v1960_v58 = vpack.c.bf16 %v545_v57, %v544_v55  ;;  %v546_v59 = vld [vmem:[%s3301_s5 + $0x20] sm:$0xff]  ;;  %v547_v61 = vld [vmem:[%s3301_s5 + $0x28] sm:$0xff]  ;;  %v548_v63 = vld [vmem:[%s3301_s5 + $0x30] sm:$0xff] }
  0x35   :  { %1916 = vmatpush3.bf16.msra.mxu0 %v1915_v10  ;;  %1938 = vmatprep.subr.bf16.mxu1 %v2214_v50  ;;  %v1963_v62 = vpack.c.bf16 %v547_v61, %v546_v59  ;;  %v549_v0 = vld [vmem:[%s3301_s5 + $0x38] sm:$0xff]  ;;  %v550_v2 = vld [vmem:[%s3301_s5 + $0x40] sm:$0xff]  ;;  %v551_v3 = vld [vmem:[%s3301_s5 + $0x48] sm:$0xff] }
  0x36   :  { %1918 = vmatprep.subr.bf16.mxu0 %v1917_v11  ;;  %v1966_v1 = vpack.c.bf16 %v549_v0, %v548_v63  ;;  %v1969_v4 = vpack.c.bf16 %v551_v3, %v550_v2  ;;  %v552_v5 = vld [vmem:[%s3301_s5 + $0x50] sm:$0xff]  ;;  %v553_v6 = vld [vmem:[%s3301_s5 + $0x58] sm:$0xff]  ;;  %v554_v8 = vld [vmem:[%s3301_s5 + $0x60] sm:$0xff] }
  0x37   :  { %v1972_v7 = vpack.c.bf16 %v553_v6, %v552_v5  ;;  %v555_v9 = vld [vmem:[%s3301_s5 + $0x68] sm:$0xff]  ;;  %v1399_v12 = vld [vmem:[%s3298_s2] ss:$0 sm:$0xff]  ;;  %v556_v28 = vld [vmem:[%s3301_s5 + $0x70] sm:$0xff] }
  0x38   :  { %1940 = vmatpush3.bf16.msra.mxu1 %v1939_v36  ;;  %v1975_v10 = vpack.c.bf16 %v555_v9, %v554_v8  ;;  %v557_v29 = vld [vmem:[%s3301_s5 + $0x78] sm:$0xff]  ;;  %v636_v31 = vld [vmem:[%s3303_s7] sm:$0xff]  ;;  %v637_v32 = vld [vmem:[%s3303_s7 + $0x8] sm:$0xff] }
  0x39   :  { %1920 = vmatpush3.bf16.msra.mxu0 %v1919_v16  ;;  %1941 = vmatprep.subr.bf16.mxu1 %v2214_v50  ;;  %v1978_v30 = vpack.c.bf16 %v557_v29, %v556_v28  ;;  %v638_v33 = vld [vmem:[%s3303_s7 + $0x10] sm:$0xff]  ;;  %v1981_v34 = vpack.c.bf16 %v637_v32, %v636_v31  ;;  %v639_v35 = vld [vmem:[%s3303_s7 + $0x18] sm:$0xff]  ;;  %v640_v37 = vld [vmem:[%s3303_s7 + $0x20] sm:$0xff] }
  0x3a   :  { %1922 = vmatprep.subr.bf16.mxu0 %v1921_v17  ;;  %v1984_v36 = vpack.c.bf16 %v639_v35, %v638_v33  ;;  %v641_v38 = vld [vmem:[%s3303_s7 + $0x28] sm:$0xff]  ;;  %v642_v40 = vld [vmem:[%s3303_s7 + $0x30] sm:$0xff]  ;;  %v643_v41 = vld [vmem:[%s3303_s7 + $0x38] sm:$0xff] }
  0x3b   :  { %v644_v43 = vld [vmem:[%s3303_s7 + $0x40] sm:$0xff]  ;;  %v645_v44 = vld [vmem:[%s3303_s7 + $0x48] sm:$0xff]  ;;  %v646_v46 = vld [vmem:[%s3303_s7 + $0x50] sm:$0xff] }
  0x3c   :  { %1943 = vmatpush3.bf16.msra.mxu1 %v1942_v39  ;;  %v1987_v39 = vpack.c.bf16 %v641_v38, %v640_v37  ;;  %v647_v47 = vld [vmem:[%s3303_s7 + $0x58] sm:$0xff]  ;;  %v648_v49 = vld [vmem:[%s3303_s7 + $0x60] sm:$0xff]  ;;  %v649_v51 = vld [vmem:[%s3303_s7 + $0x68] sm:$0xff] }
  0x3d   :  { %1924 = vmatpush3.bf16.msra.mxu0 %v1923_v22  ;;  %1944 = vmatprep.subr.bf16.mxu1 %v2214_v50  ;;  %v1401_v53 = vld [vmem:[%s3300_s4] ss:$0 sm:$0xff]  ;;  %v651_v59 = vld [vmem:[%s3303_s7 + $0x78] sm:$0xff]  ;;  %v731_v63 = vld [vmem:[%s3305_s9 + $0x8] sm:$0xff] }
  0x3e   :  { %1926 = vmatprep.subr.bf16.mxu0 %v1925_v23  ;;  %v732_v0 = vld [vmem:[%s3305_s9 + $0x10] sm:$0xff]  ;;  %v733_v2 = vld [vmem:[%s3305_s9 + $0x18] sm:$0xff]  ;;  %v735_v5 = vld [vmem:[%s3305_s9 + $0x28] sm:$0xff] }
  0x3f   :  { %v2008_v3 = vpack.c.bf16 %v733_v2, %v732_v0  ;;  %v737_v8 = vld [vmem:[%s3305_s9 + $0x38] sm:$0xff]  ;;  %v825_v28 = vld [vmem:[%s3307_s11 + $0x8] sm:$0xff]  ;;  %v826_v29 = vld [vmem:[%s3307_s11 + $0x10] sm:$0xff] }
  0x40   :  { %1946 = vmatpush3.bf16.msra.mxu1 %v1945_v42  ;;  %v1990_v42 = vpack.c.bf16 %v643_v41, %v642_v40  ;;  %v827_v31 = vld [vmem:[%s3307_s11 + $0x18] sm:$0xff]  ;;  %v828_v33 = vld [vmem:[%s3307_s11 + $0x20] sm:$0xff]  ;;  %v833_v40 = vld [vmem:[%s3307_s11 + $0x48] sm:$0xff] }
  0x41   :  { %1928 = vmatpush3.bf16.msra.mxu0 %v1927_v26  ;;  %1947 = vmatprep.subr.bf16.mxu1 %v2214_v50  ;;  %v2032_v32 = vpack.c.bf16 %v827_v31, %v826_v29  ;;  %v831_v37 = vld [vmem:[%s3307_s11 + $0x38] sm:$0xff]  ;;  %v995_v31 = vld [vmem:[%s3309_s13 + $0x268] sm:$0xff] }
  0x42   :  { %1956 = vmatprep.subr.bf16.mxu0 %v2214_v50  ;;  %v925_v0 = vld [vmem:[%s3309_s13 + $0x38] sm:$0xff] }
  0x44   :  { %372 = vmatmul.mubr.f32.vlgmr.msra.gmra.mrb[2].mxu0 %v55_v27  ;;  %1949 = vmatpush3.bf16.msra.mxu1 %v1948_v45  ;;  %v1993_v45 = vpack.c.bf16 %v645_v44, %v644_v43  ;;  %v835_v43 = vld [vmem:[%s3307_s11 + $0x58] sm:$0xff] }
  0x45   :  { %1690 = vmatprep.mubr.msk.f32.mxu0 %vm2215_vm0, %v2216_v60  ;;  %1950 = vmatprep.subr.bf16.mxu1 %v2214_v50 }
  0x46   :  { %1958 = vmatpush3.bf16.msra.mxu0 %v1957_v56 }
  0x47   :  { %1959 = vmatprep.subr.bf16.mxu0 %v2214_v50 }
  0x48   :  { %1952 = vmatpush3.bf16.msra.mxu1 %v1951_v48  ;;  %v1996_v48 = vpack.c.bf16 %v647_v47, %v646_v46  ;;  %v837_v46 = vld [vmem:[%s3307_s11 + $0x68] sm:$0xff] }
  0x49   :  { %1953 = vmatprep.subr.bf16.mxu1 %v2214_v50 }
  0x4a   :  { %1961 = vmatpush3.bf16.msra.mxu0 %v1960_v58  ;;  %v650_v58 = vld [vmem:[%s3303_s7 + $0x70] sm:$0xff] }
  0x4b   :  { %1962 = vmatprep.subr.bf16.mxu0 %v2214_v50  ;;  %v2002_v61 = vpack.c.bf16 %v651_v59, %v650_v58  ;;  %v926_v58 = vld [vmem:[%s3309_s13 + $0x40] sm:$0xff]  ;;  %v921_v59 = vld [vmem:[%s3309_s13 + $0x18] sm:$0xff] }
  0x4c   :  { %1955 = vmatpush3.bf16.msra.mxu1 %v1954_v52  ;;  %v1999_v52 = vpack.c.bf16 %v649_v51, %v648_v49 }
  0x4d   :  { %1980 = vmatprep.subr.bf16.mxu1 %v2214_v50 }
  0x4e   :  { %1964 = vmatpush3.bf16.msra.mxu0 %v1963_v62  ;;  %v730_v62 = vld [vmem:[%s3305_s9] sm:$0xff] }
  0x4f   :  { %1965 = vmatprep.subr.bf16.mxu0 %v2214_v50 }
  0x52   :  { %1967 = vmatpush3.bf16.msra.mxu0 %v1966_v1  ;;  %v2005_v1 = vpack.c.bf16 %v731_v63, %v730_v62  ;;  %v928_v62 = vld [vmem:[%s3309_s13 + $0x50] sm:$0xff]  ;;  %v918_v63 = vld [vmem:[%s3309_s13] sm:$0xff] }
  0x53   :  { %1968 = vmatprep.subr.bf16.mxu0 %v2214_v50  ;;  %v2054_v2 = vpack.c.bf16 %v925_v0, %v918_v63  ;;  %v962_v0 = vld [vmem:[%s3309_s13 + $0x160] sm:$0xff] }
  0x56   :  { %1970 = vmatpush3.bf16.msra.mxu0 %v1969_v4  ;;  %v734_v4 = vld [vmem:[%s3305_s9 + $0x20] sm:$0xff] }
  0x57   :  { %1971 = vmatprep.subr.bf16.mxu0 %v2214_v50  ;;  %v2011_v6 = vpack.c.bf16 %v735_v5, %v734_v4  ;;  %v940_v4 = vld [vmem:[%s3309_s13 + $0xb0] sm:$0xff] }
  0x5a   :  { %1973 = vmatpush3.bf16.msra.mxu0 %v1972_v7  ;;  %v736_v7 = vld [vmem:[%s3305_s9 + $0x30] sm:$0xff] }
  0x5b   :  { %1974 = vmatprep.subr.bf16.mxu0 %v2214_v50  ;;  %v2014_v9 = vpack.c.bf16 %v737_v8, %v736_v7  ;;  %v939_v7 = vld [vmem:[%s3309_s13 + $0xa8] sm:$0xff] }
  0x5e   :  { %1976 = vmatpush3.bf16.msra.mxu0 %v1975_v10  ;;  %v738_v10 = vld [vmem:[%s3305_s9 + $0x40] sm:$0xff] }
  0x5f   :  { %1977 = vmatprep.subr.bf16.mxu0 %v2214_v50 }
  0x62   :  { %1979 = vmatpush3.bf16.msra.mxu0 %v1978_v30 }
  0x63   :  { %2004 = vmatprep.subr.bf16.mxu0 %v2214_v50 }
  0xf7   :  { %v1438_v11 = vpop.f32.mrb[0].mxu0 }
  0xf8   :  { %v1439_v13 = vpop.f32.mrb[1].mxu0 }
  0xf9   :  { %v1473_v14 = vpop.f32.mrb[0].mxu1  ;;  %v1440_v15 = vadd.f32 %v1439_v13, %v1438_v11  ;;  %v739_v11 = vld [vmem:[%s3305_s9 + $0x48] sm:$0xff]  ;;  %v740_v13 = vld [vmem:[%s3305_s9 + $0x50] sm:$0xff] }
  0xfa   :  { %v1474_v16 = vpop.f32.mrb[1].mxu1 }
  0xfb   :  { %v1475_v17 = vadd.f32 %v1474_v16, %v1473_v14  ;;  %v234_v18 = vadd.f32 %v1440_v15, %v1399_v12  ;;  %v2017_v12 = vpack.c.bf16 %v739_v11, %v738_v10  ;;  %v741_v14 = vld [vmem:[%s3305_s9 + $0x58] sm:$0xff]  ;;  %v742_v16 = vld [vmem:[%s3305_s9 + $0x60] sm:$0xff] }
  0xfc   :  { %v2020_v15 = vpack.c.bf16 %v741_v14, %v740_v13  ;;  %v954_v10 = vld [vmem:[%s3309_s13 + $0x120] sm:$0xff]  ;;  %v953_v13 = vld [vmem:[%s3309_s13 + $0x118] sm:$0xff] }
  0xfd   :  { %v304_v19 = vadd.f32 %v1475_v17, %v234_v18  ;;  %v443_v20 = vpop.f32.mrb[2].mxu1  ;;  %v743_v17 = vld [vmem:[%s3305_s9 + $0x68] sm:$0xff] }
  0xfe   :  { %v1622_v21 = vpop.f32.mrb[3].mxu1  ;;  %v2023_v18 = vpack.c.bf16 %v743_v17, %v742_v16  ;;  %v968_v16 = vld [vmem:[%s3309_s13 + $0x190] sm:$0xff] }
 0x117   :  { %v1508_v22 = vpop.f32.mrb[2].mxu0 }
 0x118   :  { %v1509_v23 = vpop.f32.mrb[3].mxu0 }
 0x119   :  { %v1510_v24 = vadd.f32 %v1509_v23, %v1508_v22 }
 0x11b   :  { %v374_v25 = vadd.f32 %v1510_v24, %v304_v19  ;;  %v1402_v19 = vld [vmem:[%s3302_s6] ss:$0 sm:$0xff]  ;;  %v744_v24 = vld [vmem:[%s3305_s9 + $0x70] sm:$0xff] }
 0x11d   :  { %v444_v26 = vadd.f32 %v443_v20, %v374_v25  ;;  %v745_v25 = vld [vmem:[%s3305_s9 + $0x78] sm:$0xff] }
 0x11f   :  { %v447_v27 = vmax.f32 %v444_v26, 0.0  ;;  %v2026_v26 = vpack.c.bf16 %v745_v25, %v744_v24  ;;  %v974_v24 = vld [vmem:[%s3309_s13 + $0x1c0] sm:$0xff]  ;;  %v981_v25 = vld [vmem:[%s3309_s13 + $0x1f8] sm:$0xff] }
 0x121   :  { %1656 = vmatmul.mubr.f32.vlgmr.msra.gmra.mrb[4].mxu1 %v447_v27  ;;  %v824_v27 = vld [vmem:[%s3307_s11] sm:$0xff] }
 0x122   :  { %1725 = vmatprep.mubr.msk.f32.mxu1 %vm2215_vm0, %v2216_v60  ;;  %1982 = vmatpush3.bf16.msra.mxu1 %v1981_v34  ;;  %v2029_v30 = vpack.c.bf16 %v825_v28, %v824_v27  ;;  %v829_v34 = vld [vmem:[%s3307_s11 + $0x28] sm:$0xff]  ;;  %v989_v27 = vld [vmem:[%s3309_s13 + $0x238] sm:$0xff]  ;;  %v996_v28 = vld [vmem:[%s3309_s13 + $0x270] sm:$0xff] }
 0x123   :  { %1983 = vmatprep.subr.bf16.mxu1 %v2214_v50  ;;  %v2035_v35 = vpack.c.bf16 %v829_v34, %v828_v33  ;;  %v2072_v29 = vpack.c.bf16 %v996_v28, %v989_v27  ;;  %v1003_v33 = vld [vmem:[%s3309_s13 + $0x2a8] sm:$0xff]  ;;  %v1010_v34 = vld [vmem:[%s3309_s13 + $0x2e0] sm:$0xff] }
 0x124   :  { %v1023_v27 = vld [vmem:[%s3309_s13 + $0x348] sm:$0xff] }
 0x126   :  { %1985 = vmatpush3.bf16.msra.mxu1 %v1984_v36  ;;  %v830_v36 = vld [vmem:[%s3307_s11 + $0x30] sm:$0xff] }
 0x127   :  { %1986 = vmatprep.subr.bf16.mxu1 %v2214_v50  ;;  %v2038_v38 = vpack.c.bf16 %v831_v37, %v830_v36  ;;  %v1002_v36 = vld [vmem:[%s3309_s13 + $0x2a0] sm:$0xff]  ;;  %v1009_v37 = vld [vmem:[%s3309_s13 + $0x2d8] sm:$0xff] }
 0x12a   :  { %1988 = vmatpush3.bf16.msra.mxu1 %v1987_v39  ;;  %v832_v39 = vld [vmem:[%s3307_s11 + $0x40] sm:$0xff] }
 0x12b   :  { %1989 = vmatprep.subr.bf16.mxu1 %v2214_v50  ;;  %v2041_v41 = vpack.c.bf16 %v833_v40, %v832_v39  ;;  %v1404_v39 = vld [vmem:[%s3306_s10] ss:$0 sm:$0xff]  ;;  %v920_v40 = vld [vmem:[%s3309_s13 + $0x10] sm:$0xff] }
 0x12e   :  { %1991 = vmatpush3.bf16.msra.mxu1 %v1990_v42  ;;  %v834_v42 = vld [vmem:[%s3307_s11 + $0x50] sm:$0xff] }
 0x12f   :  { %1992 = vmatprep.subr.bf16.mxu1 %v2214_v50  ;;  %v2044_v44 = vpack.c.bf16 %v835_v43, %v834_v42  ;;  %v935_v43 = vld [vmem:[%s3309_s13 + $0x88] sm:$0xff] }
 0x132   :  { %1994 = vmatpush3.bf16.msra.mxu1 %v1993_v45  ;;  %v836_v45 = vld [vmem:[%s3307_s11 + $0x60] sm:$0xff] }
 0x133   :  { %1995 = vmatprep.subr.bf16.mxu1 %v2214_v50  ;;  %v2047_v47 = vpack.c.bf16 %v837_v46, %v836_v45 }
 0x136   :  { %1997 = vmatpush3.bf16.msra.mxu1 %v1996_v48  ;;  %v1403_v48 = vld [vmem:[%s3304_s8] ss:$0 sm:$0xff] }
 0x137   :  { %1998 = vmatprep.subr.bf16.mxu1 %v2214_v50 }
 0x13a   :  { %2000 = vmatpush3.bf16.msra.mxu1 %v1999_v52 }
 0x13b   :  { %2001 = vmatprep.subr.bf16.mxu1 %v2214_v50 }
 0x13e   :  { %2003 = vmatpush3.bf16.msra.mxu1 %v2002_v61 }
 0x13f   :  { %2028 = vmatprep.subr.bf16.mxu1 %v2214_v50 }
 0x1f4   :  { %v537_v54 = vpop.f32.mrb[4].mxu1 }
 0x1f5   :  { %v538_v55 = vadd.f32 %v1401_v53, %v537_v54  ;;  %v1657_v56 = vpop.f32.mrb[5].mxu1  ;;  %v838_v54 = vld [vmem:[%s3307_s11 + $0x70] sm:$0xff] }
 0x1f7   :  { %v541_v57 = vmax.f32 %v538_v55, 0.0  ;;  %v839_v55 = vld [vmem:[%s3307_s11 + $0x78] sm:$0xff] }
 0x1f8   :  { %v2050_v56 = vpack.c.bf16 %v839_v55, %v838_v54  ;;  %v956_v54 = vld [vmem:[%s3309_s13 + $0x130] sm:$0xff] }
 0x1f9   :  { %1691 = vmatmul.mubr.f32.vlgmr.msra.gmra.mrb[4].mxu0 %v541_v57  ;;  %v919_v57 = vld [vmem:[%s3309_s13 + $0x8] sm:$0xff] }
 0x1fa   :  { %1760 = vmatprep.mubr.msk.f32.mxu0 %vm2215_vm0, %v2216_v60  ;;  %2006 = vmatpush3.bf16.msra.mxu0 %v2005_v1  ;;  %v2052_v61 = vpack.c.bf16 %v926_v58, %v919_v57  ;;  %v2084_v1 = vpack.c.bf16 %v928_v62, %v921_v59  ;;  %v948_v57 = vld [vmem:[%s3309_s13 + $0xf0] sm:$0xff]  ;;  %v955_v58 = vld [vmem:[%s3309_s13 + $0x128] sm:$0xff] }
 0x1fb   :  { %2007 = vmatprep.subr.bf16.mxu0 %v2214_v50  ;;  %v963_v59 = vld [vmem:[%s3309_s13 + $0x168] sm:$0xff]  ;;  %v2094_v62 = vpack.c.bf16 %v955_v58, %v948_v57 }
 0x1fe   :  { %2009 = vmatpush3.bf16.msra.mxu0 %v2008_v3  ;;  %v933_v3 = vld [vmem:[%s3309_s13 + $0x78] sm:$0xff] }
 0x1ff   :  { %2010 = vmatprep.subr.bf16.mxu0 %v2214_v50  ;;  %v2056_v5 = vpack.c.bf16 %v940_v4, %v933_v3  ;;  %v984_v3 = vld [vmem:[%s3309_s13 + $0x210] sm:$0xff] }
 0x202   :  { %2012 = vmatpush3.bf16.msra.mxu0 %v2011_v6  ;;  %v932_v6 = vld [vmem:[%s3309_s13 + $0x70] sm:$0xff] }
 0x203   :  { %2013 = vmatprep.subr.bf16.mxu0 %v2214_v50  ;;  %v2058_v8 = vpack.c.bf16 %v939_v7, %v932_v6  ;;  %v976_v6 = vld [vmem:[%s3309_s13 + $0x1d0] sm:$0xff]  ;;  %v983_v7 = vld [vmem:[%s3309_s13 + $0x208] sm:$0xff] }
 0x206   :  { %2015 = vmatpush3.bf16.msra.mxu0 %v2014_v9  ;;  %v947_v9 = vld [vmem:[%s3309_s13 + $0xe8] sm:$0xff] }
 0x207   :  { %2016 = vmatprep.subr.bf16.mxu0 %v2214_v50  ;;  %v2060_v11 = vpack.c.bf16 %v954_v10, %v947_v9  ;;  %v998_v9 = vld [vmem:[%s3309_s13 + $0x280] sm:$0xff]  ;;  %v2102_v10 = vpack.c.bf16 %v983_v7, %v976_v6  ;;  %v971_v7 = vld [vmem:[%s3309_s13 + $0x1a8] sm:$0xff] }
 0x20a   :  { %2018 = vmatpush3.bf16.msra.mxu0 %v2017_v12  ;;  %v946_v12 = vld [vmem:[%s3309_s13 + $0xe0] sm:$0xff] }
 0x20b   :  { %2019 = vmatprep.subr.bf16.mxu0 %v2214_v50  ;;  %v2062_v14 = vpack.c.bf16 %v953_v13, %v946_v12  ;;  %v990_v12 = vld [vmem:[%s3309_s13 + $0x240] sm:$0xff]  ;;  %v997_v13 = vld [vmem:[%s3309_s13 + $0x278] sm:$0xff] }
 0x20e   :  { %2021 = vmatpush3.bf16.msra.mxu0 %v2020_v15  ;;  %v961_v15 = vld [vmem:[%s3309_s13 + $0x158] sm:$0xff] }
 0x20f   :  { %2022 = vmatprep.subr.bf16.mxu0 %v2214_v50  ;;  %v2064_v17 = vpack.c.bf16 %v968_v16, %v961_v15  ;;  %v1012_v15 = vld [vmem:[%s3309_s13 + $0x2f0] sm:$0xff]  ;;  %v2106_v16 = vpack.c.bf16 %v997_v13, %v990_v12  ;;  %v978_v13 = vld [vmem:[%s3309_s13 + $0x1e0] sm:$0xff] }
 0x212   :  { %2024 = vmatpush3.bf16.msra.mxu0 %v2023_v18  ;;  %v960_v18 = vld [vmem:[%s3309_s13 + $0x150] sm:$0xff] }
 0x213   :  { %2025 = vmatprep.subr.bf16.mxu0 %v2214_v50 }
 0x216   :  { %2027 = vmatpush3.bf16.msra.mxu0 %v2026_v26  ;;  %v2070_v26 = vpack.c.bf16 %v981_v25, %v974_v24  ;;  %v1026_v25 = vld [vmem:[%s3309_s13 + $0x360] sm:$0xff] }
 0x217   :  { %2053 = vmatprep.subr.bf16.mxu0 %v2052_v61  ;;  %v970_v61 = vld [vmem:[%s3309_s13 + $0x1a0] sm:$0xff] }
 0x218   :  { %v2096_v63 = vpack.c.bf16 %v970_v61, %v963_v59  ;;  %v950_v59 = vld [vmem:[%s3309_s13 + $0x100] sm:$0xff] }
 0x2cc   :  { %v631_v20 = vpop.f32.mrb[4].mxu0 }
 0x2cd   :  { %v632_v21 = vadd.f32 %v1402_v19, %v631_v20  ;;  %v1692_v22 = vpop.f32.mrb[5].mxu0  ;;  %v967_v19 = vld [vmem:[%s3309_s13 + $0x188] sm:$0xff] }
 0x2ce   :  { %v2066_v20 = vpack.c.bf16 %v967_v19, %v960_v18  ;;  %v982_v22 = vld [vmem:[%s3309_s13 + $0x200] sm:$0xff]  ;;  %v1004_v18 = vld [vmem:[%s3309_s13 + $0x2b0] sm:$0xff]  ;;  %v1011_v19 = vld [vmem:[%s3309_s13 + $0x2e8] sm:$0xff] }
 0x2cf   :  { %v635_v23 = vmax.f32 %v632_v21, 0.0  ;;  %v975_v21 = vld [vmem:[%s3309_s13 + $0x1c8] sm:$0xff] }
 0x2d1   :  { %1726 = vmatmul.mubr.f32.vlgmr.msra.gmra.mrb[6].mxu1 %v635_v23  ;;  %v2068_v23 = vpack.c.bf16 %v982_v22, %v975_v21  ;;  %v1017_v21 = vld [vmem:[%s3309_s13 + $0x318] sm:$0xff]  ;;  %v1024_v22 = vld [vmem:[%s3309_s13 + $0x350] sm:$0xff] }
 0x2d2   :  { %1795 = vmatprep.mubr.msk.f32.mxu1 %vm2215_vm0, %v2216_v60  ;;  %2030 = vmatpush3.bf16.msra.mxu1 %v2029_v30  ;;  %v988_v30 = vld [vmem:[%s3309_s13 + $0x230] sm:$0xff]  ;;  %v2080_v24 = vpack.c.bf16 %v1024_v22, %v1017_v21 }
 0x2d3   :  { %2031 = vmatprep.subr.bf16.mxu1 %v2214_v50  ;;  %v992_v22 = vld [vmem:[%s3309_s13 + $0x250] sm:$0xff] }
 0x2d6   :  { %2033 = vmatpush3.bf16.msra.mxu1 %v2032_v32  ;;  %v2074_v32 = vpack.c.bf16 %v995_v31, %v988_v30  ;;  %v1018_v30 = vld [vmem:[%s3309_s13 + $0x320] sm:$0xff]  ;;  %v1025_v31 = vld [vmem:[%s3309_s13 + $0x358] sm:$0xff] }
 0x2d7   :  { %2034 = vmatprep.subr.bf16.mxu1 %v2214_v50 }
 0x2da   :  { %2036 = vmatpush3.bf16.msra.mxu1 %v2035_v35  ;;  %v2076_v35 = vpack.c.bf16 %v1010_v34, %v1003_v33  ;;  %v923_v33 = vld [vmem:[%s3309_s13 + $0x28] sm:$0xff]  ;;  %v930_v34 = vld [vmem:[%s3309_s13 + $0x60] sm:$0xff] }
 0x2db   :  { %2037 = vmatprep.subr.bf16.mxu1 %v2214_v50 }
 0x2de   :  { %2039 = vmatpush3.bf16.msra.mxu1 %v2038_v38  ;;  %v2078_v38 = vpack.c.bf16 %v1009_v37, %v1002_v36  ;;  %v1405_v36 = vld [vmem:[%s3308_s12] ss:$0 sm:$0xff] }
 0x2df   :  { %2040 = vmatprep.subr.bf16.mxu1 %v2214_v50  ;;  %v922_v37 = vld [vmem:[%s3309_s13 + $0x20] sm:$0xff] }
 0x2e2   :  { %2042 = vmatpush3.bf16.msra.mxu1 %v2041_v41  ;;  %v927_v41 = vld [vmem:[%s3309_s13 + $0x48] sm:$0xff] }
 0x2e3   :  { %2043 = vmatprep.subr.bf16.mxu1 %v2214_v50 }
 0x2e6   :  { %2045 = vmatpush3.bf16.msra.mxu1 %v2044_v44  ;;  %v942_v44 = vld [vmem:[%s3309_s13 + $0xc0] sm:$0xff] }
 0x2e7   :  { %2046 = vmatprep.subr.bf16.mxu1 %v2214_v50 }
 0x2ea   :  { %2048 = vmatpush3.bf16.msra.mxu1 %v2047_v47  ;;  %v2086_v47 = vpack.c.bf16 %v927_v41, %v920_v40  ;;  %v931_v40 = vld [vmem:[%s3309_s13 + $0x68] sm:$0xff] }
 0x2eb   :  { %2049 = vmatprep.subr.bf16.mxu1 %v2214_v50 }
 0x2ee   :  { %2051 = vmatpush3.bf16.msra.mxu1 %v2050_v56 }
 0x2ef   :  { %2085 = vmatprep.subr.bf16.mxu1 %v2084_v1  ;;  %v969_v1 = vld [vmem:[%s3309_s13 + $0x198] sm:$0xff] }
 0x2f0   :  { %v2098_v4 = vpack.c.bf16 %v969_v1, %v962_v0  ;;  %v959_v0 = vld [vmem:[%s3309_s13 + $0x148] sm:$0xff]  ;;  %v965_v1 = vld [vmem:[%s3309_s13 + $0x178] sm:$0xff] }
 0x3a4   :  { %v725_v49 = vpop.f32.mrb[6].mxu1 }
 0x3a5   :  { %v726_v51 = vadd.f32 %v1403_v48, %v725_v49  ;;  %v1727_v52 = vpop.f32.mrb[7].mxu1  ;;  %v2088_v49 = vpack.c.bf16 %v942_v44, %v935_v43  ;;  %v944_v43 = vld [vmem:[%s3309_s13 + $0xd0] sm:$0xff] }
 0x3a6   :  { %v941_v52 = vld [vmem:[%s3309_s13 + $0xb8] sm:$0xff] }
 0x3a7   :  { %v729_v53 = vmax.f32 %v726_v51, 0.0  ;;  %v934_v51 = vld [vmem:[%s3309_s13 + $0x80] sm:$0xff] }
 0x3a8   :  { %v2090_v55 = vpack.c.bf16 %v941_v52, %v934_v51  ;;  %v943_v52 = vld [vmem:[%s3309_s13 + $0xc8] sm:$0xff] }
 0x3a9   :  { %1761 = vmatmul.mubr.f32.vlgmr.msra.gmra.mrb[6].mxu0 %v729_v53  ;;  %v949_v53 = vld [vmem:[%s3309_s13 + $0xf8] sm:$0xff] }
 0x3aa   :  { %1131 = vmatprep.mubr.f32.mxu0 %v2216_v60  ;;  %2055 = vmatpush1.bf16.msra.mxu0 %v2054_v2  ;;  %v2092_v56 = vpack.c.bf16 %v956_v54, %v949_v53  ;;  %v977_v2 = vld [vmem:[%s3309_s13 + $0x1d8] sm:$0xff]  ;;  %v938_v53 = vld [vmem:[%s3309_s13 + $0xa0] sm:$0xff] }
 0x3ab   :  { %2057 = vmatprep.subr.bf16.mxu0 %v2056_v5  ;;  %v2100_v5 = vpack.c.bf16 %v984_v3, %v977_v2  ;;  %v945_v54 = vld [vmem:[%s3309_s13 + $0xd8] sm:$0xff]  ;;  %v972_v2 = vld [vmem:[%s3309_s13 + $0x1b0] sm:$0xff] }
 0x3ac   :  { %v2152_v58 = vpack.c.bf16 %v945_v54, %v938_v53  ;;  %v2128_v6 = vpack.c.bf16 %v972_v2, %v965_v1  ;;  %v1030_v53 = vld [vmem:[%s3310_s14] sm:$0x7f] }
 0x3ae   :  { %2059 = vmatpush1.bf16.msra.mxu0 %v2058_v8  ;;  %v991_v8 = vld [vmem:[%s3309_s13 + $0x248] sm:$0xff] }
 0x3af   :  { %2061 = vmatprep.subr.bf16.mxu0 %v2060_v11  ;;  %v2104_v11 = vpack.c.bf16 %v998_v9, %v991_v8  ;;  %v973_v8 = vld [vmem:[%s3309_s13 + $0x1b8] sm:$0xff]  ;;  %v979_v9 = vld [vmem:[%s3309_s13 + $0x1e8] sm:$0xff] }
 0x3b2   :  { %2063 = vmatpush1.bf16.msra.mxu0 %v2062_v14  ;;  %v1005_v14 = vld [vmem:[%s3309_s13 + $0x2b8] sm:$0xff] }
 0x3b3   :  { %2065 = vmatprep.subr.bf16.mxu0 %v2064_v17  ;;  %v2108_v17 = vpack.c.bf16 %v1012_v15, %v1005_v14  ;;  %v985_v15 = vld [vmem:[%s3309_s13 + $0x218] sm:$0xff] }
 0x3b6   :  { %2067 = vmatpush1.bf16.msra.mxu0 %v2066_v20  ;;  %v2110_v20 = vpack.c.bf16 %v1011_v19, %v1004_v18  ;;  %v993_v18 = vld [vmem:[%s3309_s13 + $0x258] sm:$0xff]  ;;  %v1000_v19 = vld [vmem:[%s3309_s13 + $0x290] sm:$0xff] }
 0x3b7   :  { %2069 = vmatprep.subr.bf16.mxu0 %v2068_v23  ;;  %v1019_v23 = vld [vmem:[%s3309_s13 + $0x328] sm:$0xff] }
 0x3b8   :  { %v2112_v28 = vpack.c.bf16 %v1026_v25, %v1019_v23  ;;  %v2136_v23 = vpack.c.bf16 %v1000_v19, %v993_v18  ;;  %v994_v25 = vld [vmem:[%s3309_s13 + $0x260] sm:$0xff] }
 0x3ba   :  { %2071 = vmatpush1.bf16.msra.mxu0 %v2070_v26  ;;  %v1016_v26 = vld [vmem:[%s3309_s13 + $0x310] sm:$0xff] }
 0x3bb   :  { %2073 = vmatprep.subr.bf16.mxu0 %v2072_v29  ;;  %v2082_v29 = vpack.c.bf16 %v1023_v27, %v1016_v26  ;;  %v1001_v26 = vld [vmem:[%s3309_s13 + $0x298] sm:$0xff]  ;;  %v1007_v27 = vld [vmem:[%s3309_s13 + $0x2c8] sm:$0xff] }
 0x3be   :  { %2075 = vmatpush1.bf16.msra.mxu0 %v2074_v32  ;;  %v2114_v32 = vpack.c.bf16 %v1025_v31, %v1018_v30  ;;  %v2164_v30 = vpack.c.bf16 %v1001_v26, %v994_v25  ;;  %v1006_v31 = vld [vmem:[%s3309_s13 + $0x2c0] sm:$0xff] }
 0x3bf   :  { %2077 = vmatprep.subr.bf16.mxu0 %v2076_v35  ;;  %v2116_v35 = vpack.c.bf16 %v930_v34, %v923_v33  ;;  %v1013_v33 = vld [vmem:[%s3309_s13 + $0x2f8] sm:$0xff]  ;;  %v1008_v34 = vld [vmem:[%s3309_s13 + $0x2d0] sm:$0xff] }
 0x3c2   :  { %2079 = vmatpush1.bf16.msra.mxu0 %v2078_v38  ;;  %v929_v38 = vld [vmem:[%s3309_s13 + $0x58] sm:$0xff] }
 0x3c3   :  { %2081 = vmatprep.subr.bf16.mxu0 %v2080_v24  ;;  %v999_v24 = vld [vmem:[%s3309_s13 + $0x288] sm:$0xff] }
 0x3c6   :  { %2083 = vmatpush1.bf16.msra.mxu0 %v2082_v29  ;;  %v2138_v29 = vpack.c.bf16 %v999_v24, %v992_v22 }
 0x3c7   :  { %2117 = vmatprep.subr.bf16.mxu0 %v2116_v35  ;;  %v1015_v35 = vld [vmem:[%s3309_s13 + $0x308] sm:$0xff] }
 0x47c   :  { %v819_v42 = vpop.f32.mrb[6].mxu0 }
 0x47d   :  { %v820_v45 = vadd.f32 %v1404_v39, %v819_v42  ;;  %v1762_v46 = vpop.f32.mrb[7].mxu0  ;;  %v924_v39 = vld [vmem:[%s3309_s13 + $0x30] sm:$0xff]  ;;  %v937_v42 = vld [vmem:[%s3309_s13 + $0x98] sm:$0xff] }
 0x47e   :  { %v2118_v46 = vpack.c.bf16 %v929_v38, %v922_v37  ;;  %v2120_v51 = vpack.c.bf16 %v944_v43, %v937_v42  ;;  %v1028_v37 = vld [vmem:[%s3309_s13 + $0x370] sm:$0xff]  ;;  %v2142_v38 = vpack.c.bf16 %v1013_v33, %v1006_v31  ;;  %v1027_v42 = vld [vmem:[%s3309_s13 + $0x368] sm:$0xff]  ;;  %v1022_v43 = vld [vmem:[%s3309_s13 + $0x340] sm:$0xff] }
 0x47f   :  { %v823_v48 = vmax.f32 %v820_v45, 0.0 }
 0x481   :  { %1796 = vmatmul.mubr.f32.vlgmr.msra.gmra.mrb[8].mxu1 %v823_v48  ;;  %v936_v48 = vld [vmem:[%s3309_s13 + $0x90] sm:$0xff] }
 0x482   :  { %2087 = vmatpush1.bf16.msra.mxu1 %v2086_v47  ;;  %1202 = vmatprep.mubr.f32.mxu1 %v2216_v60  ;;  %v2149_v47 = vpack.c.bf16 %v931_v40, %v924_v39  ;;  %v2122_v57 = vpack.c.bf16 %v943_v52, %v936_v48  ;;  %v2167_v39 = vpack.c.bf16 %v1015_v35, %v1008_v34  ;;  %v1020_v40 = vld [vmem:[%s3309_s13 + $0x330] sm:$0xff] }
 0x483   :  { %2089 = vmatprep.subr.bf16.mxu1 %v2088_v49 }
 0x486   :  { %2091 = vmatpush1.bf16.msra.mxu1 %v2090_v55  ;;  %v951_v55 = vld [vmem:[%s3309_s13 + $0x108] sm:$0xff] }
 0x487   :  { %2093 = vmatprep.subr.bf16.mxu1 %v2092_v56  ;;  %v958_v56 = vld [vmem:[%s3309_s13 + $0x140] sm:$0xff] }
 0x488   :  { %v2124_v61 = vpack.c.bf16 %v958_v56, %v951_v55 }
 0x48a   :  { %2095 = vmatpush1.bf16.msra.mxu1 %v2094_v62  ;;  %v957_v62 = vld [vmem:[%s3309_s13 + $0x138] sm:$0xff] }
 0x48b   :  { %2097 = vmatprep.subr.bf16.mxu1 %v2096_v63  ;;  %v952_v63 = vld [vmem:[%s3309_s13 + $0x110] sm:$0xff]  ;;  %v2126_v3 = vpack.c.bf16 %v957_v62, %v950_v59 }
 0x48e   :  { %2099 = vmatpush1.bf16.msra.mxu1 %v2098_v4  ;;  %v2155_v4 = vpack.c.bf16 %v959_v0, %v952_v63 }
 0x48f   :  { %2101 = vmatprep.subr.bf16.mxu1 %v2100_v5  ;;  %v964_v5 = vld [vmem:[%s3309_s13 + $0x170] sm:$0xff] }
 0x492   :  { %2103 = vmatpush1.bf16.msra.mxu1 %v2102_v10  ;;  %v986_v10 = vld [vmem:[%s3309_s13 + $0x220] sm:$0xff] }
 0x493   :  { %2105 = vmatprep.subr.bf16.mxu1 %v2104_v11  ;;  %v2130_v11 = vpack.c.bf16 %v971_v7, %v964_v5  ;;  %v2132_v14 = vpack.c.bf16 %v986_v10, %v979_v9 }
 0x496   :  { %2107 = vmatpush1.bf16.msra.mxu1 %v2106_v16  ;;  %v980_v16 = vld [vmem:[%s3309_s13 + $0x1f0] sm:$0xff] }
 0x497   :  { %2109 = vmatprep.subr.bf16.mxu1 %v2108_v17  ;;  %v987_v17 = vld [vmem:[%s3309_s13 + $0x228] sm:$0xff] }
 0x498   :  { %v2161_v21 = vpack.c.bf16 %v987_v17, %v980_v16 }
 0x49a   :  { %2111 = vmatpush1.bf16.msra.mxu1 %v2110_v20  ;;  %v2134_v20 = vpack.c.bf16 %v985_v15, %v978_v13 }
 0x49b   :  { %2113 = vmatprep.subr.bf16.mxu1 %v2112_v28  ;;  %v1014_v28 = vld [vmem:[%s3309_s13 + $0x300] sm:$0xff] }
 0x49e   :  { %2115 = vmatpush1.bf16.msra.mxu1 %v2114_v32  ;;  %v2140_v32 = vpack.c.bf16 %v1014_v28, %v1007_v27 }
 0x49f   :  { %2148 = vmatprep.subr.bf16.mxu1 %v2214_v50 }
 0x554   :  { %v913_v41 = vpop.f32.mrb[8].mxu1 }
 0x555   :  { %v914_v44 = vadd.f32 %v1405_v36, %v913_v41  ;;  %v1797_v45 = vpop.f32.mrb[9].mxu1  ;;  %v1021_v36 = vld [vmem:[%s3309_s13 + $0x338] sm:$0xff] }
 0x556   :  { %v2144_v41 = vpack.c.bf16 %v1028_v37, %v1021_v36  ;;  %v2146_v45 = vpack.c.bf16 %v1027_v42, %v1020_v40 }
 0x557   :  { %v3147_v49 = vmax.f32 %v914_v44, 0.0  ;;  %v1029_v44 = vld [vmem:[%s3309_s13 + $0x378] sm:$0xff] }
 0x559   :  { %1132 = vmatmul.mubr.f32.vlgmr.msra.gmra.mrb[8].mxu0 %v3147_v49  ;;  %1203 = vmatmul.mubr.f32.vlgmr.msra.gmra.mrb[10].mxu1 %v3147_v49 }
 0x55a   :  { %2119 = vmatpush1.bf16.msra.mxu0 %v2118_v46  ;;  %2150 = vmatpush3.bf16.msra.mxu1 %v2149_v47  ;;  %v2170_v46 = vpack.c.bf16 %v1029_v44, %v1022_v43  ;;  %v1032_v47 = vlaneseq }
 0x55b   :  { %2121 = vmatprep.subr.bf16.mxu0 %v2120_v51  ;;  %2151 = vmatprep.subr.bf16.mxu1 %v2214_v50 }
 0x55c   :  { %1273 = vmatprep.mubr.f32.mxu0 %v2216_v60  ;;  %1830 = vmatprep.mubr.msk.f32.mxu1 %vm2215_vm0, %v2216_v60  ;;  %v966_v60 = vld [vmem:[%s3309_s13 + $0x180] sm:$0xff]  ;;  %v1033_v48 = vshrl.u32 %v1032_v47, 7  ;;  %s2217_s13 = smov [#allocation2]  }
 0x55d   :  { %v2158_v12 = vpack.c.bf16 %v973_v8, %v966_v60  ;;  %s1391_s14 = sshll.u32 %s2217_s13, 4  ;;  %s1392_s14 = int_to_ptr.vmem [resolvable:$true] %s1391_s14 }
 0x55e   :  { %2123 = vmatpush1.bf16.msra.mxu0 %v2122_v57  ;;  %2153 = vmatpush3.bf16.msra.mxu1 %v2152_v58  ;;  %v1034_v51 = vsub.s32 0, %v1033_v48  ;;  %v1042_v52 = vsub.s32 2, %v1033_v48  ;;  %v1038_v54 = vsub.s32 1, %v1033_v48  ;;  %v1046_v55 = vsub.s32 3, %v1033_v48  ;;  %s2190_s12 = scalar_lea.vmem %s1392_s14, 896  ;;  %p2195_p1 = scmp.lt.s32.totalorder %s1392_s14, %s1392_s14 }
 0x55f   :  { %2125 = vmatprep.subr.bf16.mxu0 %v2124_v61  ;;  %2154 = vmatprep.subr.bf16.mxu1 %v2214_v50  ;;  %v1050_v18 = vsub.s32 4, %v1033_v48  ;;  %v1058_v19 = vsub.s32 6, %v1033_v48  ;;  %p2191_p0 = scmp.ne.s32.totalorder %s1392_s14, %s2190_s12  ;;  %p2196_p2 = scmp.lt.s32.totalorder %s2190_s12, %s2190_s12 }
 0x560   :  { %v1035_v56 = vrot.slane %v1030_v53, %v1034_v51  ;;  %v1043_v57 = vrot.slane %v1030_v53, %v1042_v52  ;;  %v1039_v58 = vrot.slane %v1030_v53, %v1038_v54 }
 0x561   :  { %v1059_v22 = vrot.slane %v1030_v53, %v1058_v19  ;;  %p2197_p3 = por %p2196_p2, %p2195_p1 }
 0x562   :  { %2127 = vmatpush1.bf16.msra.mxu0 %v2126_v3  ;;  %2156 = vmatpush3.bf16.msra.mxu1 %v2155_v4 }
 0x563   :  { %2129 = vmatprep.subr.bf16.mxu0 %v2128_v6  ;;  %2157 = vmatprep.subr.bf16.mxu1 %v2214_v50  ;;  %p2198_p4 = pnand %p2197_p3, %p2191_p0 }
 0x566   :  { %2131 = vmatpush1.bf16.msra.mxu0 %v2130_v11  ;;  %2159 = vmatpush3.bf16.msra.mxu1 %v2158_v12 }
 0x567   :  { %2133 = vmatprep.subr.bf16.mxu0 %v2132_v14  ;;  %2160 = vmatprep.subr.bf16.mxu1 %v2214_v50 }
 0x56a   :  { %2135 = vmatpush1.bf16.msra.mxu0 %v2134_v20  ;;  %2162 = vmatpush3.bf16.msra.mxu1 %v2161_v21  ;;  %v1054_v20 = vsub.s32 5, %v1033_v48  ;;  %v1051_v21 = vrot.slane %v1030_v53, %v1050_v18 }
 0x56b   :  { %2137 = vmatprep.subr.bf16.mxu0 %v2136_v23  ;;  %2163 = vmatprep.subr.bf16.mxu1 %v2214_v50 }
 0x56c   :  { %v1055_v23 = vrot.slane %v1030_v53, %v1054_v20 }
 0x56e   :  { %2139 = vmatpush1.bf16.msra.mxu0 %v2138_v29  ;;  %2165 = vmatpush3.bf16.msra.mxu1 %v2164_v30 }
 0x56f   :  { %2141 = vmatprep.subr.bf16.mxu0 %v2140_v32  ;;  %2166 = vmatprep.subr.bf16.mxu1 %v2214_v50 }
 0x572   :  { %2143 = vmatpush1.bf16.msra.mxu0 %v2142_v38  ;;  %2168 = vmatpush3.bf16.msra.mxu1 %v2167_v39 }
 0x573   :  { %2145 = vmatprep.subr.bf16.mxu0 %v2144_v41  ;;  %2169 = vmatprep.subr.bf16.mxu1 %v2214_v50  ;;  %v1047_v50 = vrot.slane %v1030_v53, %v1046_v55 }
 0x576   :  { %2147 = vmatpush1.bf16.msra.mxu0 %v2146_v45  ;;  %2171 = vmatpush3.bf16.msra.mxu1 %v2170_v46 }
 0x579   :  { %1274 = vmatmul.mubr.f32.vlgmr.msra.gmra.mrb[10].mxu0 %v3147_v49  ;;  %1831 = vmatmul.mubr.f32.vlgmr.msra.gmra.mrb[12].mxu1 %v3147_v49 }
 0x62c   :  { %v1133_v59 = vpop.f32.mrb[8].mxu0  ;;  %v1204_v61 = vpop.f32.mrb[10].mxu1 }
 0x62d   :  { %v1134_v62 = vadd.f32 %v1133_v59, %v1035_v56  ;;  %v1205_v63 = vadd.f32 %v1204_v61, %v1043_v57  ;;  %v1135_v0 = vpop.f32.mrb[9].mxu0  ;;  %v1206_v49 = vpop.f32.mrb[11].mxu1 }
 0x62e   :  { %v1136_v1 = vadd.f32 %v1135_v0, %v1039_v58  ;;  %v1207_v2 = vadd.f32 %v1206_v49, %v1047_v50 }
 0x62f   :  { %v1350_v3 = vmul.f32 0.5, %v1134_v62  ;;  %v1352_v4 = vmul.f32 0.5, %v1205_v63 }
 0x630   :  { %v1351_v5 = vmul.f32 0.5, %v1136_v1  ;;  %v1353_v6 = vmul.f32 0.5, %v1207_v2 }
 0x631   :  { %2176 = vtanh.f32 %v1350_v3 }
 0x632   :  { %2178 = vtanh.f32 %v1352_v4 }
 0x633   :  { %2180 = vtanh.f32 %v1351_v5 }
 0x634   :  { %2182 = vtanh.f32 %v1353_v6 }
 0x63b   :  { %v2177_v7 = vpop.eup %2176 }
 0x63c   :  { %v2179_v60 = vpop.eup %2178  ;;  %v1364_v8 = vmul.f32 0.5, %v2177_v7 }
 0x63d   :  { %v2181_v9 = vpop.eup %2180  ;;  %v1366_v10 = vmul.f32 0.5, %v2179_v60 }
 0x63e   :  { %v2183_v11 = vpop.eup %2182  ;;  %v1371_v12 = vadd.f32 0.5, %v1364_v8  ;;  %v1365_v13 = vmul.f32 0.5, %v2181_v9 }
 0x63f   :  { %v1373_v14 = vadd.f32 0.5, %v1366_v10  ;;  %v1367_v15 = vmul.f32 0.5, %v2183_v11 }
 0x640   :  { %1378 = vst [vmem:[#allocation2] sm:$0xff] %v1371_v12  ;;  %v1372_v16 = vadd.f32 0.5, %v1365_v13 }
 0x641   :  { %1380 = vst [vmem:[#allocation2 + $0x10] sm:$0xff] %v1373_v14  ;;  %v1374_v17 = vadd.f32 0.5, %v1367_v15 }
 0x642   :  { %1379 = vst [vmem:[#allocation2 + $0x8] sm:$0xff] %v1372_v16 }
 0x643   :  { %1381 = vst [vmem:[#allocation2 + $0x18] sm:$0xff] %v1374_v17 }
 0x64c   :  { %v1275_v24 = vpop.f32.mrb[10].mxu0  ;;  %v1346_v25 = vpop.f32.mrb[12].mxu1 }
 0x64d   :  { %v1276_v26 = vadd.f32 %v1275_v24, %v1051_v21  ;;  %v1347_v27 = vadd.f32 %v1346_v25, %v1059_v22  ;;  %v1277_v28 = vpop.f32.mrb[11].mxu0  ;;  %v1832_v29 = vpop.f32.mrb[13].mxu1 }
 0x64e   :  { %v1278_v30 = vadd.f32 %v1277_v28, %v1055_v23 }
 0x64f   :  { %v1354_v31 = vmul.f32 0.5, %v1276_v26  ;;  %v1356_v32 = vmul.f32 0.5, %v1347_v27 }
 0x650   :  { %v1355_v33 = vmul.f32 0.5, %v1278_v30 }
 0x651   :  { %2184 = vtanh.f32 %v1354_v31 }
 0x652   :  { %2186 = vtanh.f32 %v1356_v32 }
 0x653   :  { %2188 = vtanh.f32 %v1355_v33 }
 0x65b   :  { %v2185_v34 = vpop.eup %2184 }
 0x65c   :  { %v2187_v35 = vpop.eup %2186  ;;  %v1368_v36 = vmul.f32 0.5, %v2185_v34 }
 0x65d   :  { %v2189_v37 = vpop.eup %2188  ;;  %v1370_v38 = vmul.f32 0.5, %v2187_v35 }
 0x65e   :  { %v1375_v39 = vadd.f32 0.5, %v1368_v36  ;;  %v1369_v40 = vmul.f32 0.5, %v2189_v37 }
 0x65f   :  { %v1377_v41 = vadd.f32 0.5, %v1370_v38 }
 0x660   :  { %1382 = vst [vmem:[#allocation2 + $0x20] sm:$0xff] %v1375_v39  ;;  %v1376_v42 = vadd.f32 0.5, %v1369_v40 }
 0x661   :  { %1384 = vst.msk [vmem:[#allocation2 + $0x30] sm:$0xff] %vm163_vm1, %v1377_v41 }
 0x662   :  { %1383 = vst [vmem:[#allocation2 + $0x28] sm:$0xff] %v1376_v42 }
 0x663   :  { %2201 = shalt.err (!%p2198_p4)
}
 0x664   :  { %s2202_s16 = scalar_lea.hbm %s3311_s15, 896 }
 0x665   :  { %p2203_p5 = scmp.ne.s32.totalorder %s3311_s15, %s2202_s16  ;;  %p2206_p6 = scmp.lt.u32.totalorder %s2202_s16, %s3311_s15 }
 0x667   :  { %p2208_p7 = pnand %p2206_p6, %p2203_p5 }
 0x669   :  { %2211 = shalt.err (!%p2208_p7)
}
 0x66a   :  { %1394 = dma.vmem_to_hbm [thread:$0]  %s1392_s14, 896, %s3311_s15, [#allocation3]  }
 0x66b   :  { %2212 = dma.done.wait [#allocation3], 896  }
 0x66c   :  { %2213 = vsyncadd [#allocation3], 4294966400 }
 0x66d   :  { %1398 = vsyncpa [#allocation3], 1 }

// kernel: tpu_custom_call.1
= control target key start
LH: loop header
LB: loop body
LE: loop exit
PB: predicated region body
PF: predicated region fallthrough
CT: control target
= control target key end

     0   :  { %s3296_s0 = inlined_call_operand.vmem [shape: f32[8,784], index: 0, kind: input, shape index: {}]   ;;  %s3297_s1 = inlined_call_operand.vmem [shape: f32[784,128], index: 1, kind: input, shape index: {}]   ;;  %s3298_s2 = inlined_call_operand.vmem [shape: f32[1,128], index: 2, kind: input, shape index: {}]   ;;  %s3299_s3 = inlined_call_operand.vmem [shape: f32[128,128], index: 3, kind: input, shape index: {}]   ;;  %s3300_s4 = inlined_call_operand.vmem [shape: f32[1,128], index: 4, kind: input, shape index: {}]   ;;  %s3301_s5 = inlined_call_operand.vmem [shape: f32[128,128], index: 5, kind: input, shape index: {}]   ;;  %s3302_s6 = inlined_call_operand.vmem [shape: f32[1,128], index: 6, kind: input, shape index: {}]   ;;  %s3303_s7 = inlined_call_operand.vmem [shape: f32[128,128], index: 7, kind: input, shape index: {}]   ;;  %s3304_s8 = inlined_call_operand.vmem [shape: f32[1,128], index: 8, kind: input, shape index: {}]   ;;  %s3305_s9 = inlined_call_operand.vmem [shape: f32[128,128], index: 9, kind: input, shape index: {}]   ;;  %s3306_s10 = inlined_call_operand.vmem [shape: f32[1,128], index: 10, kind: input, shape index: {}]   ;;  %s3307_s11 = inlined_call_operand.vmem [shape: f32[128,128], index: 11, kind: input, shape index: {}]   ;;  %s3308_s12 = inlined_call_operand.vmem [shape: f32[1,128], index: 12, kind: input, shape index: {}]   ;;  %s3309_s13 = inlined_call_operand.vmem [shape: f32[128,784], index: 13, kind: input, shape index: {}]   ;;  %s3310_s14 = inlined_call_operand.vmem [shape: f32[1,784], index: 14, kind: input, shape index: {}]   ;;  %s3311_s15 = inlined_call_operand.hbm [shape: f32[8,784], index: 15, kind: output, shape index: {}]  }
   0x1   :  { %v74_v0 = vld [vmem:[%s3297_s1 + $0x80] sm:$0xff]  ;;  %v75_v1 = vld [vmem:[%s3297_s1 + $0x88] sm:$0xff]  ;;  %v76_v11 = vld [vmem:[%s3297_s1 + $0x90] sm:$0xff] }
   0x2   :  { %v58_v2 = vld [vmem:[%s3297_s1] sm:$0xff]  ;;  %v1833_v3 = vpack.c.bf16 %v75_v1, %v74_v0  ;;  %v59_v4 = vld [vmem:[%s3297_s1 + $0x8] sm:$0xff]  ;;  %v77_v13 = vld [vmem:[%s3297_s1 + $0x98] sm:$0xff] }
   0x3   :  { %v106_v5 = vld [vmem:[%s3297_s1 + $0x180] sm:$0xff]  ;;  %v107_v6 = vld [vmem:[%s3297_s1 + $0x188] sm:$0xff]  ;;  %v1835_v7 = vpack.c.bf16 %v59_v4, %v58_v2  ;;  %v60_v14 = vld [vmem:[%s3297_s1 + $0x10] sm:$0xff]  ;;  %v1837_v16 = vpack.c.bf16 %v77_v13, %v76_v11 }
   0x4   :  { %v1865_v8 = vpack.c.bf16 %v107_v6, %v106_v5  ;;  %v90_v9 = vld [vmem:[%s3297_s1 + $0x100] sm:$0xff]  ;;  %v91_v10 = vld [vmem:[%s3297_s1 + $0x108] sm:$0xff]  ;;  %1834 = vmatprep.subr.bf16.mxu0 %v1833_v3  ;;  %v61_v15 = vld [vmem:[%s3297_s1 + $0x18] sm:$0xff] }
   0x5   :  { %v1867_v12 = vpack.c.bf16 %v91_v10, %v90_v9  ;;  %1836 = vmatpush3.bf16.msra.mxu0 %v1835_v7  ;;  %v1839_v17 = vpack.c.bf16 %v61_v15, %v60_v14  ;;  %v108_v18 = vld [vmem:[%s3297_s1 + $0x190] sm:$0xff]  ;;  %v109_v19 = vld [vmem:[%s3297_s1 + $0x198] sm:$0xff]  ;;  %v78_v23 = vld [vmem:[%s3297_s1 + $0xa0] sm:$0xff] }
   0x6   :  { %1866 = vmatprep.subr.bf16.mxu1 %v1865_v8  ;;  %v92_v20 = vld [vmem:[%s3297_s1 + $0x110] sm:$0xff]  ;;  %v1869_v21 = vpack.c.bf16 %v109_v19, %v108_v18  ;;  %v93_v22 = vld [vmem:[%s3297_s1 + $0x118] sm:$0xff]  ;;  %v79_v24 = vld [vmem:[%s3297_s1 + $0xa8] sm:$0xff]  ;;  %1838 = vmatprep.subr.bf16.mxu0 %v1837_v16 }
   0x7   :  { %1868 = vmatpush3.bf16.msra.mxu1 %v1867_v12  ;;  %v1871_v25 = vpack.c.bf16 %v93_v22, %v92_v20  ;;  %v1841_v26 = vpack.c.bf16 %v79_v24, %v78_v23  ;;  %v62_v27 = vld [vmem:[%s3297_s1 + $0x20] sm:$0xff]  ;;  %v63_v28 = vld [vmem:[%s3297_s1 + $0x28] sm:$0xff]  ;;  %v80_v35 = vld [vmem:[%s3297_s1 + $0xb0] sm:$0xff] }
   0x8   :  { %v110_v29 = vld [vmem:[%s3297_s1 + $0x1a0] sm:$0xff]  ;;  %1870 = vmatprep.subr.bf16.mxu1 %v1869_v21  ;;  %v111_v30 = vld [vmem:[%s3297_s1 + $0x1a8] sm:$0xff]  ;;  %v1843_v33 = vpack.c.bf16 %v63_v28, %v62_v27  ;;  %v81_v36 = vld [vmem:[%s3297_s1 + $0xb8] sm:$0xff] }
   0x9   :  { %v94_v31 = vld [vmem:[%s3297_s1 + $0x120] sm:$0xff]  ;;  %v95_v32 = vld [vmem:[%s3297_s1 + $0x128] sm:$0xff]  ;;  %1840 = vmatpush3.bf16.msra.mxu0 %v1839_v17  ;;  %v1873_v34 = vpack.c.bf16 %v111_v30, %v110_v29  ;;  %v64_v37 = vld [vmem:[%s3297_s1 + $0x30] sm:$0xff]  ;;  %v1845_v39 = vpack.c.bf16 %v81_v36, %v80_v35 }
   0xa   :  { %1842 = vmatprep.subr.bf16.mxu0 %v1841_v26  ;;  %v1875_v38 = vpack.c.bf16 %v95_v32, %v94_v31  ;;  %v65_v40 = vld [vmem:[%s3297_s1 + $0x38] sm:$0xff]  ;;  %v112_v41 = vld [vmem:[%s3297_s1 + $0x1b0] sm:$0xff]  ;;  %v82_v46 = vld [vmem:[%s3297_s1 + $0xc0] sm:$0xff] }
   0xb   :  { %1872 = vmatpush3.bf16.msra.mxu1 %v1871_v25  ;;  %v113_v42 = vld [vmem:[%s3297_s1 + $0x1b8] sm:$0xff]  ;;  %v96_v44 = vld [vmem:[%s3297_s1 + $0x130] sm:$0xff]  ;;  %v83_v47 = vld [vmem:[%s3297_s1 + $0xc8] sm:$0xff]  ;;  %v1847_v48 = vpack.c.bf16 %v65_v40, %v64_v37 }
   0xc   :  { %1874 = vmatprep.subr.bf16.mxu1 %v1873_v34  ;;  %v1877_v43 = vpack.c.bf16 %v113_v42, %v112_v41  ;;  %v97_v45 = vld [vmem:[%s3297_s1 + $0x138] sm:$0xff]  ;;  %v114_v49 = vld [vmem:[%s3297_s1 + $0x1c0] sm:$0xff]  ;;  %v115_v50 = vld [vmem:[%s3297_s1 + $0x1c8] sm:$0xff]  ;;  %v1849_v52 = vpack.c.bf16 %v83_v47, %v82_v46 }
   0xd   :  { %1844 = vmatpush3.bf16.msra.mxu0 %v1843_v33  ;;  %v1879_v51 = vpack.c.bf16 %v97_v45, %v96_v44  ;;  %v66_v53 = vld [vmem:[%s3297_s1 + $0x40] sm:$0xff]  ;;  %v67_v54 = vld [vmem:[%s3297_s1 + $0x48] sm:$0xff]  ;;  %v1881_v56 = vpack.c.bf16 %v115_v50, %v114_v49  ;;  %v84_v58 = vld [vmem:[%s3297_s1 + $0xd0] sm:$0xff]  ;;  %v2214_v50 = vmov 0.0|0.0  }
   0xe   :  { %1846 = vmatprep.subr.bf16.mxu0 %v1845_v39  ;;  %v98_v55 = vld [vmem:[%s3297_s1 + $0x140] sm:$0xff]  ;;  %v99_v57 = vld [vmem:[%s3297_s1 + $0x148] sm:$0xff]  ;;  %v85_v59 = vld [vmem:[%s3297_s1 + $0xd8] sm:$0xff]  ;;  %v1851_v62 = vpack.c.bf16 %v67_v54, %v66_v53 }
   0xf   :  { %1876 = vmatpush3.bf16.msra.mxu1 %v1875_v38  ;;  %v116_v60 = vld [vmem:[%s3297_s1 + $0x1d0] sm:$0xff]  ;;  %v117_v61 = vld [vmem:[%s3297_s1 + $0x1d8] sm:$0xff]  ;;  %v1883_v63 = vpack.c.bf16 %v99_v57, %v98_v55  ;;  %v1853_v0 = vpack.c.bf16 %v85_v59, %v84_v58  ;;  %v86_v6 = vld [vmem:[%s3297_s1 + $0xe0] sm:$0xff] }
  0x10   :  { %1878 = vmatprep.subr.bf16.mxu1 %v1877_v43  ;;  %v68_v1 = vld [vmem:[%s3297_s1 + $0x50] sm:$0xff]  ;;  %v69_v2 = vld [vmem:[%s3297_s1 + $0x58] sm:$0xff]  ;;  %v1885_v4 = vpack.c.bf16 %v117_v61, %v116_v60  ;;  %v87_v7 = vld [vmem:[%s3297_s1 + $0xe8] sm:$0xff] }
  0x11   :  { %1848 = vmatpush3.bf16.msra.mxu0 %v1847_v48  ;;  %v100_v3 = vld [vmem:[%s3297_s1 + $0x150] sm:$0xff]  ;;  %v101_v5 = vld [vmem:[%s3297_s1 + $0x158] sm:$0xff]  ;;  %v118_v8 = vld [vmem:[%s3297_s1 + $0x1e0] sm:$0xff]  ;;  %v1855_v10 = vpack.c.bf16 %v69_v2, %v68_v1  ;;  %v1857_v14 = vpack.c.bf16 %v87_v7, %v86_v6 }
  0x12   :  { %1850 = vmatprep.subr.bf16.mxu0 %v1849_v52  ;;  %v119_v9 = vld [vmem:[%s3297_s1 + $0x1e8] sm:$0xff]  ;;  %v70_v11 = vld [vmem:[%s3297_s1 + $0x60] sm:$0xff]  ;;  %v1887_v13 = vpack.c.bf16 %v101_v5, %v100_v3  ;;  %v88_v19 = vld [vmem:[%s3297_s1 + $0xf0] sm:$0xff] }
  0x13   :  { %1880 = vmatpush3.bf16.msra.mxu1 %v1879_v51  ;;  %v52_v12 = vld [vmem:[%s3296_s0 + $0x8] sm:$0xff]  ;;  %v102_v16 = vld [vmem:[%s3297_s1 + $0x160] sm:$0xff]  ;;  %v1889_v18 = vpack.c.bf16 %v119_v9, %v118_v8  ;;  %v89_v20 = vld [vmem:[%s3297_s1 + $0xf8] sm:$0xff] }
  0x14   :  { %1882 = vmatprep.subr.bf16.mxu1 %v1881_v56  ;;  %v71_v15 = vld [vmem:[%s3297_s1 + $0x68] sm:$0xff]  ;;  %231 = vmatprep.mubr.f32.mxu0 %v52_v12  ;;  %v54_v21 = vld [vmem:[%s3296_s0 + $0x18] sm:$0xff]  ;;  %v120_v22 = vld [vmem:[%s3297_s1 + $0x1f0] sm:$0xff]  ;;  %v1861_v26 = vpack.c.bf16 %v89_v20, %v88_v19 }
  0x15   :  { %1852 = vmatpush3.bf16.msra.mxu0 %v1851_v62  ;;  %v103_v17 = vld [vmem:[%s3297_s1 + $0x168] sm:$0xff]  ;;  %v121_v23 = vld [vmem:[%s3297_s1 + $0x1f8] sm:$0xff]  ;;  %301 = vmatprep.mubr.f32.mxu1 %v54_v21  ;;  %v1859_v24 = vpack.c.bf16 %v71_v15, %v70_v11  ;;  %v72_v27 = vld [vmem:[%s3297_s1 + $0x70] sm:$0xff] }
  0x16   :  { %1854 = vmatprep.subr.bf16.mxu0 %v1853_v0  ;;  %v1891_v25 = vpack.c.bf16 %v103_v17, %v102_v16  ;;  %v73_v28 = vld [vmem:[%s3297_s1 + $0x78] sm:$0xff]  ;;  %v104_v29 = vld [vmem:[%s3297_s1 + $0x170] sm:$0xff]  ;;  %v1893_v30 = vpack.c.bf16 %v121_v23, %v120_v22  ;;  %v138_v32 = vld [vmem:[%s3297_s1 + $0x280] sm:$0xff] }
  0x17   :  { %1884 = vmatpush3.bf16.msra.mxu1 %v1883_v63  ;;  %v105_v31 = vld [vmem:[%s3297_s1 + $0x178] sm:$0xff]  ;;  %v139_v33 = vld [vmem:[%s3297_s1 + $0x288] sm:$0xff]  ;;  %v1863_v34 = vpack.c.bf16 %v73_v28, %v72_v27  ;;  %v122_v37 = vld [vmem:[%s3297_s1 + $0x200] sm:$0xff] }
  0x18   :  { %1886 = vmatprep.subr.bf16.mxu1 %v1885_v4  ;;  %v1895_v35 = vpack.c.bf16 %v105_v31, %v104_v29  ;;  %v1897_v36 = vpack.c.bf16 %v139_v33, %v138_v32  ;;  %v123_v38 = vld [vmem:[%s3297_s1 + $0x208] sm:$0xff]  ;;  %v140_v39 = vld [vmem:[%s3297_s1 + $0x290] sm:$0xff]  ;;  %v141_v40 = vld [vmem:[%s3297_s1 + $0x298] sm:$0xff] }
  0x19   :  { %1856 = vmatpush3.bf16.msra.mxu0 %v1855_v10  ;;  %v51_v41 = vld [vmem:[%s3296_s0] sm:$0xff]  ;;  %v1899_v42 = vpack.c.bf16 %v123_v38, %v122_v37  ;;  %v53_v43 = vld [vmem:[%s3296_s0 + $0x10] sm:$0xff]  ;;  %v1901_v45 = vpack.c.bf16 %v141_v40, %v140_v39  ;;  %v125_v46 = vld [vmem:[%s3297_s1 + $0x218] sm:$0xff] }
  0x1a   :  { %1858 = vmatprep.subr.bf16.mxu0 %v1857_v14  ;;  %v124_v44 = vld [vmem:[%s3297_s1 + $0x210] sm:$0xff]  ;;  %v142_v47 = vld [vmem:[%s3297_s1 + $0x2a0] sm:$0xff]  ;;  %v143_v48 = vld [vmem:[%s3297_s1 + $0x2a8] sm:$0xff] }
  0x1b   :  { %1888 = vmatpush3.bf16.msra.mxu1 %v1887_v13  ;;  %v56_v49 = vld [vmem:[%s3296_s0 + $0x28] sm:$0xff]  ;;  %v154_v51 = vld [vmem:[%s3297_s1 + $0x300] sm:$0xff] }
  0x1c   :  { %1890 = vmatprep.subr.bf16.mxu1 %v1889_v18  ;;  %v155_v52 = vld [vmem:[%s3297_s1 + $0x308] sm:$0xff] }
  0x1d   :  { %1860 = vmatpush3.bf16.msra.mxu0 %v1859_v24  ;;  %v1930_v53 = vpack.c.bf16 %v155_v52, %v154_v51 }
  0x1e   :  { %1862 = vmatprep.subr.bf16.mxu0 %v1861_v26 }
  0x1f   :  { %1892 = vmatpush3.bf16.msra.mxu1 %v1891_v25 }
  0x20   :  { %1894 = vmatprep.subr.bf16.mxu1 %v1893_v30 }
  0x21   :  { %1864 = vmatpush3.bf16.msra.mxu0 %v1863_v34 }
  0x22   :  { %1898 = vmatprep.subr.bf16.mxu0 %v1897_v36 }
  0x23   :  { %1896 = vmatpush3.bf16.msra.mxu1 %v1895_v35 }
  0x24   :  { %1929 = vmatprep.subr.bf16.mxu1 %v2214_v50  ;;  %232 = vmatmul.mubr.f32.vlgmr.msra.gmra.mrb[0].mxu0 %v51_v41 }
  0x25   :  { %20 = vsyncpa [#allocation3], 0  ;;  %1900 = vmatpush3.bf16.msra.mxu0 %v1899_v42  ;;  %v1903_v54 = vpack.c.bf16 %v125_v46, %v124_v44  ;;  %v1905_v55 = vpack.c.bf16 %v143_v48, %v142_v47  ;;  %v126_v56 = vld [vmem:[%s3297_s1 + $0x220] sm:$0xff]  ;;  %v127_v57 = vld [vmem:[%s3297_s1 + $0x228] sm:$0xff]  ;;  %371 = vmatprep.mubr.f32.mxu0 %v56_v49  ;;  %vm2215_vm0 = vmmov 0   ;;  %v2216_v60 = vmov 0.0  }
  0x26   :  { %302 = vmatmul.mubr.f32.vlgmr.msra.gmra.mrb[0].mxu1 %v53_v43  ;;  %1902 = vmatprep.subr.bf16.mxu0 %v1901_v45  ;;  %v144_v58 = vld [vmem:[%s3297_s1 + $0x2b0] sm:$0xff]  ;;  %v145_v59 = vld [vmem:[%s3297_s1 + $0x2b8] sm:$0xff]  ;;  %vm163_vm1 = vcmask 130048   ;;  %v1907_v62 = vpack.c.bf16 %v127_v57, %v126_v56  ;;  %v146_v2 = vld [vmem:[%s3297_s1 + $0x2c0] sm:$0xff] }
  0x27   :  { %1931 = vmatpush3.bf16.msra.mxu1 %v1930_v53  ;;  %1620 = vmatprep.mubr.msk.f32.mxu1 %vm2215_vm0, %v2216_v60  ;;  %v57_v61 = vld [vmem:[%s3296_s0 + $0x30] sm:$0xff]  ;;  %v1909_v63 = vpack.c.bf16 %v145_v59, %v144_v58  ;;  %v129_v1 = vld [vmem:[%s3297_s1 + $0x238] sm:$0xff]  ;;  %v147_v3 = vld [vmem:[%s3297_s1 + $0x2c8] sm:$0xff] }
  0x28   :  { %1932 = vmatprep.subr.bf16.mxu1 %v2214_v50  ;;  %v128_v0 = vld [vmem:[%s3297_s1 + $0x230] sm:$0xff]  ;;  %v1913_v5 = vpack.c.bf16 %v147_v3, %v146_v2  ;;  %v130_v6 = vld [vmem:[%s3297_s1 + $0x240] sm:$0xff]  ;;  %v131_v7 = vld [vmem:[%s3297_s1 + $0x248] sm:$0xff] }
  0x29   :  { %1904 = vmatpush3.bf16.msra.mxu0 %v1903_v54  ;;  %v1911_v4 = vpack.c.bf16 %v129_v1, %v128_v0  ;;  %v148_v8 = vld [vmem:[%s3297_s1 + $0x2d0] sm:$0xff]  ;;  %v149_v9 = vld [vmem:[%s3297_s1 + $0x2d8] sm:$0xff]  ;;  %v1915_v10 = vpack.c.bf16 %v131_v7, %v130_v6  ;;  %v150_v14 = vld [vmem:[%s3297_s1 + $0x2e0] sm:$0xff] }
  0x2a   :  { %1906 = vmatprep.subr.bf16.mxu0 %v1905_v55  ;;  %1621 = vmatmul.mubr.msk.f32.vlgmr.msra.gmra.mrb[2].mxu1 %vm163_vm1, %v57_v61  ;;  %v1917_v11 = vpack.c.bf16 %v149_v9, %v148_v8  ;;  %v132_v12 = vld [vmem:[%s3297_s1 + $0x250] sm:$0xff]  ;;  %v133_v13 = vld [vmem:[%s3297_s1 + $0x258] sm:$0xff]  ;;  %v151_v15 = vld [vmem:[%s3297_s1 + $0x2e8] sm:$0xff] }
  0x2b   :  { %1655 = vmatprep.mubr.msk.f32.mxu1 %vm2215_vm0, %v2216_v60  ;;  %v1919_v16 = vpack.c.bf16 %v133_v13, %v132_v12  ;;  %v1921_v17 = vpack.c.bf16 %v151_v15, %v150_v14  ;;  %v134_v18 = vld [vmem:[%s3297_s1 + $0x260] sm:$0xff]  ;;  %v135_v19 = vld [vmem:[%s3297_s1 + $0x268] sm:$0xff]  ;;  %v152_v20 = vld [vmem:[%s3297_s1 + $0x2f0] sm:$0xff] }
  0x2c   :  { %v153_v21 = vld [vmem:[%s3297_s1 + $0x2f8] sm:$0xff]  ;;  %v1923_v22 = vpack.c.bf16 %v135_v19, %v134_v18  ;;  %v136_v24 = vld [vmem:[%s3297_s1 + $0x270] sm:$0xff]  ;;  %v55_v27 = vld [vmem:[%s3296_s0 + $0x20] sm:$0xff] }
  0x2d   :  { %1908 = vmatpush3.bf16.msra.mxu0 %v1907_v62  ;;  %v1925_v23 = vpack.c.bf16 %v153_v21, %v152_v20  ;;  %v137_v25 = vld [vmem:[%s3297_s1 + $0x278] sm:$0xff]  ;;  %v448_v28 = vld [vmem:[%s3299_s3] sm:$0xff]  ;;  %v449_v29 = vld [vmem:[%s3299_s3 + $0x8] sm:$0xff] }
  0x2e   :  { %1910 = vmatprep.subr.bf16.mxu0 %v1909_v63  ;;  %v1927_v26 = vpack.c.bf16 %v137_v25, %v136_v24  ;;  %v450_v30 = vld [vmem:[%s3299_s3 + $0x10] sm:$0xff]  ;;  %v1933_v31 = vpack.c.bf16 %v449_v29, %v448_v28  ;;  %v451_v32 = vld [vmem:[%s3299_s3 + $0x18] sm:$0xff]  ;;  %v452_v34 = vld [vmem:[%s3299_s3 + $0x20] sm:$0xff] }
  0x2f   :  { %v1936_v33 = vpack.c.bf16 %v451_v32, %v450_v30  ;;  %v453_v35 = vld [vmem:[%s3299_s3 + $0x28] sm:$0xff]  ;;  %v454_v37 = vld [vmem:[%s3299_s3 + $0x30] sm:$0xff]  ;;  %v455_v38 = vld [vmem:[%s3299_s3 + $0x38] sm:$0xff] }
  0x30   :  { %1934 = vmatpush3.bf16.msra.mxu1 %v1933_v31  ;;  %v1939_v36 = vpack.c.bf16 %v453_v35, %v452_v34  ;;  %v1942_v39 = vpack.c.bf16 %v455_v38, %v454_v37  ;;  %v456_v40 = vld [vmem:[%s3299_s3 + $0x40] sm:$0xff]  ;;  %v457_v41 = vld [vmem:[%s3299_s3 + $0x48] sm:$0xff]  ;;  %v458_v43 = vld [vmem:[%s3299_s3 + $0x50] sm:$0xff] }
  0x31   :  { %1912 = vmatpush3.bf16.msra.mxu0 %v1911_v4  ;;  %1935 = vmatprep.subr.bf16.mxu1 %v2214_v50  ;;  %v1945_v42 = vpack.c.bf16 %v457_v41, %v456_v40  ;;  %v459_v44 = vld [vmem:[%s3299_s3 + $0x58] sm:$0xff]  ;;  %v460_v46 = vld [vmem:[%s3299_s3 + $0x60] sm:$0xff]  ;;  %v461_v47 = vld [vmem:[%s3299_s3 + $0x68] sm:$0xff] }
  0x32   :  { %1914 = vmatprep.subr.bf16.mxu0 %v1913_v5  ;;  %v1948_v45 = vpack.c.bf16 %v459_v44, %v458_v43  ;;  %v1951_v48 = vpack.c.bf16 %v461_v47, %v460_v46  ;;  %v462_v49 = vld [vmem:[%s3299_s3 + $0x70] sm:$0xff]  ;;  %v463_v51 = vld [vmem:[%s3299_s3 + $0x78] sm:$0xff]  ;;  %v542_v53 = vld [vmem:[%s3301_s5] sm:$0xff] }
  0x33   :  { %v1954_v52 = vpack.c.bf16 %v463_v51, %v462_v49  ;;  %v543_v54 = vld [vmem:[%s3301_s5 + $0x8] sm:$0xff]  ;;  %v544_v55 = vld [vmem:[%s3301_s5 + $0x10] sm:$0xff]  ;;  %v545_v57 = vld [vmem:[%s3301_s5 + $0x18] sm:$0xff] }
  0x34   :  { %1937 = vmatpush3.bf16.msra.mxu1 %v1936_v33  ;;  %v1957_v56 = vpack.c.bf16 %v543_v54, %v542_v53  ;;  %v1960_v58 = vpack.c.bf16 %v545_v57, %v544_v55  ;;  %v546_v59 = vld [vmem:[%s3301_s5 + $0x20] sm:$0xff]  ;;  %v547_v61 = vld [vmem:[%s3301_s5 + $0x28] sm:$0xff]  ;;  %v548_v63 = vld [vmem:[%s3301_s5 + $0x30] sm:$0xff] }
  0x35   :  { %1916 = vmatpush3.bf16.msra.mxu0 %v1915_v10  ;;  %1938 = vmatprep.subr.bf16.mxu1 %v2214_v50  ;;  %v1963_v62 = vpack.c.bf16 %v547_v61, %v546_v59  ;;  %v549_v0 = vld [vmem:[%s3301_s5 + $0x38] sm:$0xff]  ;;  %v550_v2 = vld [vmem:[%s3301_s5 + $0x40] sm:$0xff]  ;;  %v551_v3 = vld [vmem:[%s3301_s5 + $0x48] sm:$0xff] }
  0x36   :  { %1918 = vmatprep.subr.bf16.mxu0 %v1917_v11  ;;  %v1966_v1 = vpack.c.bf16 %v549_v0, %v548_v63  ;;  %v1969_v4 = vpack.c.bf16 %v551_v3, %v550_v2  ;;  %v552_v5 = vld [vmem:[%s3301_s5 + $0x50] sm:$0xff]  ;;  %v553_v6 = vld [vmem:[%s3301_s5 + $0x58] sm:$0xff]  ;;  %v554_v8 = vld [vmem:[%s3301_s5 + $0x60] sm:$0xff] }
  0x37   :  { %v1972_v7 = vpack.c.bf16 %v553_v6, %v552_v5  ;;  %v555_v9 = vld [vmem:[%s3301_s5 + $0x68] sm:$0xff]  ;;  %v1399_v12 = vld [vmem:[%s3298_s2] ss:$0 sm:$0xff]  ;;  %v556_v28 = vld [vmem:[%s3301_s5 + $0x70] sm:$0xff] }
  0x38   :  { %1940 = vmatpush3.bf16.msra.mxu1 %v1939_v36  ;;  %v1975_v10 = vpack.c.bf16 %v555_v9, %v554_v8  ;;  %v557_v29 = vld [vmem:[%s3301_s5 + $0x78] sm:$0xff]  ;;  %v636_v31 = vld [vmem:[%s3303_s7] sm:$0xff]  ;;  %v637_v32 = vld [vmem:[%s3303_s7 + $0x8] sm:$0xff] }
  0x39   :  { %1920 = vmatpush3.bf16.msra.mxu0 %v1919_v16  ;;  %1941 = vmatprep.subr.bf16.mxu1 %v2214_v50  ;;  %v1978_v30 = vpack.c.bf16 %v557_v29, %v556_v28  ;;  %v638_v33 = vld [vmem:[%s3303_s7 + $0x10] sm:$0xff]  ;;  %v1981_v34 = vpack.c.bf16 %v637_v32, %v636_v31  ;;  %v639_v35 = vld [vmem:[%s3303_s7 + $0x18] sm:$0xff]  ;;  %v640_v37 = vld [vmem:[%s3303_s7 + $0x20] sm:$0xff] }
  0x3a   :  { %1922 = vmatprep.subr.bf16.mxu0 %v1921_v17  ;;  %v1984_v36 = vpack.c.bf16 %v639_v35, %v638_v33  ;;  %v641_v38 = vld [vmem:[%s3303_s7 + $0x28] sm:$0xff]  ;;  %v642_v40 = vld [vmem:[%s3303_s7 + $0x30] sm:$0xff]  ;;  %v643_v41 = vld [vmem:[%s3303_s7 + $0x38] sm:$0xff] }
  0x3b   :  { %v644_v43 = vld [vmem:[%s3303_s7 + $0x40] sm:$0xff]  ;;  %v645_v44 = vld [vmem:[%s3303_s7 + $0x48] sm:$0xff]  ;;  %v646_v46 = vld [vmem:[%s3303_s7 + $0x50] sm:$0xff] }
  0x3c   :  { %1943 = vmatpush3.bf16.msra.mxu1 %v1942_v39  ;;  %v1987_v39 = vpack.c.bf16 %v641_v38, %v640_v37  ;;  %v647_v47 = vld [vmem:[%s3303_s7 + $0x58] sm:$0xff]  ;;  %v648_v49 = vld [vmem:[%s3303_s7 + $0x60] sm:$0xff]  ;;  %v649_v51 = vld [vmem:[%s3303_s7 + $0x68] sm:$0xff] }
  0x3d   :  { %1924 = vmatpush3.bf16.msra.mxu0 %v1923_v22  ;;  %1944 = vmatprep.subr.bf16.mxu1 %v2214_v50  ;;  %v1401_v53 = vld [vmem:[%s3300_s4] ss:$0 sm:$0xff]  ;;  %v651_v59 = vld [vmem:[%s3303_s7 + $0x78] sm:$0xff]  ;;  %v731_v63 = vld [vmem:[%s3305_s9 + $0x8] sm:$0xff] }
  0x3e   :  { %1926 = vmatprep.subr.bf16.mxu0 %v1925_v23  ;;  %v732_v0 = vld [vmem:[%s3305_s9 + $0x10] sm:$0xff]  ;;  %v733_v2 = vld [vmem:[%s3305_s9 + $0x18] sm:$0xff]  ;;  %v735_v5 = vld [vmem:[%s3305_s9 + $0x28] sm:$0xff] }
  0x3f   :  { %v2008_v3 = vpack.c.bf16 %v733_v2, %v732_v0  ;;  %v737_v8 = vld [vmem:[%s3305_s9 + $0x38] sm:$0xff]  ;;  %v825_v28 = vld [vmem:[%s3307_s11 + $0x8] sm:$0xff]  ;;  %v826_v29 = vld [vmem:[%s3307_s11 + $0x10] sm:$0xff] }
  0x40   :  { %1946 = vmatpush3.bf16.msra.mxu1 %v1945_v42  ;;  %v1990_v42 = vpack.c.bf16 %v643_v41, %v642_v40  ;;  %v827_v31 = vld [vmem:[%s3307_s11 + $0x18] sm:$0xff]  ;;  %v828_v33 = vld [vmem:[%s3307_s11 + $0x20] sm:$0xff]  ;;  %v833_v40 = vld [vmem:[%s3307_s11 + $0x48] sm:$0xff] }
  0x41   :  { %1928 = vmatpush3.bf16.msra.mxu0 %v1927_v26  ;;  %1947 = vmatprep.subr.bf16.mxu1 %v2214_v50  ;;  %v2032_v32 = vpack.c.bf16 %v827_v31, %v826_v29  ;;  %v831_v37 = vld [vmem:[%s3307_s11 + $0x38] sm:$0xff]  ;;  %v995_v31 = vld [vmem:[%s3309_s13 + $0x268] sm:$0xff] }
  0x42   :  { %1956 = vmatprep.subr.bf16.mxu0 %v2214_v50  ;;  %v925_v0 = vld [vmem:[%s3309_s13 + $0x38] sm:$0xff] }
  0x44   :  { %372 = vmatmul.mubr.f32.vlgmr.msra.gmra.mrb[2].mxu0 %v55_v27  ;;  %1949 = vmatpush3.bf16.msra.mxu1 %v1948_v45  ;;  %v1993_v45 = vpack.c.bf16 %v645_v44, %v644_v43  ;;  %v835_v43 = vld [vmem:[%s3307_s11 + $0x58] sm:$0xff] }
  0x45   :  { %1690 = vmatprep.mubr.msk.f32.mxu0 %vm2215_vm0, %v2216_v60  ;;  %1950 = vmatprep.subr.bf16.mxu1 %v2214_v50 }
  0x46   :  { %1958 = vmatpush3.bf16.msra.mxu0 %v1957_v56 }
  0x47   :  { %1959 = vmatprep.subr.bf16.mxu0 %v2214_v50 }
  0x48   :  { %1952 = vmatpush3.bf16.msra.mxu1 %v1951_v48  ;;  %v1996_v48 = vpack.c.bf16 %v647_v47, %v646_v46  ;;  %v837_v46 = vld [vmem:[%s3307_s11 + $0x68] sm:$0xff] }
  0x49   :  { %1953 = vmatprep.subr.bf16.mxu1 %v2214_v50 }
  0x4a   :  { %1961 = vmatpush3.bf16.msra.mxu0 %v1960_v58  ;;  %v650_v58 = vld [vmem:[%s3303_s7 + $0x70] sm:$0xff] }
  0x4b   :  { %1962 = vmatprep.subr.bf16.mxu0 %v2214_v50  ;;  %v2002_v61 = vpack.c.bf16 %v651_v59, %v650_v58  ;;  %v926_v58 = vld [vmem:[%s3309_s13 + $0x40] sm:$0xff]  ;;  %v921_v59 = vld [vmem:[%s3309_s13 + $0x18] sm:$0xff] }
  0x4c   :  { %1955 = vmatpush3.bf16.msra.mxu1 %v1954_v52  ;;  %v1999_v52 = vpack.c.bf16 %v649_v51, %v648_v49 }
  0x4d   :  { %1980 = vmatprep.subr.bf16.mxu1 %v2214_v50 }
  0x4e   :  { %1964 = vmatpush3.bf16.msra.mxu0 %v1963_v62  ;;  %v730_v62 = vld [vmem:[%s3305_s9] sm:$0xff] }
  0x4f   :  { %1965 = vmatprep.subr.bf16.mxu0 %v2214_v50 }
  0x52   :  { %1967 = vmatpush3.bf16.msra.mxu0 %v1966_v1  ;;  %v2005_v1 = vpack.c.bf16 %v731_v63, %v730_v62  ;;  %v928_v62 = vld [vmem:[%s3309_s13 + $0x50] sm:$0xff]  ;;  %v918_v63 = vld [vmem:[%s3309_s13] sm:$0xff] }
  0x53   :  { %1968 = vmatprep.subr.bf16.mxu0 %v2214_v50  ;;  %v2054_v2 = vpack.c.bf16 %v925_v0, %v918_v63  ;;  %v962_v0 = vld [vmem:[%s3309_s13 + $0x160] sm:$0xff] }
  0x56   :  { %1970 = vmatpush3.bf16.msra.mxu0 %v1969_v4  ;;  %v734_v4 = vld [vmem:[%s3305_s9 + $0x20] sm:$0xff] }
  0x57   :  { %1971 = vmatprep.subr.bf16.mxu0 %v2214_v50  ;;  %v2011_v6 = vpack.c.bf16 %v735_v5, %v734_v4  ;;  %v940_v4 = vld [vmem:[%s3309_s13 + $0xb0] sm:$0xff] }
  0x5a   :  { %1973 = vmatpush3.bf16.msra.mxu0 %v1972_v7  ;;  %v736_v7 = vld [vmem:[%s3305_s9 + $0x30] sm:$0xff] }
  0x5b   :  { %1974 = vmatprep.subr.bf16.mxu0 %v2214_v50  ;;  %v2014_v9 = vpack.c.bf16 %v737_v8, %v736_v7  ;;  %v939_v7 = vld [vmem:[%s3309_s13 + $0xa8] sm:$0xff] }
  0x5e   :  { %1976 = vmatpush3.bf16.msra.mxu0 %v1975_v10  ;;  %v738_v10 = vld [vmem:[%s3305_s9 + $0x40] sm:$0xff] }
  0x5f   :  { %1977 = vmatprep.subr.bf16.mxu0 %v2214_v50 }
  0x62   :  { %1979 = vmatpush3.bf16.msra.mxu0 %v1978_v30 }
  0x63   :  { %2004 = vmatprep.subr.bf16.mxu0 %v2214_v50 }
  0xf7   :  { %v1438_v11 = vpop.f32.mrb[0].mxu0 }
  0xf8   :  { %v1439_v13 = vpop.f32.mrb[1].mxu0 }
  0xf9   :  { %v1473_v14 = vpop.f32.mrb[0].mxu1  ;;  %v1440_v15 = vadd.f32 %v1439_v13, %v1438_v11  ;;  %v739_v11 = vld [vmem:[%s3305_s9 + $0x48] sm:$0xff]  ;;  %v740_v13 = vld [vmem:[%s3305_s9 + $0x50] sm:$0xff] }
  0xfa   :  { %v1474_v16 = vpop.f32.mrb[1].mxu1 }
  0xfb   :  { %v1475_v17 = vadd.f32 %v1474_v16, %v1473_v14  ;;  %v234_v18 = vadd.f32 %v1440_v15, %v1399_v12  ;;  %v2017_v12 = vpack.c.bf16 %v739_v11, %v738_v10  ;;  %v741_v14 = vld [vmem:[%s3305_s9 + $0x58] sm:$0xff]  ;;  %v742_v16 = vld [vmem:[%s3305_s9 + $0x60] sm:$0xff] }
  0xfc   :  { %v2020_v15 = vpack.c.bf16 %v741_v14, %v740_v13  ;;  %v954_v10 = vld [vmem:[%s3309_s13 + $0x120] sm:$0xff]  ;;  %v953_v13 = vld [vmem:[%s3309_s13 + $0x118] sm:$0xff] }
  0xfd   :  { %v304_v19 = vadd.f32 %v1475_v17, %v234_v18  ;;  %v443_v20 = vpop.f32.mrb[2].mxu1  ;;  %v743_v17 = vld [vmem:[%s3305_s9 + $0x68] sm:$0xff] }
  0xfe   :  { %v1622_v21 = vpop.f32.mrb[3].mxu1  ;;  %v2023_v18 = vpack.c.bf16 %v743_v17, %v742_v16  ;;  %v968_v16 = vld [vmem:[%s3309_s13 + $0x190] sm:$0xff] }
 0x117   :  { %v1508_v22 = vpop.f32.mrb[2].mxu0 }
 0x118   :  { %v1509_v23 = vpop.f32.mrb[3].mxu0 }
 0x119   :  { %v1510_v24 = vadd.f32 %v1509_v23, %v1508_v22 }
 0x11b   :  { %v374_v25 = vadd.f32 %v1510_v24, %v304_v19  ;;  %v1402_v19 = vld [vmem:[%s3302_s6] ss:$0 sm:$0xff]  ;;  %v744_v24 = vld [vmem:[%s3305_s9 + $0x70] sm:$0xff] }
 0x11d   :  { %v444_v26 = vadd.f32 %v443_v20, %v374_v25  ;;  %v745_v25 = vld [vmem:[%s3305_s9 + $0x78] sm:$0xff] }
 0x11f   :  { %v447_v27 = vmax.f32 %v444_v26, 0.0  ;;  %v2026_v26 = vpack.c.bf16 %v745_v25, %v744_v24  ;;  %v974_v24 = vld [vmem:[%s3309_s13 + $0x1c0] sm:$0xff]  ;;  %v981_v25 = vld [vmem:[%s3309_s13 + $0x1f8] sm:$0xff] }
 0x121   :  { %1656 = vmatmul.mubr.f32.vlgmr.msra.gmra.mrb[4].mxu1 %v447_v27  ;;  %v824_v27 = vld [vmem:[%s3307_s11] sm:$0xff] }
 0x122   :  { %1725 = vmatprep.mubr.msk.f32.mxu1 %vm2215_vm0, %v2216_v60  ;;  %1982 = vmatpush3.bf16.msra.mxu1 %v1981_v34  ;;  %v2029_v30 = vpack.c.bf16 %v825_v28, %v824_v27  ;;  %v829_v34 = vld [vmem:[%s3307_s11 + $0x28] sm:$0xff]  ;;  %v989_v27 = vld [vmem:[%s3309_s13 + $0x238] sm:$0xff]  ;;  %v996_v28 = vld [vmem:[%s3309_s13 + $0x270] sm:$0xff] }
 0x123   :  { %1983 = vmatprep.subr.bf16.mxu1 %v2214_v50  ;;  %v2035_v35 = vpack.c.bf16 %v829_v34, %v828_v33  ;;  %v2072_v29 = vpack.c.bf16 %v996_v28, %v989_v27  ;;  %v1003_v33 = vld [vmem:[%s3309_s13 + $0x2a8] sm:$0xff]  ;;  %v1010_v34 = vld [vmem:[%s3309_s13 + $0x2e0] sm:$0xff] }
 0x124   :  { %v1023_v27 = vld [vmem:[%s3309_s13 + $0x348] sm:$0xff] }
 0x126   :  { %1985 = vmatpush3.bf16.msra.mxu1 %v1984_v36  ;;  %v830_v36 = vld [vmem:[%s3307_s11 + $0x30] sm:$0xff] }
 0x127   :  { %1986 = vmatprep.subr.bf16.mxu1 %v2214_v50  ;;  %v2038_v38 = vpack.c.bf16 %v831_v37, %v830_v36  ;;  %v1002_v36 = vld [vmem:[%s3309_s13 + $0x2a0] sm:$0xff]  ;;  %v1009_v37 = vld [vmem:[%s3309_s13 + $0x2d8] sm:$0xff] }
 0x12a   :  { %1988 = vmatpush3.bf16.msra.mxu1 %v1987_v39  ;;  %v832_v39 = vld [vmem:[%s3307_s11 + $0x40] sm:$0xff] }
 0x12b   :  { %1989 = vmatprep.subr.bf16.mxu1 %v2214_v50  ;;  %v2041_v41 = vpack.c.bf16 %v833_v40, %v832_v39  ;;  %v1404_v39 = vld [vmem:[%s3306_s10] ss:$0 sm:$0xff]  ;;  %v920_v40 = vld [vmem:[%s3309_s13 + $0x10] sm:$0xff] }
 0x12e   :  { %1991 = vmatpush3.bf16.msra.mxu1 %v1990_v42  ;;  %v834_v42 = vld [vmem:[%s3307_s11 + $0x50] sm:$0xff] }
 0x12f   :  { %1992 = vmatprep.subr.bf16.mxu1 %v2214_v50  ;;  %v2044_v44 = vpack.c.bf16 %v835_v43, %v834_v42  ;;  %v935_v43 = vld [vmem:[%s3309_s13 + $0x88] sm:$0xff] }
 0x132   :  { %1994 = vmatpush3.bf16.msra.mxu1 %v1993_v45  ;;  %v836_v45 = vld [vmem:[%s3307_s11 + $0x60] sm:$0xff] }
 0x133   :  { %1995 = vmatprep.subr.bf16.mxu1 %v2214_v50  ;;  %v2047_v47 = vpack.c.bf16 %v837_v46, %v836_v45 }
 0x136   :  { %1997 = vmatpush3.bf16.msra.mxu1 %v1996_v48  ;;  %v1403_v48 = vld [vmem:[%s3304_s8] ss:$0 sm:$0xff] }
 0x137   :  { %1998 = vmatprep.subr.bf16.mxu1 %v2214_v50 }
 0x13a   :  { %2000 = vmatpush3.bf16.msra.mxu1 %v1999_v52 }
 0x13b   :  { %2001 = vmatprep.subr.bf16.mxu1 %v2214_v50 }
 0x13e   :  { %2003 = vmatpush3.bf16.msra.mxu1 %v2002_v61 }
 0x13f   :  { %2028 = vmatprep.subr.bf16.mxu1 %v2214_v50 }
 0x1f4   :  { %v537_v54 = vpop.f32.mrb[4].mxu1 }
 0x1f5   :  { %v538_v55 = vadd.f32 %v1401_v53, %v537_v54  ;;  %v1657_v56 = vpop.f32.mrb[5].mxu1  ;;  %v838_v54 = vld [vmem:[%s3307_s11 + $0x70] sm:$0xff] }
 0x1f7   :  { %v541_v57 = vmax.f32 %v538_v55, 0.0  ;;  %v839_v55 = vld [vmem:[%s3307_s11 + $0x78] sm:$0xff] }
 0x1f8   :  { %v2050_v56 = vpack.c.bf16 %v839_v55, %v838_v54  ;;  %v956_v54 = vld [vmem:[%s3309_s13 + $0x130] sm:$0xff] }
 0x1f9   :  { %1691 = vmatmul.mubr.f32.vlgmr.msra.gmra.mrb[4].mxu0 %v541_v57  ;;  %v919_v57 = vld [vmem:[%s3309_s13 + $0x8] sm:$0xff] }
 0x1fa   :  { %1760 = vmatprep.mubr.msk.f32.mxu0 %vm2215_vm0, %v2216_v60  ;;  %2006 = vmatpush3.bf16.msra.mxu0 %v2005_v1  ;;  %v2052_v61 = vpack.c.bf16 %v926_v58, %v919_v57  ;;  %v2084_v1 = vpack.c.bf16 %v928_v62, %v921_v59  ;;  %v948_v57 = vld [vmem:[%s3309_s13 + $0xf0] sm:$0xff]  ;;  %v955_v58 = vld [vmem:[%s3309_s13 + $0x128] sm:$0xff] }
 0x1fb   :  { %2007 = vmatprep.subr.bf16.mxu0 %v2214_v50  ;;  %v963_v59 = vld [vmem:[%s3309_s13 + $0x168] sm:$0xff]  ;;  %v2094_v62 = vpack.c.bf16 %v955_v58, %v948_v57 }
 0x1fe   :  { %2009 = vmatpush3.bf16.msra.mxu0 %v2008_v3  ;;  %v933_v3 = vld [vmem:[%s3309_s13 + $0x78] sm:$0xff] }
 0x1ff   :  { %2010 = vmatprep.subr.bf16.mxu0 %v2214_v50  ;;  %v2056_v5 = vpack.c.bf16 %v940_v4, %v933_v3  ;;  %v984_v3 = vld [vmem:[%s3309_s13 + $0x210] sm:$0xff] }
 0x202   :  { %2012 = vmatpush3.bf16.msra.mxu0 %v2011_v6  ;;  %v932_v6 = vld [vmem:[%s3309_s13 + $0x70] sm:$0xff] }
 0x203   :  { %2013 = vmatprep.subr.bf16.mxu0 %v2214_v50  ;;  %v2058_v8 = vpack.c.bf16 %v939_v7, %v932_v6  ;;  %v976_v6 = vld [vmem:[%s3309_s13 + $0x1d0] sm:$0xff]  ;;  %v983_v7 = vld [vmem:[%s3309_s13 + $0x208] sm:$0xff] }
 0x206   :  { %2015 = vmatpush3.bf16.msra.mxu0 %v2014_v9  ;;  %v947_v9 = vld [vmem:[%s3309_s13 + $0xe8] sm:$0xff] }
 0x207   :  { %2016 = vmatprep.subr.bf16.mxu0 %v2214_v50  ;;  %v2060_v11 = vpack.c.bf16 %v954_v10, %v947_v9  ;;  %v998_v9 = vld [vmem:[%s3309_s13 + $0x280] sm:$0xff]  ;;  %v2102_v10 = vpack.c.bf16 %v983_v7, %v976_v6  ;;  %v971_v7 = vld [vmem:[%s3309_s13 + $0x1a8] sm:$0xff] }
 0x20a   :  { %2018 = vmatpush3.bf16.msra.mxu0 %v2017_v12  ;;  %v946_v12 = vld [vmem:[%s3309_s13 + $0xe0] sm:$0xff] }
 0x20b   :  { %2019 = vmatprep.subr.bf16.mxu0 %v2214_v50  ;;  %v2062_v14 = vpack.c.bf16 %v953_v13, %v946_v12  ;;  %v990_v12 = vld [vmem:[%s3309_s13 + $0x240] sm:$0xff]  ;;  %v997_v13 = vld [vmem:[%s3309_s13 + $0x278] sm:$0xff] }
 0x20e   :  { %2021 = vmatpush3.bf16.msra.mxu0 %v2020_v15  ;;  %v961_v15 = vld [vmem:[%s3309_s13 + $0x158] sm:$0xff] }
 0x20f   :  { %2022 = vmatprep.subr.bf16.mxu0 %v2214_v50  ;;  %v2064_v17 = vpack.c.bf16 %v968_v16, %v961_v15  ;;  %v1012_v15 = vld [vmem:[%s3309_s13 + $0x2f0] sm:$0xff]  ;;  %v2106_v16 = vpack.c.bf16 %v997_v13, %v990_v12  ;;  %v978_v13 = vld [vmem:[%s3309_s13 + $0x1e0] sm:$0xff] }
 0x212   :  { %2024 = vmatpush3.bf16.msra.mxu0 %v2023_v18  ;;  %v960_v18 = vld [vmem:[%s3309_s13 + $0x150] sm:$0xff] }
 0x213   :  { %2025 = vmatprep.subr.bf16.mxu0 %v2214_v50 }
 0x216   :  { %2027 = vmatpush3.bf16.msra.mxu0 %v2026_v26  ;;  %v2070_v26 = vpack.c.bf16 %v981_v25, %v974_v24  ;;  %v1026_v25 = vld [vmem:[%s3309_s13 + $0x360] sm:$0xff] }
 0x217   :  { %2053 = vmatprep.subr.bf16.mxu0 %v2052_v61  ;;  %v970_v61 = vld [vmem:[%s3309_s13 + $0x1a0] sm:$0xff] }
 0x218   :  { %v2096_v63 = vpack.c.bf16 %v970_v61, %v963_v59  ;;  %v950_v59 = vld [vmem:[%s3309_s13 + $0x100] sm:$0xff] }
 0x2cc   :  { %v631_v20 = vpop.f32.mrb[4].mxu0 }
 0x2cd   :  { %v632_v21 = vadd.f32 %v1402_v19, %v631_v20  ;;  %v1692_v22 = vpop.f32.mrb[5].mxu0  ;;  %v967_v19 = vld [vmem:[%s3309_s13 + $0x188] sm:$0xff] }
 0x2ce   :  { %v2066_v20 = vpack.c.bf16 %v967_v19, %v960_v18  ;;  %v982_v22 = vld [vmem:[%s3309_s13 + $0x200] sm:$0xff]  ;;  %v1004_v18 = vld [vmem:[%s3309_s13 + $0x2b0] sm:$0xff]  ;;  %v1011_v19 = vld [vmem:[%s3309_s13 + $0x2e8] sm:$0xff] }
 0x2cf   :  { %v635_v23 = vmax.f32 %v632_v21, 0.0  ;;  %v975_v21 = vld [vmem:[%s3309_s13 + $0x1c8] sm:$0xff] }
 0x2d1   :  { %1726 = vmatmul.mubr.f32.vlgmr.msra.gmra.mrb[6].mxu1 %v635_v23  ;;  %v2068_v23 = vpack.c.bf16 %v982_v22, %v975_v21  ;;  %v1017_v21 = vld [vmem:[%s3309_s13 + $0x318] sm:$0xff]  ;;  %v1024_v22 = vld [vmem:[%s3309_s13 + $0x350] sm:$0xff] }
 0x2d2   :  { %1795 = vmatprep.mubr.msk.f32.mxu1 %vm2215_vm0, %v2216_v60  ;;  %2030 = vmatpush3.bf16.msra.mxu1 %v2029_v30  ;;  %v988_v30 = vld [vmem:[%s3309_s13 + $0x230] sm:$0xff]  ;;  %v2080_v24 = vpack.c.bf16 %v1024_v22, %v1017_v21 }
 0x2d3   :  { %2031 = vmatprep.subr.bf16.mxu1 %v2214_v50  ;;  %v992_v22 = vld [vmem:[%s3309_s13 + $0x250] sm:$0xff] }
 0x2d6   :  { %2033 = vmatpush3.bf16.msra.mxu1 %v2032_v32  ;;  %v2074_v32 = vpack.c.bf16 %v995_v31, %v988_v30  ;;  %v1018_v30 = vld [vmem:[%s3309_s13 + $0x320] sm:$0xff]  ;;  %v1025_v31 = vld [vmem:[%s3309_s13 + $0x358] sm:$0xff] }
 0x2d7   :  { %2034 = vmatprep.subr.bf16.mxu1 %v2214_v50 }
 0x2da   :  { %2036 = vmatpush3.bf16.msra.mxu1 %v2035_v35  ;;  %v2076_v35 = vpack.c.bf16 %v1010_v34, %v1003_v33  ;;  %v923_v33 = vld [vmem:[%s3309_s13 + $0x28] sm:$0xff]  ;;  %v930_v34 = vld [vmem:[%s3309_s13 + $0x60] sm:$0xff] }
 0x2db   :  { %2037 = vmatprep.subr.bf16.mxu1 %v2214_v50 }
 0x2de   :  { %2039 = vmatpush3.bf16.msra.mxu1 %v2038_v38  ;;  %v2078_v38 = vpack.c.bf16 %v1009_v37, %v1002_v36  ;;  %v1405_v36 = vld [vmem:[%s3308_s12] ss:$0 sm:$0xff] }
 0x2df   :  { %2040 = vmatprep.subr.bf16.mxu1 %v2214_v50  ;;  %v922_v37 = vld [vmem:[%s3309_s13 + $0x20] sm:$0xff] }
 0x2e2   :  { %2042 = vmatpush3.bf16.msra.mxu1 %v2041_v41  ;;  %v927_v41 = vld [vmem:[%s3309_s13 + $0x48] sm:$0xff] }
 0x2e3   :  { %2043 = vmatprep.subr.bf16.mxu1 %v2214_v50 }
 0x2e6   :  { %2045 = vmatpush3.bf16.msra.mxu1 %v2044_v44  ;;  %v942_v44 = vld [vmem:[%s3309_s13 + $0xc0] sm:$0xff] }
 0x2e7   :  { %2046 = vmatprep.subr.bf16.mxu1 %v2214_v50 }
 0x2ea   :  { %2048 = vmatpush3.bf16.msra.mxu1 %v2047_v47  ;;  %v2086_v47 = vpack.c.bf16 %v927_v41, %v920_v40  ;;  %v931_v40 = vld [vmem:[%s3309_s13 + $0x68] sm:$0xff] }
 0x2eb   :  { %2049 = vmatprep.subr.bf16.mxu1 %v2214_v50 }
 0x2ee   :  { %2051 = vmatpush3.bf16.msra.mxu1 %v2050_v56 }
 0x2ef   :  { %2085 = vmatprep.subr.bf16.mxu1 %v2084_v1  ;;  %v969_v1 = vld [vmem:[%s3309_s13 + $0x198] sm:$0xff] }
 0x2f0   :  { %v2098_v4 = vpack.c.bf16 %v969_v1, %v962_v0  ;;  %v959_v0 = vld [vmem:[%s3309_s13 + $0x148] sm:$0xff]  ;;  %v965_v1 = vld [vmem:[%s3309_s13 + $0x178] sm:$0xff] }
 0x3a4   :  { %v725_v49 = vpop.f32.mrb[6].mxu1 }
 0x3a5   :  { %v726_v51 = vadd.f32 %v1403_v48, %v725_v49  ;;  %v1727_v52 = vpop.f32.mrb[7].mxu1  ;;  %v2088_v49 = vpack.c.bf16 %v942_v44, %v935_v43  ;;  %v944_v43 = vld [vmem:[%s3309_s13 + $0xd0] sm:$0xff] }
 0x3a6   :  { %v941_v52 = vld [vmem:[%s3309_s13 + $0xb8] sm:$0xff] }
 0x3a7   :  { %v729_v53 = vmax.f32 %v726_v51, 0.0  ;;  %v934_v51 = vld [vmem:[%s3309_s13 + $0x80] sm:$0xff] }
 0x3a8   :  { %v2090_v55 = vpack.c.bf16 %v941_v52, %v934_v51  ;;  %v943_v52 = vld [vmem:[%s3309_s13 + $0xc8] sm:$0xff] }
 0x3a9   :  { %1761 = vmatmul.mubr.f32.vlgmr.msra.gmra.mrb[6].mxu0 %v729_v53  ;;  %v949_v53 = vld [vmem:[%s3309_s13 + $0xf8] sm:$0xff] }
 0x3aa   :  { %1131 = vmatprep.mubr.f32.mxu0 %v2216_v60  ;;  %2055 = vmatpush1.bf16.msra.mxu0 %v2054_v2  ;;  %v2092_v56 = vpack.c.bf16 %v956_v54, %v949_v53  ;;  %v977_v2 = vld [vmem:[%s3309_s13 + $0x1d8] sm:$0xff]  ;;  %v938_v53 = vld [vmem:[%s3309_s13 + $0xa0] sm:$0xff] }
 0x3ab   :  { %2057 = vmatprep.subr.bf16.mxu0 %v2056_v5  ;;  %v2100_v5 = vpack.c.bf16 %v984_v3, %v977_v2  ;;  %v945_v54 = vld [vmem:[%s3309_s13 + $0xd8] sm:$0xff]  ;;  %v972_v2 = vld [vmem:[%s3309_s13 + $0x1b0] sm:$0xff] }
 0x3ac   :  { %v2152_v58 = vpack.c.bf16 %v945_v54, %v938_v53  ;;  %v2128_v6 = vpack.c.bf16 %v972_v2, %v965_v1  ;;  %v1030_v53 = vld [vmem:[%s3310_s14] sm:$0x7f] }
 0x3ae   :  { %2059 = vmatpush1.bf16.msra.mxu0 %v2058_v8  ;;  %v991_v8 = vld [vmem:[%s3309_s13 + $0x248] sm:$0xff] }
 0x3af   :  { %2061 = vmatprep.subr.bf16.mxu0 %v2060_v11  ;;  %v2104_v11 = vpack.c.bf16 %v998_v9, %v991_v8  ;;  %v973_v8 = vld [vmem:[%s3309_s13 + $0x1b8] sm:$0xff]  ;;  %v979_v9 = vld [vmem:[%s3309_s13 + $0x1e8] sm:$0xff] }
 0x3b2   :  { %2063 = vmatpush1.bf16.msra.mxu0 %v2062_v14  ;;  %v1005_v14 = vld [vmem:[%s3309_s13 + $0x2b8] sm:$0xff] }
 0x3b3   :  { %2065 = vmatprep.subr.bf16.mxu0 %v2064_v17  ;;  %v2108_v17 = vpack.c.bf16 %v1012_v15, %v1005_v14  ;;  %v985_v15 = vld [vmem:[%s3309_s13 + $0x218] sm:$0xff] }
 0x3b6   :  { %2067 = vmatpush1.bf16.msra.mxu0 %v2066_v20  ;;  %v2110_v20 = vpack.c.bf16 %v1011_v19, %v1004_v18  ;;  %v993_v18 = vld [vmem:[%s3309_s13 + $0x258] sm:$0xff]  ;;  %v1000_v19 = vld [vmem:[%s3309_s13 + $0x290] sm:$0xff] }
 0x3b7   :  { %2069 = vmatprep.subr.bf16.mxu0 %v2068_v23  ;;  %v1019_v23 = vld [vmem:[%s3309_s13 + $0x328] sm:$0xff] }
 0x3b8   :  { %v2112_v28 = vpack.c.bf16 %v1026_v25, %v1019_v23  ;;  %v2136_v23 = vpack.c.bf16 %v1000_v19, %v993_v18  ;;  %v994_v25 = vld [vmem:[%s3309_s13 + $0x260] sm:$0xff] }
 0x3ba   :  { %2071 = vmatpush1.bf16.msra.mxu0 %v2070_v26  ;;  %v1016_v26 = vld [vmem:[%s3309_s13 + $0x310] sm:$0xff] }
 0x3bb   :  { %2073 = vmatprep.subr.bf16.mxu0 %v2072_v29  ;;  %v2082_v29 = vpack.c.bf16 %v1023_v27, %v1016_v26  ;;  %v1001_v26 = vld [vmem:[%s3309_s13 + $0x298] sm:$0xff]  ;;  %v1007_v27 = vld [vmem:[%s3309_s13 + $0x2c8] sm:$0xff] }
 0x3be   :  { %2075 = vmatpush1.bf16.msra.mxu0 %v2074_v32  ;;  %v2114_v32 = vpack.c.bf16 %v1025_v31, %v1018_v30  ;;  %v2164_v30 = vpack.c.bf16 %v1001_v26, %v994_v25  ;;  %v1006_v31 = vld [vmem:[%s3309_s13 + $0x2c0] sm:$0xff] }
 0x3bf   :  { %2077 = vmatprep.subr.bf16.mxu0 %v2076_v35  ;;  %v2116_v35 = vpack.c.bf16 %v930_v34, %v923_v33  ;;  %v1013_v33 = vld [vmem:[%s3309_s13 + $0x2f8] sm:$0xff]  ;;  %v1008_v34 = vld [vmem:[%s3309_s13 + $0x2d0] sm:$0xff] }
 0x3c2   :  { %2079 = vmatpush1.bf16.msra.mxu0 %v2078_v38  ;;  %v929_v38 = vld [vmem:[%s3309_s13 + $0x58] sm:$0xff] }
 0x3c3   :  { %2081 = vmatprep.subr.bf16.mxu0 %v2080_v24  ;;  %v999_v24 = vld [vmem:[%s3309_s13 + $0x288] sm:$0xff] }
 0x3c6   :  { %2083 = vmatpush1.bf16.msra.mxu0 %v2082_v29  ;;  %v2138_v29 = vpack.c.bf16 %v999_v24, %v992_v22 }
 0x3c7   :  { %2117 = vmatprep.subr.bf16.mxu0 %v2116_v35  ;;  %v1015_v35 = vld [vmem:[%s3309_s13 + $0x308] sm:$0xff] }
 0x47c   :  { %v819_v42 = vpop.f32.mrb[6].mxu0 }
 0x47d   :  { %v820_v45 = vadd.f32 %v1404_v39, %v819_v42  ;;  %v1762_v46 = vpop.f32.mrb[7].mxu0  ;;  %v924_v39 = vld [vmem:[%s3309_s13 + $0x30] sm:$0xff]  ;;  %v937_v42 = vld [vmem:[%s3309_s13 + $0x98] sm:$0xff] }
 0x47e   :  { %v2118_v46 = vpack.c.bf16 %v929_v38, %v922_v37  ;;  %v2120_v51 = vpack.c.bf16 %v944_v43, %v937_v42  ;;  %v1028_v37 = vld [vmem:[%s3309_s13 + $0x370] sm:$0xff]  ;;  %v2142_v38 = vpack.c.bf16 %v1013_v33, %v1006_v31  ;;  %v1027_v42 = vld [vmem:[%s3309_s13 + $0x368] sm:$0xff]  ;;  %v1022_v43 = vld [vmem:[%s3309_s13 + $0x340] sm:$0xff] }
 0x47f   :  { %v823_v48 = vmax.f32 %v820_v45, 0.0 }
 0x481   :  { %1796 = vmatmul.mubr.f32.vlgmr.msra.gmra.mrb[8].mxu1 %v823_v48  ;;  %v936_v48 = vld [vmem:[%s3309_s13 + $0x90] sm:$0xff] }
 0x482   :  { %2087 = vmatpush1.bf16.msra.mxu1 %v2086_v47  ;;  %1202 = vmatprep.mubr.f32.mxu1 %v2216_v60  ;;  %v2149_v47 = vpack.c.bf16 %v931_v40, %v924_v39  ;;  %v2122_v57 = vpack.c.bf16 %v943_v52, %v936_v48  ;;  %v2167_v39 = vpack.c.bf16 %v1015_v35, %v1008_v34  ;;  %v1020_v40 = vld [vmem:[%s3309_s13 + $0x330] sm:$0xff] }
 0x483   :  { %2089 = vmatprep.subr.bf16.mxu1 %v2088_v49 }
 0x486   :  { %2091 = vmatpush1.bf16.msra.mxu1 %v2090_v55  ;;  %v951_v55 = vld [vmem:[%s3309_s13 + $0x108] sm:$0xff] }
 0x487   :  { %2093 = vmatprep.subr.bf16.mxu1 %v2092_v56  ;;  %v958_v56 = vld [vmem:[%s3309_s13 + $0x140] sm:$0xff] }
 0x488   :  { %v2124_v61 = vpack.c.bf16 %v958_v56, %v951_v55 }
 0x48a   :  { %2095 = vmatpush1.bf16.msra.mxu1 %v2094_v62  ;;  %v957_v62 = vld [vmem:[%s3309_s13 + $0x138] sm:$0xff] }
 0x48b   :  { %2097 = vmatprep.subr.bf16.mxu1 %v2096_v63  ;;  %v952_v63 = vld [vmem:[%s3309_s13 + $0x110] sm:$0xff]  ;;  %v2126_v3 = vpack.c.bf16 %v957_v62, %v950_v59 }
 0x48e   :  { %2099 = vmatpush1.bf16.msra.mxu1 %v2098_v4  ;;  %v2155_v4 = vpack.c.bf16 %v959_v0, %v952_v63 }
 0x48f   :  { %2101 = vmatprep.subr.bf16.mxu1 %v2100_v5  ;;  %v964_v5 = vld [vmem:[%s3309_s13 + $0x170] sm:$0xff] }
 0x492   :  { %2103 = vmatpush1.bf16.msra.mxu1 %v2102_v10  ;;  %v986_v10 = vld [vmem:[%s3309_s13 + $0x220] sm:$0xff] }
 0x493   :  { %2105 = vmatprep.subr.bf16.mxu1 %v2104_v11  ;;  %v2130_v11 = vpack.c.bf16 %v971_v7, %v964_v5  ;;  %v2132_v14 = vpack.c.bf16 %v986_v10, %v979_v9 }
 0x496   :  { %2107 = vmatpush1.bf16.msra.mxu1 %v2106_v16  ;;  %v980_v16 = vld [vmem:[%s3309_s13 + $0x1f0] sm:$0xff] }
 0x497   :  { %2109 = vmatprep.subr.bf16.mxu1 %v2108_v17  ;;  %v987_v17 = vld [vmem:[%s3309_s13 + $0x228] sm:$0xff] }
 0x498   :  { %v2161_v21 = vpack.c.bf16 %v987_v17, %v980_v16 }
 0x49a   :  { %2111 = vmatpush1.bf16.msra.mxu1 %v2110_v20  ;;  %v2134_v20 = vpack.c.bf16 %v985_v15, %v978_v13 }
 0x49b   :  { %2113 = vmatprep.subr.bf16.mxu1 %v2112_v28  ;;  %v1014_v28 = vld [vmem:[%s3309_s13 + $0x300] sm:$0xff] }
 0x49e   :  { %2115 = vmatpush1.bf16.msra.mxu1 %v2114_v32  ;;  %v2140_v32 = vpack.c.bf16 %v1014_v28, %v1007_v27 }
 0x49f   :  { %2148 = vmatprep.subr.bf16.mxu1 %v2214_v50 }
 0x554   :  { %v913_v41 = vpop.f32.mrb[8].mxu1 }
 0x555   :  { %v914_v44 = vadd.f32 %v1405_v36, %v913_v41  ;;  %v1797_v45 = vpop.f32.mrb[9].mxu1  ;;  %v1021_v36 = vld [vmem:[%s3309_s13 + $0x338] sm:$0xff] }
 0x556   :  { %v2144_v41 = vpack.c.bf16 %v1028_v37, %v1021_v36  ;;  %v2146_v45 = vpack.c.bf16 %v1027_v42, %v1020_v40 }
 0x557   :  { %v3147_v49 = vmax.f32 %v914_v44, 0.0  ;;  %v1029_v44 = vld [vmem:[%s3309_s13 + $0x378] sm:$0xff] }
 0x559   :  { %1132 = vmatmul.mubr.f32.vlgmr.msra.gmra.mrb[8].mxu0 %v3147_v49  ;;  %1203 = vmatmul.mubr.f32.vlgmr.msra.gmra.mrb[10].mxu1 %v3147_v49 }
 0x55a   :  { %2119 = vmatpush1.bf16.msra.mxu0 %v2118_v46  ;;  %2150 = vmatpush3.bf16.msra.mxu1 %v2149_v47  ;;  %v2170_v46 = vpack.c.bf16 %v1029_v44, %v1022_v43  ;;  %v1032_v47 = vlaneseq }
 0x55b   :  { %2121 = vmatprep.subr.bf16.mxu0 %v2120_v51  ;;  %2151 = vmatprep.subr.bf16.mxu1 %v2214_v50 }
 0x55c   :  { %1273 = vmatprep.mubr.f32.mxu0 %v2216_v60  ;;  %1830 = vmatprep.mubr.msk.f32.mxu1 %vm2215_vm0, %v2216_v60  ;;  %v966_v60 = vld [vmem:[%s3309_s13 + $0x180] sm:$0xff]  ;;  %v1033_v48 = vshrl.u32 %v1032_v47, 7  ;;  %s2217_s13 = smov [#allocation2]  }
 0x55d   :  { %v2158_v12 = vpack.c.bf16 %v973_v8, %v966_v60  ;;  %s1391_s14 = sshll.u32 %s2217_s13, 4  ;;  %s1392_s14 = int_to_ptr.vmem [resolvable:$true] %s1391_s14 }
 0x55e   :  { %2123 = vmatpush1.bf16.msra.mxu0 %v2122_v57  ;;  %2153 = vmatpush3.bf16.msra.mxu1 %v2152_v58  ;;  %v1034_v51 = vsub.s32 0, %v1033_v48  ;;  %v1042_v52 = vsub.s32 2, %v1033_v48  ;;  %v1038_v54 = vsub.s32 1, %v1033_v48  ;;  %v1046_v55 = vsub.s32 3, %v1033_v48  ;;  %s2190_s12 = scalar_lea.vmem %s1392_s14, 896  ;;  %p2195_p1 = scmp.lt.s32.totalorder %s1392_s14, %s1392_s14 }
 0x55f   :  { %2125 = vmatprep.subr.bf16.mxu0 %v2124_v61  ;;  %2154 = vmatprep.subr.bf16.mxu1 %v2214_v50  ;;  %v1050_v18 = vsub.s32 4, %v1033_v48  ;;  %v1058_v19 = vsub.s32 6, %v1033_v48  ;;  %p2191_p0 = scmp.ne.s32.totalorder %s1392_s14, %s2190_s12  ;;  %p2196_p2 = scmp.lt.s32.totalorder %s2190_s12, %s2190_s12 }
 0x560   :  { %v1035_v56 = vrot.slane %v1030_v53, %v1034_v51  ;;  %v1043_v57 = vrot.slane %v1030_v53, %v1042_v52  ;;  %v1039_v58 = vrot.slane %v1030_v53, %v1038_v54 }
 0x561   :  { %v1059_v22 = vrot.slane %v1030_v53, %v1058_v19  ;;  %p2197_p3 = por %p2196_p2, %p2195_p1 }
 0x562   :  { %2127 = vmatpush1.bf16.msra.mxu0 %v2126_v3  ;;  %2156 = vmatpush3.bf16.msra.mxu1 %v2155_v4 }
 0x563   :  { %2129 = vmatprep.subr.bf16.mxu0 %v2128_v6  ;;  %2157 = vmatprep.subr.bf16.mxu1 %v2214_v50  ;;  %p2198_p4 = pnand %p2197_p3, %p2191_p0 }
 0x566   :  { %2131 = vmatpush1.bf16.msra.mxu0 %v2130_v11  ;;  %2159 = vmatpush3.bf16.msra.mxu1 %v2158_v12 }
 0x567   :  { %2133 = vmatprep.subr.bf16.mxu0 %v2132_v14  ;;  %2160 = vmatprep.subr.bf16.mxu1 %v2214_v50 }
 0x56a   :  { %2135 = vmatpush1.bf16.msra.mxu0 %v2134_v20  ;;  %2162 = vmatpush3.bf16.msra.mxu1 %v2161_v21  ;;  %v1054_v20 = vsub.s32 5, %v1033_v48  ;;  %v1051_v21 = vrot.slane %v1030_v53, %v1050_v18 }
 0x56b   :  { %2137 = vmatprep.subr.bf16.mxu0 %v2136_v23  ;;  %2163 = vmatprep.subr.bf16.mxu1 %v2214_v50 }
 0x56c   :  { %v1055_v23 = vrot.slane %v1030_v53, %v1054_v20 }
 0x56e   :  { %2139 = vmatpush1.bf16.msra.mxu0 %v2138_v29  ;;  %2165 = vmatpush3.bf16.msra.mxu1 %v2164_v30 }
 0x56f   :  { %2141 = vmatprep.subr.bf16.mxu0 %v2140_v32  ;;  %2166 = vmatprep.subr.bf16.mxu1 %v2214_v50 }
 0x572   :  { %2143 = vmatpush1.bf16.msra.mxu0 %v2142_v38  ;;  %2168 = vmatpush3.bf16.msra.mxu1 %v2167_v39 }
 0x573   :  { %2145 = vmatprep.subr.bf16.mxu0 %v2144_v41  ;;  %2169 = vmatprep.subr.bf16.mxu1 %v2214_v50  ;;  %v1047_v50 = vrot.slane %v1030_v53, %v1046_v55 }
 0x576   :  { %2147 = vmatpush1.bf16.msra.mxu0 %v2146_v45  ;;  %2171 = vmatpush3.bf16.msra.mxu1 %v2170_v46 }
 0x579   :  { %1274 = vmatmul.mubr.f32.vlgmr.msra.gmra.mrb[10].mxu0 %v3147_v49  ;;  %1831 = vmatmul.mubr.f32.vlgmr.msra.gmra.mrb[12].mxu1 %v3147_v49 }
 0x62c   :  { %v1133_v59 = vpop.f32.mrb[8].mxu0  ;;  %v1204_v61 = vpop.f32.mrb[10].mxu1 }
 0x62d   :  { %v1134_v62 = vadd.f32 %v1133_v59, %v1035_v56  ;;  %v1205_v63 = vadd.f32 %v1204_v61, %v1043_v57  ;;  %v1135_v0 = vpop.f32.mrb[9].mxu0  ;;  %v1206_v49 = vpop.f32.mrb[11].mxu1 }
 0x62e   :  { %v1136_v1 = vadd.f32 %v1135_v0, %v1039_v58  ;;  %v1207_v2 = vadd.f32 %v1206_v49, %v1047_v50 }
 0x62f   :  { %v1350_v3 = vmul.f32 0.5, %v1134_v62  ;;  %v1352_v4 = vmul.f32 0.5, %v1205_v63 }
 0x630   :  { %v1351_v5 = vmul.f32 0.5, %v1136_v1  ;;  %v1353_v6 = vmul.f32 0.5, %v1207_v2 }
 0x631   :  { %2176 = vtanh.f32 %v1350_v3 }
 0x632   :  { %2178 = vtanh.f32 %v1352_v4 }
 0x633   :  { %2180 = vtanh.f32 %v1351_v5 }
 0x634   :  { %2182 = vtanh.f32 %v1353_v6 }
 0x63b   :  { %v2177_v7 = vpop.eup %2176 }
 0x63c   :  { %v2179_v60 = vpop.eup %2178  ;;  %v1364_v8 = vmul.f32 0.5, %v2177_v7 }
 0x63d   :  { %v2181_v9 = vpop.eup %2180  ;;  %v1366_v10 = vmul.f32 0.5, %v2179_v60 }
 0x63e   :  { %v2183_v11 = vpop.eup %2182  ;;  %v1371_v12 = vadd.f32 0.5, %v1364_v8  ;;  %v1365_v13 = vmul.f32 0.5, %v2181_v9 }
 0x63f   :  { %v1373_v14 = vadd.f32 0.5, %v1366_v10  ;;  %v1367_v15 = vmul.f32 0.5, %v2183_v11 }
 0x640   :  { %1378 = vst [vmem:[#allocation2] sm:$0xff] %v1371_v12  ;;  %v1372_v16 = vadd.f32 0.5, %v1365_v13 }
 0x641   :  { %1380 = vst [vmem:[#allocation2 + $0x10] sm:$0xff] %v1373_v14  ;;  %v1374_v17 = vadd.f32 0.5, %v1367_v15 }
 0x642   :  { %1379 = vst [vmem:[#allocation2 + $0x8] sm:$0xff] %v1372_v16 }
 0x643   :  { %1381 = vst [vmem:[#allocation2 + $0x18] sm:$0xff] %v1374_v17 }
 0x64c   :  { %v1275_v24 = vpop.f32.mrb[10].mxu0  ;;  %v1346_v25 = vpop.f32.mrb[12].mxu1 }
 0x64d   :  { %v1276_v26 = vadd.f32 %v1275_v24, %v1051_v21  ;;  %v1347_v27 = vadd.f32 %v1346_v25, %v1059_v22  ;;  %v1277_v28 = vpop.f32.mrb[11].mxu0  ;;  %v1832_v29 = vpop.f32.mrb[13].mxu1 }
 0x64e   :  { %v1278_v30 = vadd.f32 %v1277_v28, %v1055_v23 }
 0x64f   :  { %v1354_v31 = vmul.f32 0.5, %v1276_v26  ;;  %v1356_v32 = vmul.f32 0.5, %v1347_v27 }
 0x650   :  { %v1355_v33 = vmul.f32 0.5, %v1278_v30 }
 0x651   :  { %2184 = vtanh.f32 %v1354_v31 }
 0x652   :  { %2186 = vtanh.f32 %v1356_v32 }
 0x653   :  { %2188 = vtanh.f32 %v1355_v33 }
 0x65b   :  { %v2185_v34 = vpop.eup %2184 }
 0x65c   :  { %v2187_v35 = vpop.eup %2186  ;;  %v1368_v36 = vmul.f32 0.5, %v2185_v34 }
 0x65d   :  { %v2189_v37 = vpop.eup %2188  ;;  %v1370_v38 = vmul.f32 0.5, %v2187_v35 }
 0x65e   :  { %v1375_v39 = vadd.f32 0.5, %v1368_v36  ;;  %v1369_v40 = vmul.f32 0.5, %v2189_v37 }
 0x65f   :  { %v1377_v41 = vadd.f32 0.5, %v1370_v38 }
 0x660   :  { %1382 = vst [vmem:[#allocation2 + $0x20] sm:$0xff] %v1375_v39  ;;  %v1376_v42 = vadd.f32 0.5, %v1369_v40 }
 0x661   :  { %1384 = vst.msk [vmem:[#allocation2 + $0x30] sm:$0xff] %vm163_vm1, %v1377_v41 }
 0x662   :  { %1383 = vst [vmem:[#allocation2 + $0x28] sm:$0xff] %v1376_v42 }
 0x663   :  { %2201 = shalt.err (!%p2198_p4)
}
 0x664   :  { %s2202_s16 = scalar_lea.hbm %s3311_s15, 896 }
 0x665   :  { %p2203_p5 = scmp.ne.s32.totalorder %s3311_s15, %s2202_s16  ;;  %p2206_p6 = scmp.lt.u32.totalorder %s2202_s16, %s3311_s15 }
 0x667   :  { %p2208_p7 = pnand %p2206_p6, %p2203_p5 }
 0x669   :  { %2211 = shalt.err (!%p2208_p7)
}
 0x66a   :  { %1394 = dma.vmem_to_hbm [thread:$0]  %s1392_s14, 896, %s3311_s15, [#allocation3]  }
 0x66b   :  { %2212 = dma.done.wait [#allocation3], 896  }
 0x66c   :  { %2213 = vsyncadd [#allocation3], 4294966400 }
 0x66d   :  { %1398 = vsyncpa [#allocation3], 1 }

</bundles_post_ra>
